<compile_context>
chip_gen: v7x
topology: tpu7x:2x2x1
jax: 0.10.0
libtpu: 0.0.40
codegen_flags: <defaults>
</compile_context>

<pallas_src>
import functools

import jax
import jax.numpy as jnp
from jax import lax
from jax.experimental import pallas as pl
from jax.experimental.pallas import tpu as pltpu

_EPS = 1e-5
_LANES = 128

# Tap order for the conv1 im2col packing: CENTER TAP FIRST so the residual is
# simply the first C lanes of the im2col slab.
_TAPS = ((1, 1), (0, 0), (0, 1), (0, 2), (1, 0), (1, 2), (2, 0), (2, 1), (2, 2))


def _round_up(x, m):
    return (x + m - 1) // m * m


def _resblock_kernel(im2_ref, w1_ref, w2_ref, b1_ref, b2_ref, o_ref,
                     hf_ref, acc_ref, *, C, W, Wr, Cp, M0, Mpb):
    """One image per grid step.

    im2_ref : (1, M0, Kp) bf16  im2col of the padded input, Wr-row layout,
                                tap-major lanes with the center tap first
    w1_ref  : (Kp, Cp)    bf16  packed conv1 weight (BN1 scale folded)
    w2_ref  : (9, Cp, Cp) bf16  conv2 weights, tap-major (BN2 scale folded)
    b*_ref  : (1, Cp)     f32   folded conv bias + BN shift
    o_ref   : (1, M0, Cp) bf16  flattened output (wrap cols / pad channels
                                sliced off by the wrapper)
    hf_ref  : (Mpb, Cp)   bf16  scratch: zero-padded conv1 activation
    acc_ref : (M0, Cp)    f32   scratch: conv2 accumulator
    """
    # Zero only the scratch border rows; the interior [Wr+1, Wr+1+M0) is fully
    # overwritten below.  Re-done every step: with a "parallel" grid each core
    # owns its own scratch, so a program_id==0 guard would be unsafe.
    top = _round_up(Wr + 1, 8)
    hf_ref[pl.ds(0, top), :] = jnp.zeros((top, Cp), jnp.bfloat16)
    bot = (Wr + 1 + M0) // 8 * 8
    hf_ref[pl.ds(bot, Mpb - bot), :] = jnp.zeros((Mpb - bot, Cp), jnp.bfloat16)

    # ---- conv1 (+BN1 scale folded) + bias + ReLU: one packed matmul ----
    h1 = jnp.dot(im2_ref[0], w1_ref[...], preferred_element_type=jnp.float32)
    h1 = jnp.maximum(h1 + b1_ref[...], 0.0)
    # Zero the (Wr - W) wrap/pad columns so they act as conv2's spatial pads.
    col = lax.broadcasted_iota(jnp.int32, (M0, Cp), 0) % Wr
    h1 = jnp.where(col < W, h1, 0.0)
    hf_ref[pl.ds(Wr + 1, M0), :] = h1.astype(jnp.bfloat16)

    # ---- conv2 (+BN2 scale folded): 9 tap matmuls into the f32 VMEM acc ----
    # First tap initializes the accumulator and folds in the bias.
    acc_ref[...] = b2_ref[...] + jnp.dot(hf_ref[pl.ds(0, M0), :], w2_ref[0],
                                         preferred_element_type=jnp.float32)
    for t in range(1, 9):
        off = (t // 3) * Wr + (t % 3)
        acc_ref[...] += jnp.dot(hf_ref[pl.ds(off, M0), :], w2_ref[t],
                                preferred_element_type=jnp.float32)

    # ---- ReLU + identity residual add (f32 epilogue), single bf16 store ----
    lane = lax.broadcasted_iota(jnp.int32, (M0, Cp), 1)
    res = jnp.where(lane < C, im2_ref[0].astype(jnp.float32), 0.0)
    o_ref[0] = (jnp.maximum(acc_ref[...], 0.0) + res).astype(jnp.bfloat16)


@jax.jit
def residual_block_forward(x_nchw, raw):
    """Forward pass of residualBlock (eval-mode BN). NCHW f32 in / out."""
    N, C, H, W = x_nchw.shape
    if 9 * C > _LANES:
        # TODO(synk): general path packs floor(128/C) taps per matmul.
        raise NotImplementedError("packed-K path requires 9*C <= 128")
    Cp = _LANES                      # output channels padded to a full lane
    Kp = _LANES                      # packed contraction dim (9*C -> 128)
    Wr = _round_up(W + 2, 8)         # padded row width, sublane aligned
    M0 = H * Wr                      # flattened rows per image (Wr layout)
    Mpb = (H + 2) * Wr + 8           # conv2 scratch rows (+ tap-reach slack)

    # ---- fold BN (running stats) + conv bias; pack / pad; cast to bf16 ----
    s1 = raw['g1'] / jnp.sqrt(raw['v1'] + _EPS)
    s2 = raw['g2'] / jnp.sqrt(raw['v2'] + _EPS)
    b1 = (raw['bc1'] - raw['m1']) * s1 + raw['be1']
    b2 = (raw['bc2'] - raw['m2']) * s2 + raw['be2']
    w1f = raw['w1'] * s1[None, None, None, :]      # HWIO, scale out-channel
    w2f = raw['w2'] * s2[None, None, None, :]

    # conv1 weight packed along K (tap-major, center tap first).
    w1_stack = jnp.concatenate([w1f[dh, dw] for dh, dw in _TAPS], axis=0)
    w1p = jnp.pad(w1_stack, ((0, Kp - 9 * C), (0, Cp - C))).astype(jnp.bfloat16)
    # conv2 weights stay tap-major (row-major dh,dw), channel-padded.
    w2p = jnp.pad(w2f, ((0, 0), (0, 0), (0, Cp - C), (0, Cp - C)))
    w2p = w2p.reshape(9, Cp, Cp).astype(jnp.bfloat16)
    b1p = jnp.pad(b1, (0, Cp - C)).reshape(1, Cp).astype(jnp.float32)
    b2p = jnp.pad(b2, (0, Cp - C)).reshape(1, Cp).astype(jnp.float32)

    # ---- im2col of the zero-padded input, Wr-row layout, bf16 ----
    x_nhwc = jnp.transpose(x_nchw, (0, 2, 3, 1))
    xp = jnp.pad(x_nhwc, ((0, 0), (1, 1), (1, 1), (0, 0)))
    im2 = jnp.concatenate([xp[:, dh:dh + H, dw:dw + W, :] for dh, dw in _TAPS],
                          axis=-1)                          # (N, H, W, 9C)
    im2 = jnp.pad(im2, ((0, 0), (0, 0), (0, Wr - W), (0, Kp - 9 * C)))
    im2 = im2.reshape(N, M0, Kp).astype(jnp.bfloat16)

    kernel = functools.partial(_resblock_kernel, C=C, W=W, Wr=Wr, Cp=Cp,
                               M0=M0, Mpb=Mpb)
    flops = 2 * N * M0 * Cp * (Kp + 9 * Cp)
    bytes_accessed = (im2.size * 2 + w1p.size * 2 + w2p.size * 2 +
                      (b1p.size + b2p.size) * 4 + N * M0 * Cp * 2)

    out_flat = pl.pallas_call(
        kernel,
        out_shape=jax.ShapeDtypeStruct((N, M0, Cp), jnp.bfloat16),
        grid_spec=pltpu.PrefetchScalarGridSpec(
            num_scalar_prefetch=0,
            grid=(N,),                       # >= 2 parallel steps for N >= 2
            in_specs=[
                pl.BlockSpec((1, M0, Kp), lambda n: (n, 0, 0)),
                # Grid-invariant operands (constant index_map) are DMA'd once.
                pl.BlockSpec((Kp, Cp), lambda n: (0, 0)),
                pl.BlockSpec((9, Cp, Cp), lambda n: (0, 0, 0)),
                pl.BlockSpec((1, Cp), lambda n: (0, 0)),
                pl.BlockSpec((1, Cp), lambda n: (0, 0)),
            ],
            out_specs=pl.BlockSpec((1, M0, Cp), lambda n: (n, 0, 0)),
            scratch_shapes=[pltpu.VMEM((Mpb, Cp), jnp.bfloat16),
                            pltpu.VMEM((M0, Cp), jnp.float32)],
        ),
        compiler_params=pltpu.CompilerParams(
            dimension_semantics=("parallel",)),
        cost_estimate=pl.CostEstimate(flops=flops, transcendentals=0,
                                      bytes_accessed=bytes_accessed),
    )(im2, w1p, w2p, b1p, b2p)

    out = out_flat.reshape(N, H, Wr, Cp)[:, :, :W, :C].astype(jnp.float32)
    return jnp.transpose(out, (0, 3, 1, 2))


def init_params(key, C):
    """Deterministic synthetic parameters (Conv2d + BatchNorm2d, eval mode)."""
    ks = jax.random.split(key, 12)
    w1 = jax.random.normal(ks[0], (3, 3, C, C), jnp.float32) * 0.1   # HWIO
    bc1 = jax.random.normal(ks[1], (C,), jnp.float32) * 0.1
    w2 = jax.random.normal(ks[2], (3, 3, C, C), jnp.float32) * 0.1
    bc2 = jax.random.normal(ks[3], (C,), jnp.float32) * 0.1
    g1 = 1.0 + 0.1 * jax.random.normal(ks[4], (C,), jnp.float32)
    be1 = 0.1 * jax.random.normal(ks[5], (C,), jnp.float32)
    m1 = 0.1 * jax.random.normal(ks[6], (C,), jnp.float32)
    v1 = 1.0 + 0.1 * jnp.abs(jax.random.normal(ks[7], (C,), jnp.float32))
    g2 = 1.0 + 0.1 * jax.random.normal(ks[8], (C,), jnp.float32)
    be2 = 0.1 * jax.random.normal(ks[9], (C,), jnp.float32)
    m2 = 0.1 * jax.random.normal(ks[10], (C,), jnp.float32)
    v2 = 1.0 + 0.1 * jnp.abs(jax.random.normal(ks[11], (C,), jnp.float32))
    return dict(w1=w1, bc1=bc1, w2=w2, bc2=bc2, g1=g1, be1=be1, m1=m1, v1=v1,
                g2=g2, be2=be2, m2=m2, v2=v2)


def ref_forward(x_nchw, raw):
    """Plain-JAX f32 reference (mirrors the PyTorch module in eval mode)."""
    def conv(x, w_hwio, b):
        w = jnp.transpose(w_hwio, (3, 2, 0, 1))  # OIHW
        y = lax.conv_general_dilated(
            x, w, window_strides=(1, 1), padding=((1, 1), (1, 1)),
            dimension_numbers=('NCHW', 'OIHW', 'NCHW'))
        return y + b[None, :, None, None]

    def bn(x, g, be, m, v):
        return ((x - m[None, :, None, None]) /
                jnp.sqrt(v[None, :, None, None] + _EPS) *
                g[None, :, None, None] + be[None, :, None, None])

    h = jax.nn.relu(bn(conv(x_nchw, raw['w1'], raw['bc1']),
                       raw['g1'], raw['be1'], raw['m1'], raw['v1']))
    h = jax.nn.relu(bn(conv(h, raw['w2'], raw['bc2']),
                       raw['g2'], raw['be2'], raw['m2'], raw['v2']))
    return h + x_nchw          # ReLU before the add, none after (module spec)


if __name__ == "__main__":
    N, C, H, W = 2, 4, 16, 16          # in_channel == out_channel, stride=1
    key = jax.random.PRNGKey(0)
    kx, kp = jax.random.split(key)
    x = jax.random.normal(kx, (N, C, H, W), jnp.float32)
    raw = init_params(kp, C)

    out = jax.block_until_ready(residual_block_forward(x, raw))
    ref = ref_forward(x, raw)

    assert out.shape == ref.shape == (N, C, H, W)
    err = jnp.max(jnp.abs(out - ref))
    # bf16 activations/weights on the MXU + bf16 output -> loose tolerance.
    assert jnp.allclose(out, ref, atol=6e-2, rtol=2e-2), f"max abs err {err}"
    print("KERNEL_OK")
</pallas_src>

<mosaic_0001>
module attributes {stable_mosaic.version = 11 : i64} {
  func.func @_resblock_kernel(%arg0: i32, %arg1: memref<1x384x128xbf16, #tpu.memory_space<vmem>>, %arg2: memref<128x128xbf16, #tpu.memory_space<vmem>>, %arg3: memref<9x128x128xbf16, #tpu.memory_space<vmem>>, %arg4: memref<1x128xf32, #tpu.memory_space<vmem>>, %arg5: memref<1x128xf32, #tpu.memory_space<vmem>>, %arg6: memref<1x384x128xbf16, #tpu.memory_space<vmem>>, %arg7: memref<440x128xbf16, #tpu.memory_space<vmem>>, %arg8: memref<384x128xf32, #tpu.memory_space<vmem>>) attributes {dimension_semantics = [#tpu.dimension_semantics<parallel>], iteration_bounds = array<i64: 2>, scalar_prefetch = 0 : i64, scratch_operands = 2 : i64, tpu.core_type = #tpu.core_type<tc>, window_params = [{transform_indices = @transform_0, window_bounds = array<i64: 1, 384, 128>}, {pipeline_mode = #tpu.pipeline_mode<synchronous>, transform_indices = @transform_1, window_bounds = array<i64: 128, 128>}, {pipeline_mode = #tpu.pipeline_mode<synchronous>, transform_indices = @transform_2, window_bounds = array<i64: 9, 128, 128>}, {pipeline_mode = #tpu.pipeline_mode<synchronous>, transform_indices = @transform_3, window_bounds = array<i64: 1, 128>}, {pipeline_mode = #tpu.pipeline_mode<synchronous>, transform_indices = @transform_4, window_bounds = array<i64: 1, 128>}, {transform_indices = @transform_5, window_bounds = array<i64: 1, 384, 128>}]} {
    %cst = arith.constant 0.000000e+00 : bf16
    %0 = vector.broadcast %cst : bf16 to vector<32x128xbf16>
    %c0 = arith.constant 0 : index
    %c0_0 = arith.constant 0 : index
    %1 = vector.load %arg7[%c0, %c0_0] : memref<440x128xbf16, #tpu.memory_space<vmem>>, vector<32x128xbf16>
    tpu.vector_store %arg7[%c0, %c0_0], %0 {strides = array<i32>} : memref<440x128xbf16, #tpu.memory_space<vmem>>, vector<32x128xbf16>,
    %cst_1 = arith.constant 0.000000e+00 : bf16
    %2 = vector.broadcast %cst_1 : bf16 to vector<32x128xbf16>
    %c408 = arith.constant 408 : index
    %c0_2 = arith.constant 0 : index
    %3 = vector.load %arg7[%c408, %c0_2] : memref<440x128xbf16, #tpu.memory_space<vmem>>, vector<32x128xbf16>
    tpu.vector_store %arg7[%c408, %c0_2], %2 {strides = array<i32>} : memref<440x128xbf16, #tpu.memory_space<vmem>>, vector<32x128xbf16>,
    %c0_3 = arith.constant 0 : index
    %c0_4 = arith.constant 0 : index
    %c0_5 = arith.constant 0 : index
    %4 = vector.load %arg1[%c0_3, %c0_4, %c0_5] : memref<1x384x128xbf16, #tpu.memory_space<vmem>>, vector<1x384x128xbf16>
    %5 = vector.shape_cast %4 : vector<1x384x128xbf16> to vector<384x128xbf16>
    %c0_6 = arith.constant 0 : index
    %c0_7 = arith.constant 0 : index
    %6 = vector.load %arg2[%c0_6, %c0_7] : memref<128x128xbf16, #tpu.memory_space<vmem>>, vector<128x128xbf16>
    %cst_8 = arith.constant dense<0.000000e+00> : vector<384x128xf32>
    %7 = tpu.matmul %5, %6, %cst_8 {dimension_numbers = #tpu.dot_dimension_numbers<[1], [0], [0], [1], [0, 0, 1, 1], [], []>} : vector<384x128xbf16>, vector<128x128xbf16>, vector<384x128xf32> -> vector<384x128xf32>
    %c0_9 = arith.constant 0 : index
    %c0_10 = arith.constant 0 : index
    %8 = vector.load %arg4[%c0_9, %c0_10] : memref<1x128xf32, #tpu.memory_space<vmem>>, vector<1x128xf32>
    %9 = vector.broadcast %8 : vector<1x128xf32> to vector<384x128xf32>
    %10 = arith.addf %7, %9 : vector<384x128xf32>
    %cst_11 = arith.constant 0.000000e+00 : f32
    %11 = vector.broadcast %cst_11 : f32 to vector<384x128xf32>
    %12 = arith.maximumf %10, %11 : vector<384x128xf32>
    %13 = tpu.iota {dimensions = array<i32: 0>} : vector<384x128xi32>
    %c24_i32 = arith.constant 24 : i32
    %c0_i32 = arith.constant 0 : i32
    %14 = arith.cmpi eq, %c24_i32, %c0_i32 : i32
    %c1_i32 = arith.constant 1 : i32
    %15 = arith.select %14, %c1_i32, %c24_i32 : i32
    %16 = vector.broadcast %15 : i32 to vector<384x128xi32>
    %17 = arith.remsi %13, %16 : vector<384x128xi32>
    %c0_i32_12 = arith.constant 0 : i32
    %18 = vector.broadcast %c0_i32_12 : i32 to vector<384x128xi32>
    %19 = arith.cmpi ne, %17, %18 : vector<384x128xi32>
    %c0_i32_13 = arith.constant 0 : i32
    %20 = vector.broadcast %c0_i32_13 : i32 to vector<384x128xi32>
    %21 = arith.cmpi slt, %17, %20 : vector<384x128xi32>
    %c0_i32_14 = arith.constant 0 : i32
    %22 = arith.cmpi slt, %15, %c0_i32_14 : i32
    %23 = vector.broadcast %22 : i1 to vector<384x128xi1>
    %24 = vector.broadcast %23 : vector<384x128xi1> to vector<384x128xi1>
    %25 = arith.xori %21, %24 : vector<384x128xi1>
    %26 = arith.andi %25, %19 : vector<384x128xi1>
    %27 = vector.broadcast %15 : i32 to vector<384x128xi32>
    %28 = arith.addi %17, %27 : vector<384x128xi32>
    %29 = arith.select %26, %28, %17 : vector<384x128xi1>, vector<384x128xi32>
    %c16_i32 = arith.constant 16 : i32
    %30 = vector.broadcast %c16_i32 : i32 to vector<384x128xi32>
    %31 = arith.cmpi slt, %29, %30 : vector<384x128xi32>
    %cst_15 = arith.constant 0.000000e+00 : f32
    %32 = vector.broadcast %cst_15 : f32 to vector<384x128xf32>
    %33 = arith.select %31, %12, %32 : vector<384x128xi1>, vector<384x128xf32>
    %34 = arith.truncf %33 : vector<384x128xf32> to vector<384x128xbf16>
    %c25 = arith.constant 25 : index
    %c0_16 = arith.constant 0 : index
    %35 = vector.load %arg7[%c25, %c0_16] : memref<440x128xbf16, #tpu.memory_space<vmem>>, vector<384x128xbf16>
    tpu.vector_store %arg7[%c25, %c0_16], %34 {strides = array<i32>} : memref<440x128xbf16, #tpu.memory_space<vmem>>, vector<384x128xbf16>,
    %c0_17 = arith.constant 0 : index
    %c0_18 = arith.constant 0 : index
    %36 = vector.load %arg5[%c0_17, %c0_18] : memref<1x128xf32, #tpu.memory_space<vmem>>, vector<1x128xf32>
    %c0_19 = arith.constant 0 : index
    %c0_20 = arith.constant 0 : index
    %37 = vector.load %arg7[%c0_19, %c0_20] : memref<440x128xbf16, #tpu.memory_space<vmem>>, vector<384x128xbf16>
    %c0_21 = arith.constant 0 : index
    %c0_22 = arith.constant 0 : index
    %c0_23 = arith.constant 0 : index
    %38 = vector.load %arg3[%c0_21, %c0_22, %c0_23] : memref<9x128x128xbf16, #tpu.memory_space<vmem>>, vector<1x128x128xbf16>
    %39 = vector.shape_cast %38 : vector<1x128x128xbf16> to vector<128x128xbf16>
    %cst_24 = arith.constant dense<0.000000e+00> : vector<384x128xf32>
    %40 = tpu.matmul %37, %39, %cst_24 {dimension_numbers = #tpu.dot_dimension_numbers<[1], [0], [0], [1], [0, 0, 1, 1], [], []>} : vector<384x128xbf16>, vector<128x128xbf16>, vector<384x128xf32> -> vector<384x128xf32>
    %41 = vector.broadcast %36 : vector<1x128xf32> to vector<384x128xf32>
    %42 = arith.addf %41, %40 : vector<384x128xf32>
    %c0_25 = arith.constant 0 : index
    %c0_26 = arith.constant 0 : index
    %43 = vector.load %arg8[%c0_25, %c0_26] : memref<384x128xf32, #tpu.memory_space<vmem>>, vector<384x128xf32>
    tpu.vector_store %arg8[%c0_25, %c0_26], %42 {strides = array<i32>} : memref<384x128xf32, #tpu.memory_space<vmem>>, vector<384x128xf32>,
    %c0_27 = arith.constant 0 : index
    %c0_28 = arith.constant 0 : index
    %44 = vector.load %arg8[%c0_27, %c0_28] : memref<384x128xf32, #tpu.memory_space<vmem>>, vector<384x128xf32>
    %c1 = arith.constant 1 : index
    %c0_29 = arith.constant 0 : index
    %45 = vector.load %arg7[%c1, %c0_29] : memref<440x128xbf16, #tpu.memory_space<vmem>>, vector<384x128xbf16>
    %c1_30 = arith.constant 1 : index
    %c0_31 = arith.constant 0 : index
    %c0_32 = arith.constant 0 : index
    %46 = vector.load %arg3[%c1_30, %c0_31, %c0_32] : memref<9x128x128xbf16, #tpu.memory_space<vmem>>, vector<1x128x128xbf16>
    %47 = vector.shape_cast %46 : vector<1x128x128xbf16> to vector<128x128xbf16>
    %cst_33 = arith.constant dense<0.000000e+00> : vector<384x128xf32>
    %48 = tpu.matmul %45, %47, %cst_33 {dimension_numbers = #tpu.dot_dimension_numbers<[1], [0], [0], [1], [0, 0, 1, 1], [], []>} : vector<384x128xbf16>, vector<128x128xbf16>, vector<384x128xf32> -> vector<384x128xf32>
    %49 = arith.addf %44, %48 : vector<384x128xf32>
    %c0_34 = arith.constant 0 : index
    %c0_35 = arith.constant 0 : index
    %50 = vector.load %arg8[%c0_34, %c0_35] : memref<384x128xf32, #tpu.memory_space<vmem>>, vector<384x128xf32>
    tpu.vector_store %arg8[%c0_34, %c0_35], %49 {strides = array<i32>} : memref<384x128xf32, #tpu.memory_space<vmem>>, vector<384x128xf32>,
    %c0_36 = arith.constant 0 : index
    %c0_37 = arith.constant 0 : index
    %51 = vector.load %arg8[%c0_36, %c0_37] : memref<384x128xf32, #tpu.memory_space<vmem>>, vector<384x128xf32>
    %c2 = arith.constant 2 : index
    %c0_38 = arith.constant 0 : index
    %52 = vector.load %arg7[%c2, %c0_38] : memref<440x128xbf16, #tpu.memory_space<vmem>>, vector<384x128xbf16>
    %c2_39 = arith.constant 2 : index
    %c0_40 = arith.constant 0 : index
    %c0_41 = arith.constant 0 : index
    %53 = vector.load %arg3[%c2_39, %c0_40, %c0_41] : memref<9x128x128xbf16, #tpu.memory_space<vmem>>, vector<1x128x128xbf16>
    %54 = vector.shape_cast %53 : vector<1x128x128xbf16> to vector<128x128xbf16>
    %cst_42 = arith.constant dense<0.000000e+00> : vector<384x128xf32>
    %55 = tpu.matmul %52, %54, %cst_42 {dimension_numbers = #tpu.dot_dimension_numbers<[1], [0], [0], [1], [0, 0, 1, 1], [], []>} : vector<384x128xbf16>, vector<128x128xbf16>, vector<384x128xf32> -> vector<384x128xf32>
    %56 = arith.addf %51, %55 : vector<384x128xf32>
    %c0_43 = arith.constant 0 : index
    %c0_44 = arith.constant 0 : index
    %57 = vector.load %arg8[%c0_43, %c0_44] : memref<384x128xf32, #tpu.memory_space<vmem>>, vector<384x128xf32>
    tpu.vector_store %arg8[%c0_43, %c0_44], %56 {strides = array<i32>} : memref<384x128xf32, #tpu.memory_space<vmem>>, vector<384x128xf32>,
    %c0_45 = arith.constant 0 : index
    %c0_46 = arith.constant 0 : index
    %58 = vector.load %arg8[%c0_45, %c0_46] : memref<384x128xf32, #tpu.memory_space<vmem>>, vector<384x128xf32>
    %c24 = arith.constant 24 : index
    %c0_47 = arith.constant 0 : index
    %59 = vector.load %arg7[%c24, %c0_47] : memref<440x128xbf16, #tpu.memory_space<vmem>>, vector<384x128xbf16>
    %c3 = arith.constant 3 : index
    %c0_48 = arith.constant 0 : index
    %c0_49 = arith.constant 0 : index
    %60 = vector.load %arg3[%c3, %c0_48, %c0_49] : memref<9x128x128xbf16, #tpu.memory_space<vmem>>, vector<1x128x128xbf16>
    %61 = vector.shape_cast %60 : vector<1x128x128xbf16> to vector<128x128xbf16>
    %cst_50 = arith.constant dense<0.000000e+00> : vector<384x128xf32>
    %62 = tpu.matmul %59, %61, %cst_50 {dimension_numbers = #tpu.dot_dimension_numbers<[1], [0], [0], [1], [0, 0, 1, 1], [], []>} : vector<384x128xbf16>, vector<128x128xbf16>, vector<384x128xf32> -> vector<384x128xf32>
    %63 = arith.addf %58, %62 : vector<384x128xf32>
    %c0_51 = arith.constant 0 : index
    %c0_52 = arith.constant 0 : index
    %64 = vector.load %arg8[%c0_51, %c0_52] : memref<384x128xf32, #tpu.memory_space<vmem>>, vector<384x128xf32>
    tpu.vector_store %arg8[%c0_51, %c0_52], %63 {strides = array<i32>} : memref<384x128xf32, #tpu.memory_space<vmem>>, vector<384x128xf32>,
    %c0_53 = arith.constant 0 : index
    %c0_54 = arith.constant 0 : index
    %65 = vector.load %arg8[%c0_53, %c0_54] : memref<384x128xf32, #tpu.memory_space<vmem>>, vector<384x128xf32>
    %c25_55 = arith.constant 25 : index
    %c0_56 = arith.constant 0 : index
    %66 = vector.load %arg7[%c25_55, %c0_56] : memref<440x128xbf16, #tpu.memory_space<vmem>>, vector<384x128xbf16>
    %c4 = arith.constant 4 : index
    %c0_57 = arith.constant 0 : index
    %c0_58 = arith.constant 0 : index
    %67 = vector.load %arg3[%c4, %c0_57, %c0_58] : memref<9x128x128xbf16, #tpu.memory_space<vmem>>, vector<1x128x128xbf16>
    %68 = vector.shape_cast %67 : vector<1x128x128xbf16> to vector<128x128xbf16>
    %cst_59 = arith.constant dense<0.000000e+00> : vector<384x128xf32>
    %69 = tpu.matmul %66, %68, %cst_59 {dimension_numbers = #tpu.dot_dimension_numbers<[1], [0], [0], [1], [0, 0, 1, 1], [], []>} : vector<384x128xbf16>, vector<128x128xbf16>, vector<384x128xf32> -> vector<384x128xf32>
    %70 = arith.addf %65, %69 : vector<384x128xf32>
    %c0_60 = arith.constant 0 : index
    %c0_61 = arith.constant 0 : index
    %71 = vector.load %arg8[%c0_60, %c0_61] : memref<384x128xf32, #tpu.memory_space<vmem>>, vector<384x128xf32>
    tpu.vector_store %arg8[%c0_60, %c0_61], %70 {strides = array<i32>} : memref<384x128xf32, #tpu.memory_space<vmem>>, vector<384x128xf32>,
    %c0_62 = arith.constant 0 : index
    %c0_63 = arith.constant 0 : index
    %72 = vector.load %arg8[%c0_62, %c0_63] : memref<384x128xf32, #tpu.memory_space<vmem>>, vector<384x128xf32>
    %c26 = arith.constant 26 : index
    %c0_64 = arith.constant 0 : index
    %73 = vector.load %arg7[%c26, %c0_64] : memref<440x128xbf16, #tpu.memory_space<vmem>>, vector<384x128xbf16>
    %c5 = arith.constant 5 : index
    %c0_65 = arith.constant 0 : index
    %c0_66 = arith.constant 0 : index
    %74 = vector.load %arg3[%c5, %c0_65, %c0_66] : memref<9x128x128xbf16, #tpu.memory_space<vmem>>, vector<1x128x128xbf16>
    %75 = vector.shape_cast %74 : vector<1x128x128xbf16> to vector<128x128xbf16>
    %cst_67 = arith.constant dense<0.000000e+00> : vector<384x128xf32>
    %76 = tpu.matmul %73, %75, %cst_67 {dimension_numbers = #tpu.dot_dimension_numbers<[1], [0], [0], [1], [0, 0, 1, 1], [], []>} : vector<384x128xbf16>, vector<128x128xbf16>, vector<384x128xf32> -> vector<384x128xf32>
    %77 = arith.addf %72, %76 : vector<384x128xf32>
    %c0_68 = arith.constant 0 : index
    %c0_69 = arith.constant 0 : index
    %78 = vector.load %arg8[%c0_68, %c0_69] : memref<384x128xf32, #tpu.memory_space<vmem>>, vector<384x128xf32>
    tpu.vector_store %arg8[%c0_68, %c0_69], %77 {strides = array<i32>} : memref<384x128xf32, #tpu.memory_space<vmem>>, vector<384x128xf32>,
    %c0_70 = arith.constant 0 : index
    %c0_71 = arith.constant 0 : index
    %79 = vector.load %arg8[%c0_70, %c0_71] : memref<384x128xf32, #tpu.memory_space<vmem>>, vector<384x128xf32>
    %c48 = arith.constant 48 : index
    %c0_72 = arith.constant 0 : index
    %80 = vector.load %arg7[%c48, %c0_72] : memref<440x128xbf16, #tpu.memory_space<vmem>>, vector<384x128xbf16>
    %c6 = arith.constant 6 : index
    %c0_73 = arith.constant 0 : index
    %c0_74 = arith.constant 0 : index
    %81 = vector.load %arg3[%c6, %c0_73, %c0_74] : memref<9x128x128xbf16, #tpu.memory_space<vmem>>, vector<1x128x128xbf16>
    %82 = vector.shape_cast %81 : vector<1x128x128xbf16> to vector<128x128xbf16>
    %cst_75 = arith.constant dense<0.000000e+00> : vector<384x128xf32>
    %83 = tpu.matmul %80, %82, %cst_75 {dimension_numbers = #tpu.dot_dimension_numbers<[1], [0], [0], [1], [0, 0, 1, 1], [], []>} : vector<384x128xbf16>, vector<128x128xbf16>, vector<384x128xf32> -> vector<384x128xf32>
    %84 = arith.addf %79, %83 : vector<384x128xf32>
    %c0_76 = arith.constant 0 : index
    %c0_77 = arith.constant 0 : index
    %85 = vector.load %arg8[%c0_76, %c0_77] : memref<384x128xf32, #tpu.memory_space<vmem>>, vector<384x128xf32>
    tpu.vector_store %arg8[%c0_76, %c0_77], %84 {strides = array<i32>} : memref<384x128xf32, #tpu.memory_space<vmem>>, vector<384x128xf32>,
    %c0_78 = arith.constant 0 : index
    %c0_79 = arith.constant 0 : index
    %86 = vector.load %arg8[%c0_78, %c0_79] : memref<384x128xf32, #tpu.memory_space<vmem>>, vector<384x128xf32>
    %c49 = arith.constant 49 : index
    %c0_80 = arith.constant 0 : index
    %87 = vector.load %arg7[%c49, %c0_80] : memref<440x128xbf16, #tpu.memory_space<vmem>>, vector<384x128xbf16>
    %c7 = arith.constant 7 : index
    %c0_81 = arith.constant 0 : index
    %c0_82 = arith.constant 0 : index
    %88 = vector.load %arg3[%c7, %c0_81, %c0_82] : memref<9x128x128xbf16, #tpu.memory_space<vmem>>, vector<1x128x128xbf16>
    %89 = vector.shape_cast %88 : vector<1x128x128xbf16> to vector<128x128xbf16>
    %cst_83 = arith.constant dense<0.000000e+00> : vector<384x128xf32>
    %90 = tpu.matmul %87, %89, %cst_83 {dimension_numbers = #tpu.dot_dimension_numbers<[1], [0], [0], [1], [0, 0, 1, 1], [], []>} : vector<384x128xbf16>, vector<128x128xbf16>, vector<384x128xf32> -> vector<384x128xf32>
    %91 = arith.addf %86, %90 : vector<384x128xf32>
    %c0_84 = arith.constant 0 : index
    %c0_85 = arith.constant 0 : index
    %92 = vector.load %arg8[%c0_84, %c0_85] : memref<384x128xf32, #tpu.memory_space<vmem>>, vector<384x128xf32>
    tpu.vector_store %arg8[%c0_84, %c0_85], %91 {strides = array<i32>} : memref<384x128xf32, #tpu.memory_space<vmem>>, vector<384x128xf32>,
    %c0_86 = arith.constant 0 : index
    %c0_87 = arith.constant 0 : index
    %93 = vector.load %arg8[%c0_86, %c0_87] : memref<384x128xf32, #tpu.memory_space<vmem>>, vector<384x128xf32>
    %c50 = arith.constant 50 : index
    %c0_88 = arith.constant 0 : index
    %94 = vector.load %arg7[%c50, %c0_88] : memref<440x128xbf16, #tpu.memory_space<vmem>>, vector<384x128xbf16>
    %c8 = arith.constant 8 : index
    %c0_89 = arith.constant 0 : index
    %c0_90 = arith.constant 0 : index
    %95 = vector.load %arg3[%c8, %c0_89, %c0_90] : memref<9x128x128xbf16, #tpu.memory_space<vmem>>, vector<1x128x128xbf16>
    %96 = vector.shape_cast %95 : vector<1x128x128xbf16> to vector<128x128xbf16>
    %cst_91 = arith.constant dense<0.000000e+00> : vector<384x128xf32>
    %97 = tpu.matmul %94, %96, %cst_91 {dimension_numbers = #tpu.dot_dimension_numbers<[1], [0], [0], [1], [0, 0, 1, 1], [], []>} : vector<384x128xbf16>, vector<128x128xbf16>, vector<384x128xf32> -> vector<384x128xf32>
    %98 = arith.addf %93, %97 : vector<384x128xf32>
    %c0_92 = arith.constant 0 : index
    %c0_93 = arith.constant 0 : index
    %99 = vector.load %arg8[%c0_92, %c0_93] : memref<384x128xf32, #tpu.memory_space<vmem>>, vector<384x128xf32>
    tpu.vector_store %arg8[%c0_92, %c0_93], %98 {strides = array<i32>} : memref<384x128xf32, #tpu.memory_space<vmem>>, vector<384x128xf32>,
    %100 = tpu.iota {dimensions = array<i32: 1>} : vector<384x128xi32>
    %c4_i32 = arith.constant 4 : i32
    %101 = vector.broadcast %c4_i32 : i32 to vector<384x128xi32>
    %102 = arith.cmpi slt, %100, %101 : vector<384x128xi32>
    %c0_94 = arith.constant 0 : index
    %c0_95 = arith.constant 0 : index
    %c0_96 = arith.constant 0 : index
    %103 = vector.load %arg1[%c0_94, %c0_95, %c0_96] : memref<1x384x128xbf16, #tpu.memory_space<vmem>>, vector<1x384x128xbf16>
    %104 = vector.shape_cast %103 : vector<1x384x128xbf16> to vector<384x128xbf16>
    %105 = arith.extf %104 : vector<384x128xbf16> to vector<384x128xf32>
    %cst_97 = arith.constant 0.000000e+00 : f32
    %106 = vector.broadcast %cst_97 : f32 to vector<384x128xf32>
    %107 = arith.select %102, %105, %106 : vector<384x128xi1>, vector<384x128xf32>
    %c0_98 = arith.constant 0 : index
    %c0_99 = arith.constant 0 : index
    %108 = vector.load %arg8[%c0_98, %c0_99] : memref<384x128xf32, #tpu.memory_space<vmem>>, vector<384x128xf32>
    %cst_100 = arith.constant 0.000000e+00 : f32
    %109 = vector.broadcast %cst_100 : f32 to vector<384x128xf32>
    %110 = arith.maximumf %108, %109 : vector<384x128xf32>
    %111 = arith.addf %110, %107 : vector<384x128xf32>
    %112 = arith.truncf %111 : vector<384x128xf32> to vector<384x128xbf16>
    %c0_101 = arith.constant 0 : index
    %c0_102 = arith.constant 0 : index
    %c0_103 = arith.constant 0 : index
    %113 = vector.load %arg6[%c0_101, %c0_102, %c0_103] : memref<1x384x128xbf16, #tpu.memory_space<vmem>>, vector<1x384x128xbf16>
    %114 = vector.shape_cast %113 : vector<1x384x128xbf16> to vector<384x128xbf16>
    %115 = vector.shape_cast %112 : vector<384x128xbf16> to vector<1x384x128xbf16>
    tpu.vector_store %arg6[%c0_101, %c0_102, %c0_103], %115 {strides = array<i32>} : memref<1x384x128xbf16, #tpu.memory_space<vmem>>, vector<1x384x128xbf16>,
    return
  }
  func.func @transform_0(%arg0: i32) -> (i32, i32, i32) {
    %c0_i32 = arith.constant 0 : i32
    %c0_i32_0 = arith.constant 0 : i32
    %c0_i32_1 = arith.constant 0 : i32
    return %arg0, %c0_i32, %c0_i32_0 : i32, i32, i32
  }
  func.func @transform_1(%arg0: i32) -> (i32, i32) {
    %c0_i32 = arith.constant 0 : i32
    %c0_i32_0 = arith.constant 0 : i32
    %c0_i32_1 = arith.constant 0 : i32
    return %c0_i32, %c0_i32_0 : i32, i32
  }
  func.func @transform_2(%arg0: i32) -> (i32, i32, i32) {
    %c0_i32 = arith.constant 0 : i32
    %c0_i32_0 = arith.constant 0 : i32
    %c0_i32_1 = arith.constant 0 : i32
    %c0_i32_2 = arith.constant 0 : i32
    return %c0_i32, %c0_i32_0, %c0_i32_1 : i32, i32, i32
  }
  func.func @transform_3(%arg0: i32) -> (i32, i32) {
    %c0_i32 = arith.constant 0 : i32
    %c0_i32_0 = arith.constant 0 : i32
    %c0_i32_1 = arith.constant 0 : i32
    return %c0_i32, %c0_i32_0 : i32, i32
  }
  func.func @transform_4(%arg0: i32) -> (i32, i32) {
    %c0_i32 = arith.constant 0 : i32
    %c0_i32_0 = arith.constant 0 : i32
    %c0_i32_1 = arith.constant 0 : i32
    return %c0_i32, %c0_i32_0 : i32, i32
  }
  func.func @transform_5(%arg0: i32) -> (i32, i32, i32) {
    %c0_i32 = arith.constant 0 : i32
    %c0_i32_0 = arith.constant 0 : i32
    %c0_i32_1 = arith.constant 0 : i32
    return %arg0, %c0_i32, %c0_i32_0 : i32, i32, i32
  }
}

</mosaic_0001>

<bundles_post_ra>
// kernel: residual_block_forward.1
= control target key start
LH: loop header
LB: loop body
LE: loop exit
PB: predicated region body
PF: predicated region fallthrough
CT: control target
= control target key end

     0   :  { %s12092_s18 = smov 0   ;;  %s15002_s0 = inlined_call_operand.vmem [shape: bf16[2,384,128], index: 0, kind: input, shape index: {}]   ;;  %s15003_s1 = inlined_call_operand.vmem [shape: bf16[128,128], index: 1, kind: input, shape index: {}]   ;;  %s15004_s2 = inlined_call_operand.vmem [shape: bf16[9,128,128], index: 2, kind: input, shape index: {}]   ;;  %s15005_s3 = inlined_call_operand.vmem [shape: f32[1,128], index: 3, kind: input, shape index: {}]   ;;  %s15006_s4 = inlined_call_operand.vmem [shape: f32[1,128], index: 4, kind: input, shape index: {}]   ;;  %s15007_s5 = inlined_call_operand.vmem [shape: bf16[2,384,128], index: 5, kind: output, shape index: {}]  }
   0x1 LB: > { %s9307_s19 = sadd.s32 4294967295, %s12059_s18   ;;  %p9311_p0 = scmp.ge.s32.totalorder %s12059_s18, 1  ;;  %s12059_s18 = sphi %s12092_s18, %s15_s18  }
   0x2   : > { %p187_p1 = scmp.lt.s32.totalorder %s12059_s18, 3 }
   0x4   : > { %p188_p2 = pnand %p9311_p0, %p187_p1 }
   0x6   : > { %191 = sbr.rel (%p188_p2) target bundleno = 1079 (0x437), region = 40 }
   0xd   : > { %v11724_v0 = vld [vmem:[%s15003_s1] sm:$0xff]   ;;  %p215_p3 = scmp.lt.s32.totalorder %s9307_s19, 1  ;;  %v11725_v1 = vld [vmem:[%s15003_s1 + $0x8] sm:$0xff]   ;;  %v11726_v2 = vld [vmem:[%s15003_s1 + $0x10] sm:$0xff]   ;;  %v15008_v34 = vlaneseq  ;;  %v12061_v39 = vmov 0  }
   0xe   : > { %10546 = vmatprep.subr.bf16.mxu0 %v11724_v0  ;;  %v11727_v3 = vld [vmem:[%s15003_s1 + $0x18] sm:$0xff]   ;;  %v11728_v5 = vld [vmem:[%s15003_s1 + $0x20] sm:$0xff]   ;;  %v11729_v6 = vld [vmem:[%s15003_s1 + $0x28] sm:$0xff]   ;;  %229 = vst [vmem:[#allocation2 + $0xc] sm:$0xf] %v12061_v39 }
   0xf   : > { %s15621_s19 = smov (!%p215_p3, %s9307_s19), 1  ;;  %10547 = vmatpush3.bf16.msra.mxu0 %v11724_v0  ;;  %v11730_v7 = vld [vmem:[%s15003_s1 + $0x30] sm:$0xff]   ;;  %v11731_v8 = vld [vmem:[%s15003_s1 + $0x38] sm:$0xff]   ;;  %v11756_v11 = vld [vmem:[%s15004_s2] sm:$0xff]   ;;  %v12171_v37 = vshrl.u32 %v15008_v34, 7 }
  0x10   : > { %10548 = vmatprep.subr.bf16.mxu0 %v11725_v1  ;;  %s11618_s26 = smul.u32 192, %s15621_s19  ;;  %v11757_v12 = vld [vmem:[%s15004_s2 + $0x8] sm:$0xff]   ;;  %v11758_v33 = vld [vmem:[%s15004_s2 + $0x10] sm:$0xff]   ;;  %v11759_v36 = vld [vmem:[%s15004_s2 + $0x18] sm:$0xff]   ;;  %226 = vst [vmem:[#allocation2] sm:$0xf] %v12061_v39 }
  0x11   : > { %15132 = vst [vmem:[#allocation4_spill] sm:$0xff] %v12171_v37  ;;  %v11760_v38 = vld [vmem:[%s15004_s2 + $0x100] sm:$0xff]   ;;  %227 = vst [vmem:[#allocation2 + $0x4] sm:$0xf] %v12061_v39  ;;  %v773_v40 = vadd.s32 16, %v12171_v37  ;;  %v12188_v46 = vadd.s32 24, %v12171_v37 }
  0x12   : > { %s12117_s29 = scalar_lea.vmem %s15002_s0, %s11618_s26  ;;  %228 = vst [vmem:[#allocation2 + $0x8] sm:$0xf] %v12061_v39  ;;  %230 = vst [vmem:[#allocation2 + $0xcc] sm:$0xf] %v12061_v39  ;;  %10866 = vmatprep.subr.bf16.mxu1 %v11760_v38  ;;  %v11761_v43 = vld [vmem:[%s15004_s2 + $0x20] sm:$0xff]   ;;  %v11762_v47 = vld [vmem:[%s15004_s2 + $0x108] sm:$0xff]   ;;  %s14781_s27 = scalar_lea.vmem %s15007_s5, %s11618_s26 }
  0x13   : > { %10549 = vmatpush3.bf16.msra.mxu0 %v11725_v1  ;;  %v11732_v4 = vld [vmem:[%s12117_s29] sm:$0xff]   ;;  %v11733_v9 = vld [vmem:[%s12117_s29 + $0x8] sm:$0xff]   ;;  %v11734_v10 = vld [vmem:[%s12117_s29 + $0x10] sm:$0xff]   ;;  %231 = vst [vmem:[#allocation2 + $0xd0] sm:$0xf] %v12061_v39  ;;  %10867 = vmatpush3.bf16.msra.mxu1 %v11760_v38  ;;  %v12194_v48 = vadd.s32 8, %v12171_v37 }
  0x14   : > { %10550 = vmatprep.subr.bf16.mxu0 %v11726_v2  ;;  %10562 = vmatprep.mubr.bf16.mxu0 %v11732_v4  ;;  %v11735_v13 = vld [vmem:[%s12117_s29 + $0x18] sm:$0xff]   ;;  %v11736_v14 = vld [vmem:[%s12117_s29 + $0x20] sm:$0xff]   ;;  %v11737_v15 = vld [vmem:[%s12117_s29 + $0x28] sm:$0xff]   ;;  %232 = vst [vmem:[#allocation2 + $0xd4] sm:$0xf] %v12061_v39  ;;  %v12204_v52 = vadd.s32 48, %v12171_v37 }
  0x15   : > { %v11738_v16 = vld [vmem:[%s12117_s29 + $0x30] sm:$0xff]   ;;  %v11739_v17 = vld [vmem:[%s12117_s29 + $0x38] sm:$0xff]   ;;  %v11740_v18 = vld [vmem:[%s12117_s29 + $0x40] sm:$0xff]   ;;  %233 = vst [vmem:[#allocation2 + $0xd8] sm:$0xf] %v12061_v39  ;;  %10868 = vmatprep.subr.bf16.mxu1 %v11762_v47  ;;  %v12215_v57 = vadd.s32 32, %v12171_v37 }
  0x16   : > { %v11741_v19 = vld [vmem:[%s12117_s29 + $0x48] sm:$0xff]   ;;  %v11742_v20 = vld [vmem:[%s12117_s29 + $0x50] sm:$0xff]   ;;  %v11743_v21 = vld [vmem:[%s12117_s29 + $0x58] sm:$0xff]   ;;  %v12177_v41 = vmul.u32.u64.low 2863311531, %v773_v40  ;;  %v12178_v42 = vmul.u32.u64.high 2863311531, %v773_v40, %v12177_v41  ;;  %v12226_v63 = vadd.s32 56, %v12171_v37 }
  0x17   : > { %10551 = vmatpush3.bf16.msra.mxu0 %v11726_v2  ;;  %v11744_v22 = vld [vmem:[%s12117_s29 + $0x60] sm:$0xff]   ;;  %v11745_v23 = vld [vmem:[%s12117_s29 + $0x68] sm:$0xff]   ;;  %v11746_v24 = vld [vmem:[%s12117_s29 + $0x70] sm:$0xff]   ;;  %v12184_v44 = vmul.u32.u64.low 2863311531, %v12171_v37  ;;  %v12185_v45 = vmul.u32.u64.high 2863311531, %v12171_v37, %v12184_v44  ;;  %10869 = vmatpush3.bf16.msra.mxu1 %v11762_v47  ;;  %v12239_v4 = vadd.s32 40, %v12171_v37 }
  0x18   : > { %10552 = vmatprep.subr.bf16.mxu0 %v11727_v3  ;;  %v11747_v25 = vld [vmem:[%s12117_s29 + $0x78] sm:$0xff]   ;;  %v11748_v26 = vld [vmem:[%s12117_s29 + $0x80] sm:$0xff]   ;;  %v11749_v27 = vld [vmem:[%s12117_s29 + $0x88] sm:$0xff]   ;;  %v12200_v50 = vmul.u32.u64.low 2863311531, %v12188_v46  ;;  %v12201_v51 = vmul.u32.u64.high 2863311531, %v12188_v46, %v12200_v50  ;;  %v847_v53 = vshrl.u32 %v12178_v42, 4 }
  0x19   : > { %v11750_v28 = vld [vmem:[%s12117_s29 + $0x90] sm:$0xff]   ;;  %v11751_v29 = vld [vmem:[%s12117_s29 + $0x98] sm:$0xff]   ;;  %v11752_v30 = vld [vmem:[%s12117_s29 + $0xa0] sm:$0xff]   ;;  %v12211_v55 = vmul.u32.u64.low 2863311531, %v12194_v48  ;;  %v12212_v56 = vmul.u32.u64.high 2863311531, %v12194_v48, %v12211_v55  ;;  %v825_v59 = vshrl.u32 %v12185_v45, 4 }
  0x1a   : > { %v11753_v31 = vld [vmem:[%s12117_s29 + $0xa8] sm:$0xff]   ;;  %v11754_v32 = vld [vmem:[%s12117_s29 + $0xb0] sm:$0xff]   ;;  %v11755_v35 = vld [vmem:[%s12117_s29 + $0xb8] sm:$0xff]   ;;  %v12222_v60 = vmul.u32.u64.low 2863311531, %v12204_v52  ;;  %v12223_v61 = vmul.u32.u64.high 2863311531, %v12204_v52, %v12222_v60  ;;  %v848_v62 = vmul.u32 24, %v847_v53 }
  0x1b   : > { %10553 = vmatpush3.bf16.msra.mxu0 %v11727_v3  ;;  %v11763_v49 = vld [vmem:[%s15004_s2 + $0x28] sm:$0xff]   ;;  %v11764_v54 = vld [vmem:[%s15004_s2 + $0x110] sm:$0xff]   ;;  %v11766_v0 = vld [vmem:[%s15004_s2 + $0x118] sm:$0xff]   ;;  %v12232_v1 = vmul.u32.u64.low 2863311531, %v12215_v57  ;;  %v12233_v2 = vmul.u32.u64.high 2863311531, %v12215_v57, %v12232_v1  ;;  %v12326_v45 = vadd.s32 112, %v12171_v37 }
  0x1c   : > { %10554 = vmatprep.subr.bf16.mxu0 %v11728_v5  ;;  %v11765_v58 = vld [vmem:[%s15004_s2 + $0x30] sm:$0xff]   ;;  %10870 = vmatprep.subr.bf16.mxu1 %v11764_v54  ;;  %v11767_v3 = vld [vmem:[%s15004_s2 + $0x38] sm:$0xff]  }
  0x1d   : > { %10871 = vmatpush3.bf16.msra.mxu1 %v11764_v54 }
  0x1e   : > { %10872 = vmatprep.subr.bf16.mxu1 %v11766_v0 }
  0x1f   : > { %10555 = vmatpush3.bf16.msra.mxu0 %v11728_v5  ;;  %v826_v5 = vmul.u32 24, %v825_v59  ;;  %v12357_v59 = vadd.s32 120, %v12171_v37 }
  0x20   : > { %10556 = vmatprep.subr.bf16.mxu0 %v11729_v6 }
  0x21   : > { %10873 = vmatpush3.bf16.msra.mxu1 %v11766_v0 }
  0x23   : > { %10557 = vmatpush3.bf16.msra.mxu0 %v11729_v6  ;;  %v858_v6 = vshrl.u32 %v12201_v51, 4 }
  0x24   : > { %10558 = vmatprep.subr.bf16.mxu0 %v11730_v7 }
  0x27   : > { %10559 = vmatpush3.bf16.msra.mxu0 %v11730_v7  ;;  %v12242_v7 = vsub.s32 %v773_v40, %v848_v62  ;;  %v11773_v40 = vld [vmem:[%s15004_s2 + $0x130] sm:$0xff]  }
  0x28   : > { %10560 = vmatprep.subr.bf16.mxu0 %v11731_v8 }
  0x29   : > { %vm1349_vm0 = vcmp.ne.s32.totalorder %v12242_v7, 0  ;;  %vm1397_vm1 = vcmp.lt.s32.totalorder %v12242_v7, 0 }
  0x2a   : > { %vm12286_vm2 = vmand %vm1397_vm1, %vm1349_vm0 }
  0x2b   : > { %10561 = vmatpush3.bf16.msra.mxu0 %v11731_v8 }
  0x2c   : > { %10610 = vmatprep.subr.bf16.mxu0 %v11756_v11 }
  0x2e   : > { %10563 = vmatmul.mubr.bf16.vlgmr.msra.gmra.mrb[0].mxu0 %v11733_v9  ;;  %v12245_v8 = vmul.u32.u64.low 2863311531, %v12226_v63  ;;  %v12246_v9 = vmul.u32.u64.high 2863311531, %v12226_v63, %v12245_v8 }
  0x2f   : > { %10566 = vmatprep.mubr.bf16.mxu0 %v11734_v10  ;;  %10611 = vmatpush3.bf16.msra.mxu0 %v11756_v11  ;;  %v12249_v10 = vadd.s32 80, %v12171_v37  ;;  %v11768_v11 = vld [vmem:[%s15004_s2 + $0x120] sm:$0xff]  }
  0x30   : > { %10612 = vmatprep.subr.bf16.mxu0 %v11757_v12  ;;  %10874 = vmatprep.subr.bf16.mxu1 %v11768_v11 }
  0x31   : > { %10875 = vmatpush3.bf16.msra.mxu1 %v11768_v11 }
  0x33   : > { %10613 = vmatpush3.bf16.msra.mxu0 %v11757_v12  ;;  %v836_v12 = vshrl.u32 %v12212_v56, 4  ;;  %v12349_v56 = vadd.s32 96, %v12171_v37 }
  0x34   : > { %10614 = vmatprep.subr.bf16.mxu0 %v11758_v33 }
  0x36   : > { %10567 = vmatmul.mubr.bf16.gmra.mrb[4].mxu0 %v11735_v13  ;;  %v12256_v13 = vadd.s32 64, %v12171_v37 }
  0x37   : > { %10570 = vmatprep.mubr.bf16.mxu0 %v11736_v14  ;;  %10615 = vmatpush3.bf16.msra.mxu0 %v11758_v33  ;;  %v11769_v14 = vld [vmem:[#allocation2] sm:$0xff]  }
  0x38   : > { %10616 = vmatprep.subr.bf16.mxu0 %v11759_v36 }
  0x3b   : > { %10617 = vmatpush3.bf16.msra.mxu0 %v11759_v36 }
  0x3c   : > { %10618 = vmatprep.subr.bf16.mxu0 %v11761_v43 }
  0x3e   : > { %10571 = vmatmul.mubr.bf16.gmra.mrb[8].mxu0 %v11737_v15 }
  0x3f   : > { %10574 = vmatprep.mubr.bf16.mxu0 %v11738_v16  ;;  %10619 = vmatpush3.bf16.msra.mxu0 %v11761_v43  ;;  %v12259_v15 = vmul.u32.u64.low 2863311531, %v12239_v4  ;;  %v12260_v16 = vmul.u32.u64.high 2863311531, %v12239_v4, %v12259_v15 }
  0x40   : > { %10620 = vmatprep.subr.bf16.mxu0 %v11763_v49 }
  0x41   : > { %v880_v39 = vshrl.u32 %v12260_v16, 4 }
  0x43   : > { %10621 = vmatpush3.bf16.msra.mxu0 %v11763_v49  ;;  %v881_v55 = vmul.u32 24, %v880_v39  ;;  %v15149_v39 = vmov 0 }
  0x44   : > { %10622 = vmatprep.subr.bf16.mxu0 %v11765_v58 }
  0x46   : > { %10575 = vmatmul.mubr.bf16.gmra.mrb[12].mxu0 %v11739_v17  ;;  %v859_v17 = vmul.u32 24, %v858_v6  ;;  %v12379_v6 = vadd.s32 104, %v12171_v37 }
  0x47   : > { %10578 = vmatprep.mubr.bf16.mxu0 %v11740_v18  ;;  %10623 = vmatpush3.bf16.msra.mxu0 %v11765_v58  ;;  %v891_v18 = vshrl.u32 %v12223_v61, 4 }
  0x48   : > { %10624 = vmatprep.subr.bf16.mxu0 %v11767_v3 }
  0x4b   : > { %10625 = vmatpush3.bf16.msra.mxu0 %v11767_v3 }
  0x4e   : > { %10579 = vmatmul.mubr.bf16.gmra.mrb[16].mxu0 %v11741_v19  ;;  %v12265_v19 = vsub.s32 %v12171_v37, %v826_v5  ;;  %v12375_v3 = vmul.u32.u64.low 2863311531, %v12349_v56  ;;  %v12376_v5 = vmul.u32.u64.high 2863311531, %v12349_v56, %v12375_v3 }
  0x4f   : > { %10582 = vmatprep.mubr.bf16.mxu0 %v11742_v20  ;;  %v15160_v3 = vmov 0 }
  0x50   : > { %vm1347_vm3 = vcmp.ne.s32.totalorder %v12265_v19, 0  ;;  %vm1395_vm4 = vcmp.lt.s32.totalorder %v12265_v19, 0  ;;  %v12300_v36 = vadd.s32 24, %v12265_v19 }
  0x51   : > { %vm12315_vm5 = vmand %vm1395_vm4, %vm1347_vm3 }
  0x56   : > { %10583 = vmatmul.mubr.bf16.gmra.mrb[20].mxu0 %v11743_v21  ;;  %v12268_v20 = vmul.u32.u64.low 2863311531, %v12249_v10  ;;  %v12269_v21 = vmul.u32.u64.high 2863311531, %v12249_v10, %v12268_v20 }
  0x57   : > { %10586 = vmatprep.mubr.bf16.mxu0 %v11744_v22  ;;  %v869_v22 = vshrl.u32 %v12233_v2, 4  ;;  %v12372_v2 = vsub.s32 %v12239_v4, %v881_v55  ;;  %v15142_v20 = vmov 0  ;;  %v12627_v55 = vadd.s32 208, %v12171_v37 }
  0x58   : > { %v935_v47 = vshrl.u32 %v12269_v21, 4 }
  0x59   : > { %v870_v33 = vmul.u32 24, %v869_v22  ;;  %15138 = vst [vmem:[#allocation6_spill] sm:$0xff] %v12372_v2  ;;  %vm1352_vm0 = vcmp.ne.s32.totalorder %v12372_v2, 0  ;;  %vm1400_vm3 = vcmp.lt.s32.totalorder %v12372_v2, 0  ;;  %v12427_v22 = vadd.s32 152, %v12171_v37 }
  0x5a   : > { %v936_v62 = vmul.u32 24, %v935_v47 }
  0x5b   : > { %v12336_v50 = vsub.s32 %v12215_v57, %v870_v33  ;;  %v12353_v57 = vmul.u32.u64.low 2863311531, %v12326_v45  ;;  %v12354_v58 = vmul.u32.u64.high 2863311531, %v12326_v45, %v12353_v57  ;;  %v12453_v33 = vadd.s32 136, %v12171_v37 }
  0x5c   : > { %v12391_v4 = vsub.s32 %v12249_v10, %v936_v62 }
  0x5d   : > { %vm1351_vm12 = vcmp.ne.s32.totalorder %v12336_v50, 0  ;;  %vm1399_vm13 = vcmp.lt.s32.totalorder %v12336_v50, 0  ;;  %v979_v21 = vshrl.u32 %v12354_v58, 4  ;;  %v15154_v58 = vmov 0 }
  0x5e   : > { %10587 = vmatmul.mubr.bf16.gmra.mrb[24].mxu0 %v11745_v23  ;;  %15139 = vst [vmem:[#allocation7_spill] sm:$0xff] %v12391_v4  ;;  %v12499_v62 = vadd.s32 24, %v12391_v4 }
  0x5f   : > { %10590 = vmatprep.mubr.bf16.mxu0 %v11746_v24  ;;  %v12274_v23 = vmul.u32.u64.low 2863311531, %v12256_v13  ;;  %v12275_v24 = vmul.u32.u64.high 2863311531, %v12256_v13, %v12274_v23 }
  0x60   : > { %v15145_v23 = vmov 0  ;;  %15157 = vst [vmem:[#allocation13_spill] sm:$0xff] %v12499_v62 }
  0x61   : > { %v913_v51 = vshrl.u32 %v12275_v24, 4 }
  0x63   : > { %v914_v1 = vmul.u32 24, %v913_v51 }
  0x65   : > { %v12402_v15 = vsub.s32 %v12256_v13, %v914_v1  ;;  %v12423_v13 = vadd.s32 24, %v12372_v2 }
  0x66   : > { %10591 = vmatmul.mubr.bf16.gmra.mrb[28].mxu0 %v11747_v25  ;;  %v837_v25 = vmul.u32 24, %v836_v12  ;;  %v12395_v12 = vadd.s32 144, %v12171_v37 }
  0x67   : > { %10594 = vmatprep.mubr.bf16.mxu0 %v11748_v26  ;;  %v11772_v26 = vld [vmem:[%s15004_s2 + $0x128] sm:$0xff]   ;;  %15141 = vst [vmem:[#allocation9_spill] sm:$0xff] %v12402_v15  ;;  %15144 = vst [vmem:[#allocation10_spill] sm:$0xff] %v12423_v13 }
  0x68   : > { %10876 = vmatprep.subr.bf16.mxu1 %v11772_v26  ;;  %v12303_v38 = vsub.s32 %v12194_v48, %v837_v25 }
  0x69   : > { %10877 = vmatpush3.bf16.msra.mxu1 %v11772_v26  ;;  %v12439_v25 = vmul.u32.u64.low 2863311531, %v12395_v12  ;;  %v12440_v26 = vmul.u32.u64.high 2863311531, %v12395_v12, %v12439_v25 }
  0x6a   : > { %10878 = vmatprep.subr.bf16.mxu1 %v11773_v40  ;;  %vm1348_vm8 = vcmp.ne.s32.totalorder %v12303_v38, 0  ;;  %vm1396_vm9 = vcmp.lt.s32.totalorder %v12303_v38, 0  ;;  %v12360_v60 = vadd.s32 24, %v12303_v38 }
  0x6b   : > { %vm12433_vm4 = vmand %vm1396_vm9, %vm1348_vm8  ;;  %vm1405_vm8 = vcmp.lt.s32.totalorder %v12391_v4, 0  ;;  %vm1355_vm9 = vcmp.ne.s32.totalorder %v12402_v15, 0 }
  0x6c   : > { %v15146_v23 = vsel %vm12433_vm4, 4294967295, %v15145_v23 }
  0x6d   : > { %10879 = vmatpush3.bf16.msra.mxu1 %v11773_v40  ;;  %v957_v40 = vshrl.u32 %v12376_v5, 4  ;;  %v12513_v5 = vadd.s32 24, %v12402_v15 }
  0x6e   : > { %10595 = vmatmul.mubr.bf16.gmra.mrb[32].mxu0 %v11749_v27  ;;  %v12281_v27 = vadd.s32 24, %v12242_v7 }
  0x6f   : > { %10598 = vmatprep.mubr.bf16.mxu0 %v11750_v28  ;;  %v12284_v28 = vsub.s32 %v12188_v46, %v859_v17  ;;  %v12407_v10 = vmul.u32.u64.low 2863311531, %v12379_v6  ;;  %v12408_v17 = vmul.u32.u64.high 2863311531, %v12379_v6, %v12407_v10  ;;  %15163 = vst [vmem:[#allocation16_spill] sm:$0xff] %v12513_v5 }
  0x70   : > { %v958_v10 = vmul.u32 24, %v957_v40 }
  0x71   : > { %v12320_v43 = vadd.s32 24, %v12284_v28  ;;  %vm1350_vm6 = vcmp.ne.s32.totalorder %v12284_v28, 0  ;;  %vm1398_vm7 = vcmp.lt.s32.totalorder %v12284_v28, 0 }
  0x72   : > { %vm12417_vm1 = vmand %vm1398_vm7, %vm1350_vm6 }
  0x73   : > { %v15143_v20 = vsel %vm12417_vm1, 4294967295, %v15142_v20  ;;  %vm12459_vm6 = vmand %vm1399_vm13, %vm1351_vm12  ;;  %vm15159_vm13 = vcmp.ne.s32.totalorder %v12391_v4, 0  ;;  %v15193_v4 = vmov 0 }
  0x74   : > { %v15150_v39 = vsel %vm12459_vm6, 4294967295, %v15149_v39  ;;  %vm12494_vm12 = vmand %vm1400_vm3, %vm1352_vm0 }
  0x75   : > { %v15155_v58 = vsel %vm12494_vm12, 4294967295, %v15154_v58 }
  0x76   : > { %10599 = vmatmul.mubr.bf16.gmra.mrb[36].mxu0 %v11751_v29  ;;  %v892_v29 = vmul.u32 24, %v891_v18  ;;  %v12411_v18 = vadd.s32 128, %v12171_v37  ;;  %15156 = vst [vmem:[#allocation12_spill] sm:$0xff] %v15155_v58 }
  0x77   : > { %10602 = vmatprep.mubr.bf16.mxu0 %v11752_v30 }
  0x78   : > { %v12323_v44 = vsub.s32 %v12204_v52, %v892_v29  ;;  %v15147_v29 = vmov 0 }
  0x7a   : > { %vm1353_vm10 = vcmp.ne.s32.totalorder %v12323_v44, 0  ;;  %vm1401_vm11 = vcmp.lt.s32.totalorder %v12323_v44, 0  ;;  %v12368_v0 = vadd.s32 24, %v12323_v44 }
  0x7b   : > { %vm12446_vm7 = vmand %vm1401_vm11, %vm1353_vm10  ;;  %vm1403_vm10 = vcmp.lt.s32.totalorder %v12402_v15, 0 }
  0x7c   : > { %v15148_v29 = vsel %vm12446_vm7, 4294967295, %v15147_v29 }
  0x7e   : > { %10603 = vmatmul.mubr.bf16.gmra.mrb[40].mxu0 %v11753_v31  ;;  %v902_v31 = vshrl.u32 %v12246_v9, 4  ;;  %v12386_v8 = vmul.u32.u64.low 2863311531, %v12357_v59  ;;  %v12387_v9 = vmul.u32.u64.high 2863311531, %v12357_v59, %v12386_v8 }
  0x7f   : > { %10606 = vmatprep.mubr.bf16.mxu0 %v11754_v32  ;;  %v12294_v32 = vadd.s32 88, %v12171_v37 }
  0x80   : > { %v903_v46 = vmul.u32 24, %v902_v31  ;;  %v990_v51 = vshrl.u32 %v12387_v9, 4 }
  0x81   : > { %v12332_v48 = vmul.u32.u64.low 2863311531, %v12294_v32  ;;  %v12333_v49 = vmul.u32.u64.high 2863311531, %v12294_v32, %v12332_v48 }
  0x82   : > { %v12364_v61 = vsub.s32 %v12226_v63, %v903_v46  ;;  %v12383_v63 = vadd.s32 24, %v12336_v50  ;;  %v12466_v46 = vmul.u32.u64.low 2863311531, %v12411_v18  ;;  %v12467_v47 = vmul.u32.u64.high 2863311531, %v12411_v18, %v12466_v46 }
  0x83   : > { %v946_v11 = vshrl.u32 %v12333_v49, 4  ;;  %v15151_v48 = vmov 0  ;;  %v980_v49 = vmul.u32 24, %v979_v21  ;;  %v968_v21 = vshrl.u32 %v12408_v17, 4 }
  0x84   : > { %15137 = vst [vmem:[#allocation5_spill] sm:$0xff] %v12364_v61  ;;  %vm1354_vm14 = vcmp.ne.s32.totalorder %v12364_v61, 0  ;;  %vm1402_vm15 = vcmp.lt.s32.totalorder %v12364_v61, 0  ;;  %v991_v40 = vmul.u32 24, %v990_v51  ;;  %v12573_v51 = vsub.s32 %v12349_v56, %v958_v10 }
  0x85   : > { %v947_v24 = vmul.u32 24, %v946_v11  ;;  %vm12473_vm11 = vmand %vm1402_vm15, %vm1354_vm14  ;;  %v12519_v9 = vmul.u32.u64.low 2863311531, %v12453_v33  ;;  %v12520_v11 = vmul.u32.u64.high 2863311531, %v12453_v33, %v12519_v9  ;;  %v12551_v46 = vsub.s32 %v12326_v45, %v980_v49 }
  0x86   : > { %10607 = vmatmul.mubr.bf16.gmra.mrb[44].mxu0 %v11755_v35  ;;  %v12297_v35 = vadd.s32 72, %v12171_v37  ;;  %v15152_v48 = vsel %vm12473_vm11, 4294967295, %v15151_v48  ;;  %vm12508_vm14 = vmand %vm1405_vm8, %vm15159_vm13  ;;  %v12569_v49 = vadd.s32 176, %v12171_v37  ;;  %15169 = vst [vmem:[#allocation20_spill] sm:$0xff] %v12573_v51  ;;  %v1001_v34 = vshrl.u32 %v12467_v47, 4  ;;  %v11779_v9 = vld [vmem:[%s15004_s2 + $0x140] sm:$0xff]  }
  0x87   : > { %10626 = vmatprep.mubr.bf16.mxu0 %v11769_v14  ;;  %v12399_v14 = vadd.s32 24, %v12364_v61  ;;  %15153 = vst [vmem:[#allocation11_spill] sm:$0xff] %v15152_v48  ;;  %v12502_v1 = vsub.s32 %v12294_v32, %v947_v24  ;;  %v15161_v3 = vsel %vm12508_vm14, 4294967295, %v15160_v3  ;;  %vm12534_vm15 = vmand %vm1403_vm10, %vm1355_vm9  ;;  %v11778_v24 = vld [vmem:[%s15004_s2 + $0x138] sm:$0xff]   ;;  %v12589_v56 = vadd.s32 24, %v12551_v46 }
  0x88   : > { %v12340_v52 = vmul.u32.u64.low 2863311531, %v12297_v35  ;;  %v12341_v53 = vmul.u32.u64.high 2863311531, %v12297_v35, %v12340_v52  ;;  %15162 = vst [vmem:[#allocation15_spill] sm:$0xff] %v15161_v3  ;;  %15167 = vst [vmem:[#allocation18_spill] sm:$0xff] %v12551_v46  ;;  %10880 = vmatprep.subr.bf16.mxu1 %v11778_v24  ;;  %v12592_v10 = vadd.s32 160, %v12171_v37  ;;  %vm15187_vm14 = vcmp.lt.s32.totalorder %v12551_v46, 0 }
  0x89   : > { %15140 = vst [vmem:[#allocation8_spill] sm:$0xff] %v12399_v14  ;;  %15158 = vst [vmem:[#allocation14_spill] sm:$0xff] %v12502_v1  ;;  %vm1358_vm0 = vcmp.ne.s32.totalorder %v12502_v1, 0  ;;  %vm1406_vm3 = vcmp.lt.s32.totalorder %v12502_v1, 0  ;;  %v12565_v45 = vadd.s32 24, %v12502_v1  ;;  %10881 = vmatpush3.bf16.msra.mxu1 %v11778_v24  ;;  %v12584_v24 = vsub.s32 %v12357_v59, %v991_v40 }
  0x8a   : > { %v924_v16 = vshrl.u32 %v12341_v53, 4  ;;  %v12479_v52 = vmul.u32.u64.low 2863311531, %v12427_v22  ;;  %v12480_v53 = vmul.u32.u64.high 2863311531, %v12427_v22, %v12479_v52  ;;  %15171 = vst [vmem:[#allocation22_spill] sm:$0xff] %v12589_v56  ;;  %10930 = vmatprep.subr.bf16.mxu1 %v11779_v9  ;;  %v12600_v59 = vadd.s32 184, %v12171_v37  ;;  %vm12643_vm9 = vmand %vm1406_vm3, %vm1358_vm0 }
  0x8b   : > { %v1023_v52 = vshrl.u32 %v12440_v26, 4  ;;  %15168 = vst [vmem:[#allocation19_spill] sm:$0xff] %v12565_v45  ;;  %v969_v26 = vmul.u32 24, %v968_v21  ;;  %15170 = vst [vmem:[#allocation21_spill] sm:$0xff] %v12584_v24  ;;  %v1012_v21 = vshrl.u32 %v12520_v11, 4  ;;  %v1002_v40 = vmul.u32 24, %v1001_v34 }
  0x8c   : > { %v925_v31 = vmul.u32 24, %v924_v16  ;;  %v12596_v25 = vmul.u32.u64.low 2863311531, %v12569_v49  ;;  %v12597_v16 = vmul.u32.u64.high 2863311531, %v12569_v49, %v12596_v25  ;;  %v12612_v9 = vadd.s32 168, %v12171_v37 }
  0x8d   : > { %v1024_v47 = vmul.u32 24, %v1023_v52  ;;  %v12608_v52 = vadd.s32 24, %v12573_v51  ;;  %v12619_v32 = vmul.u32.u64.low 2863311531, %v12592_v10  ;;  %v12620_v57 = vmul.u32.u64.high 2863311531, %v12592_v10, %v12619_v32 }
  0x8e   : > { %v12516_v8 = vsub.s32 %v12297_v35, %v925_v31  ;;  %v15164_v35 = vmov 0  ;;  %v1034_v31 = vshrl.u32 %v12480_v53, 4  ;;  %v12605_v53 = vsub.s32 %v12379_v6, %v969_v26 }
  0x8f   : > { %v15165_v35 = vsel %vm12534_vm15, 4294967295, %v15164_v35  ;;  %15173 = vst [vmem:[#allocation24_spill] sm:$0xff] %v12608_v52  ;;  %v12616_v25 = vsub.s32 %v12395_v12, %v1024_v47  ;;  %v1013_v6 = vmul.u32 24, %v1012_v21  ;;  %v12634_v12 = vsub.s32 %v12411_v18, %v1002_v40 }
  0x90   : > { %15166 = vst [vmem:[#allocation17_spill] sm:$0xff] %v15165_v35  ;;  %v12580_v17 = vadd.s32 24, %v12516_v8  ;;  %15172 = vst [vmem:[#allocation23_spill] sm:$0xff] %v12605_v53  ;;  %v1035_v11 = vmul.u32 24, %v1034_v31  ;;  %v12623_v34 = vmul.u32.u64.low 2863311531, %v12600_v59  ;;  %v12624_v26 = vmul.u32.u64.high 2863311531, %v12600_v59, %v12623_v34 }
  0x91   : > { %15174 = vst [vmem:[#allocation25_spill] sm:$0xff] %v12616_v25  ;;  %v12630_v31 = vadd.s32 24, %v12584_v24  ;;  %15176 = vst [vmem:[#allocation27_spill] sm:$0xff] %v12634_v12  ;;  %v12637_v47 = vadd.s32 192, %v12171_v37  ;;  %v15177_v32 = vmov 0  ;;  %v12655_v18 = vadd.s32 216, %v12171_v37 }
  0x92   : > { %v15178_v32 = vsel %vm12643_vm9, 4294967295, %v15177_v32  ;;  %v12648_v21 = vsub.s32 %v12427_v22, %v1035_v11  ;;  %v12651_v34 = vmul.u32.u64.low 2863311531, %v12612_v9  ;;  %v12652_v54 = vmul.u32.u64.high 2863311531, %v12612_v9, %v12651_v34 }
  0x93   : > { %15175 = vst [vmem:[#allocation26_spill] sm:$0xff] %v12630_v31  ;;  %15179 = vst [vmem:[#allocation28_spill] sm:$0xff] %v15178_v32  ;;  %vm15181_vm8 = vcmp.ne.s32.totalorder %v12516_v8, 0  ;;  %vm15182_vm13 = vcmp.lt.s32.totalorder %v12516_v8, 0  ;;  %v15183_v40 = vmov 0  ;;  %v12667_v22 = vadd.s32 24, %v12605_v53 }
  0x94   : > { %15180 = vst [vmem:[#allocation29_spill] sm:$0xff] %v12648_v21  ;;  %vm12661_vm10 = vmand %vm15182_vm13, %vm15181_vm8  ;;  %v12671_v11 = vadd.s32 200, %v12171_v37  ;;  %vm15186_vm15 = vcmp.ne.s32.totalorder %v12551_v46, 0  ;;  %v15188_v34 = vmov 0  ;;  %v12682_v41 = vsub.s32 %v12453_v33, %v1013_v6 }
  0x95   : > { %v15184_v40 = vsel %vm12661_vm10, 4294967295, %v15183_v40  ;;  %15185 = vst [vmem:[#allocation30_spill] sm:$0xff] %v12667_v22  ;;  %vm12677_vm12 = vmand %vm15187_vm14, %vm15186_vm15  ;;  %v1067_v15 = vshrl.u32 %v12597_v16, 4  ;;  %v12686_v5 = vmul.u32.u64.low 2863311531, %v12627_v55  ;;  %v12687_v35 = vmul.u32.u64.high 2863311531, %v12627_v55, %v12686_v5 }
  0x96   : > { %v15189_v34 = vsel %vm12677_vm12, 4294967295, %v15188_v34  ;;  %15190 = vst [vmem:[#allocation31_spill] sm:$0xff] %v12682_v41  ;;  %vm15191_vm8 = vcmp.ne.s32.totalorder %v12573_v51, 0  ;;  %vm15192_vm13 = vcmp.lt.s32.totalorder %v12573_v51, 0  ;;  %vm1413_vm14 = vcmp.lt.s32.totalorder %v12616_v25, 0 }
  0x97   : > { %vm12693_vm3 = vmand %vm15192_vm13, %vm15191_vm8  ;;  %v12700_v33 = vmul.u32.u64.low 2863311531, %v12637_v47  ;;  %v12701_v6 = vmul.u32.u64.high 2863311531, %v12637_v47, %v12700_v33  ;;  %vm15195_vm0 = vcmp.ne.s32.totalorder %v12584_v24, 0  ;;  %vm15196_vm11 = vcmp.lt.s32.totalorder %v12584_v24, 0 }
  0x98   : > { %v15194_v4 = vsel %vm12693_vm3, 4294967295, %v15193_v4  ;;  %vm12707_vm6 = vmand %vm15196_vm11, %vm15195_vm0  ;;  %v15197_v5 = vmov 0  ;;  %v12714_v16 = vmul.u32.u64.low 2863311531, %v12655_v18  ;;  %v12715_v62 = vmul.u32.u64.high 2863311531, %v12655_v18, %v12714_v16 }
  0x99   : > { %v15198_v5 = vsel %vm12707_vm6, 4294967295, %v15197_v5  ;;  %vm15200_vm15 = vcmp.ne.s32.totalorder %v12605_v53, 0  ;;  %vm15201_vm7 = vcmp.lt.s32.totalorder %v12605_v53, 0  ;;  %v15202_v33 = vmov 0 }
  0x9a   : > { %15199 = vst [vmem:[#allocation32_spill] sm:$0xff] %v15198_v5  ;;  %vm12721_vm4 = vmand %vm15201_vm7, %vm15200_vm15  ;;  %vm1414_vm11 = vcmp.lt.s32.totalorder %v12648_v21, 0  ;;  %v1045_v3 = vshrl.u32 %v12620_v57, 4  ;;  %v12728_v2 = vmul.u32.u64.low 2863311531, %v12671_v11  ;;  %v12729_v13 = vmul.u32.u64.high 2863311531, %v12671_v11, %v12728_v2 }
  0x9b   : > { %v15203_v33 = vsel %vm12721_vm4, 4294967295, %v15202_v33  ;;  %vm15205_vm0 = vcmp.ne.s32.totalorder %v12616_v25, 0  ;;  %v15206_v16 = vmov 0  ;;  %vm1364_vm8 = vcmp.ne.s32.totalorder %v12682_v41, 0 }
  0x9c   : > { %15204 = vst [vmem:[#allocation33_spill] sm:$0xff] %v15203_v33  ;;  %vm12733_vm13 = vmand %vm1413_vm14, %vm15205_vm0  ;;  %vm1412_vm7 = vcmp.lt.s32.totalorder %v12682_v41, 0  ;;  %v1068_v58 = vmul.u32 24, %v1067_v15  ;;  %v1078_v61 = vshrl.u32 %v12624_v26, 4  ;;  %v12745_v2 = vadd.s32 24, %v12616_v25 }
  0x9d   : > { %v15207_v16 = vsel %vm12733_vm13, 4294967295, %v15206_v16  ;;  %vm15210_vm14 = vcmp.ne.s32.totalorder %v12634_v12, 0  ;;  %vm15211_vm15 = vcmp.lt.s32.totalorder %v12634_v12, 0  ;;  %v15212_v14 = vmov 0 }
  0x9e   : > { %15208 = vst [vmem:[#allocation34_spill] sm:$0xff] %v15207_v16  ;;  %15209 = vst [vmem:[#allocation35_spill] sm:$0xff] %v12745_v2  ;;  %v12756_v15 = vadd.s32 24, %v12634_v12  ;;  %v12759_v26 = vadd.s32 24, %v12648_v21  ;;  %v15218_v45 = vmov 0  ;;  %v12778_v32 = vadd.s32 24, %v12682_v41 }
  0x9f   : > { %vm12751_vm0 = vmand %vm15211_vm15, %vm15210_vm14  ;;  %vm15217_vm14 = vcmp.ne.s32.totalorder %v12648_v21, 0  ;;  %v1056_v48 = vshrl.u32 %v12652_v54, 4  ;;  %v15222_v46 = vmov 0  ;;  %v1046_v56 = vmul.u32 24, %v1045_v3 }
  0xa0   : > { %v15213_v14 = vsel %vm12751_vm0, 4294967295, %v15212_v14  ;;  %15215 = vst [vmem:[#allocation37_spill] sm:$0xff] %v12756_v15  ;;  %15216 = vst [vmem:[#allocation38_spill] sm:$0xff] %v12759_v26  ;;  %v12798_v54 = vadd.s32 240, %v12171_v37  ;;  %v12805_v5 = vsub.s32 %v12569_v49, %v1068_v58  ;;  %v1079_v1 = vmul.u32 24, %v1078_v61 }
  0xa1   : > { %15214 = vst [vmem:[#allocation36_spill] sm:$0xff] %v15213_v14  ;;  %vm12773_vm15 = vmand %vm1414_vm11, %vm15217_vm14  ;;  %v1111_v24 = vshrl.u32 %v12687_v35, 4  ;;  %v1089_v58 = vshrl.u32 %v12701_v6, 4  ;;  %v1057_v35 = vmul.u32 24, %v1056_v48  ;;  %v1122_v49 = vshrl.u32 %v12715_v62, 4 }
  0xa2   : > { %v15219_v45 = vsel %vm12773_vm15, 4294967295, %v15218_v45  ;;  %15221 = vst [vmem:[#allocation40_spill] sm:$0xff] %v12778_v32  ;;  %vm12793_vm11 = vmand %vm1412_vm7, %vm1364_vm8  ;;  %v12827_v31 = vadd.s32 224, %v12171_v37  ;;  %v12830_v3 = vsub.s32 %v12592_v10, %v1046_v56  ;;  %v1100_v12 = vshrl.u32 %v12729_v13, 4 }
  0xa3   : > { %15220 = vst [vmem:[#allocation39_spill] sm:$0xff] %v15219_v45  ;;  %v15223_v46 = vsel %vm12793_vm11, 4294967295, %v15222_v46  ;;  %15225 = vst [vmem:[#allocation42_spill] sm:$0xff] %v12805_v5  ;;  %v12834_v57 = vmul.u32.u64.low 2863311531, %v12798_v54  ;;  %v12835_v21 = vmul.u32.u64.high 2863311531, %v12798_v54, %v12834_v57  ;;  %v12839_v6 = vsub.s32 %v12600_v59, %v1079_v1 }
  0xa4   : > { %15224 = vst [vmem:[#allocation41_spill] sm:$0xff] %v15223_v46  ;;  %15226 = vst [vmem:[#allocation43_spill] sm:$0xff] %v12830_v3  ;;  %v1112_v48 = vmul.u32 24, %v1111_v24  ;;  %v12842_v62 = vadd.s32 248, %v12171_v37  ;;  %v1090_v61 = vmul.u32 24, %v1089_v58  ;;  %v12850_v13 = vsub.s32 %v12612_v9, %v1057_v35 }
  0xa5   : > { %15227 = vst [vmem:[#allocation44_spill] sm:$0xff] %v12839_v6  ;;  %v12846_v56 = vmul.u32.u64.low 2863311531, %v12827_v31  ;;  %v12847_v10 = vmul.u32.u64.high 2863311531, %v12827_v31, %v12846_v56  ;;  %v1123_v57 = vmul.u32 24, %v1122_v49  ;;  %v12857_v1 = vadd.s32 24, %v12805_v5 }
  0xa6   : > { %15228 = vst [vmem:[#allocation45_spill] sm:$0xff] %v12850_v13  ;;  %v12853_v41 = vmul.u32.u64.low 2863311531, %v12842_v62  ;;  %v12854_v32 = vmul.u32.u64.high 2863311531, %v12842_v62, %v12853_v41  ;;  %v1101_v24 = vmul.u32 24, %v1100_v12  ;;  %v800_v59 = vadd.s32 232, %v12171_v37 }
  0xa7   : > { %15229 = vst [vmem:[#allocation46_spill] sm:$0xff] %v12857_v1  ;;  %v12863_v58 = vadd.s32 24, %v12830_v3  ;;  %v12867_v9 = vsub.s32 %v12627_v55, %v1112_v48  ;;  %v12871_v41 = vadd.s32 24, %v12839_v6  ;;  %v12878_v12 = vsub.s32 %v12637_v47, %v1090_v61  ;;  %v12992_v1 = vld [vmem:[#allocation2] sm:$0xff]  }
  0xa8   : > { %v12873_v35 = vmul.u32.u64.low 2863311531, %v800_v59  ;;  %v12874_v49 = vmul.u32.u64.high 2863311531, %v800_v59, %v12873_v35  ;;  %v12881_v56 = vsub.s32 %v12655_v18, %v1123_v57  ;;  %v12884_v46 = vadd.s32 272, %v12171_v37  ;;  %15272 = vst [vmem:[#allocation65_spill] sm:$0xff] %v12992_v1 }
  0xa9   : > { %15230 = vst [vmem:[#allocation47_spill] sm:$0xff] %v12863_v58  ;;  %15231 = vst [vmem:[#allocation48_spill] sm:$0xff] %v12867_v9  ;;  %v12888_v55 = vsub.s32 %v12671_v11, %v1101_v24  ;;  %v1155_v48 = vshrl.u32 %v12835_v21, 4  ;;  %v1133_v35 = vshrl.u32 %v12847_v10, 4  ;;  %vm15236_vm14 = vcmp.ne.s32.totalorder %v12805_v5, 0 }
  0xaa   : > { %15232 = vst [vmem:[#allocation49_spill] sm:$0xff] %v12871_v41  ;;  %15233 = vst [vmem:[#allocation50_spill] sm:$0xff] %v12878_v12  ;;  %vm15237_vm11 = vcmp.lt.s32.totalorder %v12805_v5, 0  ;;  %v15238_v47 = vmov 0  ;;  %v12901_v18 = vadd.s32 24, %v12850_v13  ;;  %v1166_v11 = vshrl.u32 %v12854_v32, 4 }
  0xab   : > { %15234 = vst [vmem:[#allocation51_spill] sm:$0xff] %v12881_v56  ;;  %15235 = vst [vmem:[#allocation52_spill] sm:$0xff] %v12888_v55  ;;  %v12906_v61 = vadd.s32 256, %v12171_v37  ;;  %vm15242_vm15 = vcmp.ne.s32.totalorder %v12830_v3, 0  ;;  %vm15243_vm0 = vcmp.lt.s32.totalorder %v12830_v3, 0  ;;  %v15244_v21 = vmov 0 }
  0xac   : > { %vm12896_vm7 = vmand %vm15237_vm11, %vm15236_vm14  ;;  %15241 = vst [vmem:[#allocation54_spill] sm:$0xff] %v12901_v18  ;;  %vm1421_vm11 = vcmp.lt.s32.totalorder %v12867_v9, 0  ;;  %v1144_v10 = vshrl.u32 %v12874_v49, 4  ;;  %v12919_v57 = vmul.u32.u64.low 2863311531, %v12884_v46  ;;  %v12920_v24 = vmul.u32.u64.high 2863311531, %v12884_v46, %v12919_v57 }
  0xad   : > { %v15239_v47 = vsel %vm12896_vm7, 4294967295, %v15238_v47  ;;  %vm12912_vm13 = vmand %vm15243_vm0, %vm15242_vm15  ;;  %vm15247_vm14 = vcmp.ne.s32.totalorder %v12839_v6, 0  ;;  %vm15248_vm8 = vcmp.lt.s32.totalorder %v12839_v6, 0  ;;  %v15249_v32 = vmov 0 }
  0xae   : > { %15240 = vst [vmem:[#allocation53_spill] sm:$0xff] %v15239_v47  ;;  %v15245_v21 = vsel %vm12912_vm13, 4294967295, %v15244_v21  ;;  %vm12926_vm4 = vmand %vm15248_vm8, %vm15247_vm14  ;;  %v12931_v26 = vadd.s32 24, %v12867_v9  ;;  %vm1371_vm0 = vcmp.ne.s32.totalorder %v12878_v12, 0  ;;  %vm1419_vm15 = vcmp.lt.s32.totalorder %v12878_v12, 0 }
  0xaf   : > { %15246 = vst [vmem:[#allocation55_spill] sm:$0xff] %v15245_v21  ;;  %v15250_v32 = vsel %vm12926_vm4, 4294967295, %v15249_v32  ;;  %vm15253_vm3 = vcmp.ne.s32.totalorder %v12850_v13, 0  ;;  %vm15254_vm12 = vcmp.lt.s32.totalorder %v12850_v13, 0  ;;  %v15255_v49 = vmov 0 }
  0xb0   : > { %15251 = vst [vmem:[#allocation56_spill] sm:$0xff] %v15250_v32  ;;  %15252 = vst [vmem:[#allocation57_spill] sm:$0xff] %v12931_v26  ;;  %vm1422_vm8 = vcmp.lt.s32.totalorder %v12881_v56, 0  ;;  %vm1372_vm14 = vcmp.ne.s32.totalorder %v12888_v55, 0  ;;  %v1156_v57 = vmul.u32 24, %v1155_v48  ;;  %v1134_v45 = vmul.u32 24, %v1133_v35 }
  0xb1   : > { %vm12940_vm10 = vmand %vm15254_vm12, %vm15253_vm3  ;;  %vm15258_vm9 = vcmp.ne.s32.totalorder %v12867_v9, 0  ;;  %v15259_v15 = vmov 0  ;;  %vm1420_vm6 = vcmp.lt.s32.totalorder %v12888_v55, 0  ;;  %v1167_v14 = vmul.u32 24, %v1166_v11 }
  0xb2   : > { %v15256_v49 = vsel %vm12940_vm10, 4294967295, %v15255_v49  ;;  %vm12948_vm1 = vmand %vm1421_vm11, %vm15258_vm9  ;;  %v12954_v25 = vmul.u32.u64.low 2863311531, %v12906_v61  ;;  %v12955_v2 = vmul.u32.u64.high 2863311531, %v12906_v61, %v12954_v25  ;;  %v15262_v48 = vmov 0 }
  0xb3   : > { %15257 = vst [vmem:[#allocation58_spill] sm:$0xff] %v15256_v49  ;;  %v15260_v15 = vsel %vm12948_vm1, 4294967295, %v15259_v15  ;;  %vm12961_vm12 = vmand %vm1419_vm15, %vm1371_vm0  ;;  %v1145_v35 = vmul.u32 24, %v1144_v10  ;;  %v12966_v53 = vadd.s32 280, %v12171_v37  ;;  %v12969_v22 = vadd.s32 264, %v12171_v37 }
  0xb4   : > { %15261 = vst [vmem:[#allocation59_spill] sm:$0xff] %v15260_v15  ;;  %v15263_v48 = vsel %vm12961_vm12, 4294967295, %v15262_v48  ;;  %v12976_v11 = vadd.s32 24, %v12878_v12  ;;  %vm15266_vm9 = vcmp.ne.s32.totalorder %v12881_v56, 0  ;;  %v15267_v10 = vmov 0  ;;  %vm13006_vm11 = vmand %vm1420_vm6, %vm1372_vm14 }
  0xb5   : > { %15264 = vst [vmem:[#allocation60_spill] sm:$0xff] %v15263_v48  ;;  %vm12982_vm3 = vmand %vm1422_vm8, %vm15266_vm9  ;;  %v12987_v16 = vadd.s32 24, %v12881_v56  ;;  %v12990_v5 = vadd.s32 24, %v12888_v55  ;;  %v15273_v58 = vmov 0  ;;  %v13011_v21 = vsub.s32 %v12798_v54, %v1156_v57 }
  0xb6   : > { %15265 = vst [vmem:[#allocation61_spill] sm:$0xff] %v12976_v11  ;;  %v15268_v10 = vsel %vm12982_vm3, 4294967295, %v15267_v10  ;;  %v15274_v58 = vsel %vm13006_vm11, 4294967295, %v15273_v58  ;;  %v13014_v47 = vsub.s32 %v12827_v31, %v1134_v45  ;;  %v13021_v3 = vsub.s32 %v12842_v62, %v1167_v14 }
  0xb7   : > { %15269 = vst [vmem:[#allocation62_spill] sm:$0xff] %v15268_v10  ;;  %15270 = vst [vmem:[#allocation63_spill] sm:$0xff] %v12987_v16  ;;  %v13024_v13 = vmul.u32.u64.low 2863311531, %v12966_v53  ;;  %v13025_v18 = vmul.u32.u64.high 2863311531, %v12966_v53, %v13024_v13  ;;  %v13027_v49 = vsub.s32 %v800_v59, %v1145_v35  ;;  %v1199_v54 = vshrl.u32 %v12920_v24, 4 }
  0xb8   : > { %15271 = vst [vmem:[#allocation64_spill] sm:$0xff] %v12990_v5  ;;  %15275 = vst [vmem:[#allocation66_spill] sm:$0xff] %v15274_v58  ;;  %v13031_v57 = vmul.u32.u64.low 2863311531, %v12969_v22  ;;  %v13032_v45 = vmul.u32.u64.high 2863311531, %v12969_v22, %v13031_v57  ;;  %v3193_v13 = vshll.u32 %v12992_v1, 16  ;;  %vm1377_vm6 = vcmp.ne.s32.totalorder %v13011_v21, 0 }
  0xb9   : > { %vm1425_vm0 = vcmp.lt.s32.totalorder %v13011_v21, 0  ;;  %vm1375_vm15 = vcmp.ne.s32.totalorder %v13014_v47, 0  ;;  %v809_v59 = vadd.s32 304, %v12171_v37  ;;  %vm1423_vm8 = vcmp.lt.s32.totalorder %v13014_v47, 0 }
  0xba   : > { %vm1378_vm14 = vcmp.ne.s32.totalorder %v13021_v3, 0  ;;  %vm1426_vm9 = vcmp.lt.s32.totalorder %v13021_v3, 0  ;;  %v807_v24 = vadd.s32 288, %v12171_v37  ;;  %vm1376_vm11 = vcmp.ne.s32.totalorder %v13027_v49, 0  ;;  %vm13058_vm12 = vmand %vm1425_vm0, %vm1377_vm6 }
  0xbb   : > { %v1200_v35 = vmul.u32 24, %v1199_v54  ;;  %v1177_v57 = vshrl.u32 %v12955_v2, 4  ;;  %v15276_v62 = vmov 0  ;;  %v1210_v14 = vshrl.u32 %v13025_v18, 4  ;;  %vm13072_vm3 = vmand %vm1423_vm8, %vm1375_vm15 }
  0xbc   : > { %v15277_v62 = vsel %vm13058_vm12, 4294967295, %v15276_v62  ;;  %v1188_v31 = vshrl.u32 %v13032_v45, 4  ;;  %v13064_v25 = vmul.u32.u64.low 2863311531, %v809_v59  ;;  %v13065_v55 = vmul.u32.u64.high 2863311531, %v809_v59, %v13064_v25  ;;  %vm13087_vm6 = vmand %vm1426_vm9, %vm1378_vm14 }
  0xbd   : > { %v13068_v5 = vadd.s32 24, %v13011_v21  ;;  %v15278_v54 = vmov 0  ;;  %v13076_v2 = vmul.u32.u64.low 2863311531, %v807_v24  ;;  %v13077_v58 = vmul.u32.u64.high 2863311531, %v807_v24, %v13076_v2 }
  0xbe   : > { %v15279_v54 = vsel %vm13072_vm3, 4294967295, %v15278_v54  ;;  %v810_v56 = vadd.s32 312, %v12171_v37  ;;  %v13081_v18 = vadd.s32 24, %v13014_v47  ;;  %v15280_v25 = vmov 0 }
  0xbf   : > { %v15281_v25 = vsel %vm13087_vm6, 4294967295, %v15280_v25  ;;  %v13092_v45 = vadd.s32 24, %v13021_v3  ;;  %v13095_v16 = vadd.s32 24, %v13027_v49  ;;  %v808_v2 = vadd.s32 296, %v12171_v37 }
  0xc0   : > { %vm15282_vm0 = vcmp.lt.s32.totalorder %v13027_v49, 0  ;;  %v15283_v10 = vmov 0  ;;  %v1178_v12 = vmul.u32 24, %v1177_v57  ;;  %v13111_v26 = vsub.s32 %v12884_v46, %v1200_v35 }
  0xc1   : > { %vm13102_vm15 = vmand %vm15282_vm0, %vm1376_vm11  ;;  %v13106_v11 = vmul.u32.u64.low 2863311531, %v810_v56  ;;  %v13107_v48 = vmul.u32.u64.high 2863311531, %v810_v56, %v13106_v11  ;;  %v1211_v15 = vmul.u32 24, %v1210_v14  ;;  %v13113_v41 = vrot.slane %v3193_v13, 1 }
  0xc2   : > { %v15284_v10 = vsel %vm13102_vm15, 4294967295, %v15283_v10  ;;  %v1189_v6 = vmul.u32 24, %v1188_v31  ;;  %v1243_v32 = vshrl.u32 %v13065_v55, 4  ;;  %v1221_v33 = vshrl.u32 %v13077_v58, 4 }
  0xc3   : > { %15285 = vst [vmem:[#allocation67_spill] sm:$0xff] %v13113_v41  ;;  %v13117_v51 = vmul.u32.u64.low 2863311531, %v808_v2  ;;  %v13118_v52 = vmul.u32.u64.high 2863311531, %v808_v2, %v13117_v51  ;;  %v13137_v58 = vsub.s32 %v12906_v61, %v1178_v12  ;;  %v1254_v13 = vshrl.u32 %v13107_v48, 4 }
  0xc4   : > { %v1244_v31 = vmul.u32 24, %v1243_v32  ;;  %v1222_v14 = vmul.u32 24, %v1221_v33  ;;  %vm1381_vm11 = vcmp.ne.s32.totalorder %v13111_v26, 0  ;;  %v13143_v35 = vsub.s32 %v12966_v53, %v1211_v15 }
  0xc5   : > { %v813_v57 = vadd.s32 336, %v12171_v37  ;;  %v13147_v9 = vadd.s32 24, %v13111_v26  ;;  %v13150_v51 = vsub.s32 %v12969_v22, %v1189_v6  ;;  %v1255_v33 = vmul.u32 24, %v1254_v13 }
  0xc6   : > { %v13152_v12 = vsub.s32 %v809_v59, %v1244_v31  ;;  %v1232_v61 = vshrl.u32 %v13118_v52, 4  ;;  %v13159_v55 = vadd.s32 320, %v12171_v37  ;;  %vm1379_vm14 = vcmp.ne.s32.totalorder %v13137_v58, 0 }
  0xc7   : > { %15286 = vst [vmem:[#allocation68_spill] sm:$0xff] %v13150_v51  ;;  %v13155_v32 = vmul.u32.u64.low 2863311531, %v813_v57  ;;  %v13156_v48 = vmul.u32.u64.high 2863311531, %v813_v57, %v13155_v32  ;;  %vm1427_vm9 = vcmp.lt.s32.totalorder %v13137_v58, 0  ;;  %v13164_v53 = vadd.s32 24, %v13137_v58 }
  0xc8   : > { %15287 = vst [vmem:[#allocation69_spill] sm:$0xff] %v13152_v12  ;;  %v13166_v22 = vsub.s32 %v807_v24, %v1222_v14  ;;  %vm1430_vm8 = vcmp.lt.s32.totalorder %v13143_v35, 0  ;;  %v13170_v52 = vsub.s32 %v810_v56, %v1255_v33  ;;  %v1233_v15 = vmul.u32 24, %v1232_v61  ;;  %vm13186_vm0 = vmand %vm1427_vm9, %vm1379_vm14 }
  0xc9   : > { %vm15290_vm15 = vcmp.lt.s32.totalorder %v13111_v26, 0  ;;  %v15291_v6 = vmov 0  ;;  %v13183_v59 = vmul.u32.u64.low 2863311531, %v13159_v55  ;;  %v13184_v24 = vmul.u32.u64.high 2863311531, %v13159_v55, %v13183_v59 }
  0xca   : > { %15288 = vst [vmem:[#allocation70_spill] sm:$0xff] %v13166_v22  ;;  %15289 = vst [vmem:[#allocation71_spill] sm:$0xff] %v13170_v52  ;;  %v15293_v56 = vmov 0  ;;  %v13191_v31 = vadd.s32 24, %v13143_v35  ;;  %v13194_v14 = vadd.s32 24, %v13150_v51  ;;  %v15296_v13 = vsel %vm12286_vm2, %v12281_v27, %v12242_v7 }
  0xcb   : > { %vm13176_vm6 = vmand %vm15290_vm15, %vm1381_vm11  ;;  %v15294_v56 = vsel %vm13186_vm0, 4294967295, %v15293_v56  ;;  %vm13203_vm12 = vcmp.lt.s32.totalorder %v15296_v13, 16  ;;  %vm15299_vm14 = vcmp.ne.s32.totalorder %v13143_v35, 0  ;;  %v15300_v61 = vmov 0 }
  0xcc   : > { %v15292_v6 = vsel %vm13176_vm6, 4294967295, %v15291_v6  ;;  %15295 = vst [vmem:[#allocation72_spill] sm:$0xff] %v13194_v14  ;;  %vm13209_vm9 = vmand %vm1430_vm8, %vm15299_vm14  ;;  %v13215_v32 = vsub.s32 %v808_v2, %v1233_v15  ;;  %v1287_v30 = vshrl.u32 %v13156_v48, 4  ;;  %v15303_v7 = vsel %vm12315_vm5, %v12300_v36, %v12265_v19 }
  0xcd   : > { %v15301_v61 = vsel %vm13209_vm9, 4294967295, %v15300_v61  ;;  %vm13223_vm2 = vcmp.lt.s32.totalorder %v15303_v7, 16  ;;  %vm15306_vm8 = vcmp.ne.s32.totalorder %v13150_v51, 0  ;;  %vm15307_vm14 = vcmp.lt.s32.totalorder %v13150_v51, 0 }
  0xce   : > { %15302 = vst [vmem:[#allocation73_spill] sm:$0xff] %v13215_v32  ;;  %vm13231_vm3 = vmand %vm15307_vm14, %vm15306_vm8  ;;  %v15308_v59 = vmov 0  ;;  %v13236_v2 = vadd.s32 24, %v13152_v12  ;;  %v13241_v19 = vadd.s32 344, %v12171_v37  ;;  %vm15312_vm5 = vnez %v15143_v20 }
  0xcf   : > { %v15309_v59 = vsel %vm13231_vm3, 4294967295, %v15308_v59  ;;  %v15313_v36 = vsel %vm15312_vm5, %v12320_v43, %v12284_v28  ;;  %vm15316_vm8 = vcmp.ne.s32.totalorder %v13152_v12, 0  ;;  %vm15317_vm14 = vcmp.lt.s32.totalorder %v13152_v12, 0 }
  0xd0   : > { %15310 = vst [vmem:[#allocation74_spill] sm:$0xff] %v15309_v59  ;;  %15311 = vst [vmem:[#allocation75_spill] sm:$0xff] %v13241_v19  ;;  %vm13248_vm1 = vcmp.lt.s32.totalorder %v15313_v36, 16  ;;  %v15318_v48 = vmov 0  ;;  %v13261_v15 = vadd.s32 24, %v13166_v22  ;;  %v13266_v28 = vadd.s32 328, %v12171_v37 }
  0xd1   : > { %vm13256_vm10 = vmand %vm15317_vm14, %vm15316_vm8  ;;  %vm15322_vm5 = vnez %v15146_v23  ;;  %vm15326_vm8 = vcmp.ne.s32.totalorder %v13166_v22, 0  ;;  %vm15327_vm14 = vcmp.lt.s32.totalorder %v13166_v22, 0  ;;  %v1265_v23 = vshrl.u32 %v13184_v24, 4  ;;  %v13297_v36 = vld [vmem:[%s15005_s3] ss:$0 sm:$0xff] }
  0xd2   : > { %v15319_v48 = vsel %vm13256_vm10, 4294967295, %v15318_v48  ;;  %15320 = vst [vmem:[#allocation76_spill] sm:$0xff] %v13261_v15  ;;  %15321 = vst [vmem:[#allocation77_spill] sm:$0xff] %v13266_v28  ;;  %v15323_v43 = vsel %vm15322_vm5, %v12360_v60, %v12303_v38  ;;  %v15328_v38 = vmov 0  ;;  %v1288_v60 = vmul.u32 24, %v1287_v30 }
  0xd3   : > { %vm13273_vm4 = vcmp.lt.s32.totalorder %v15323_v43, 16  ;;  %vm13289_vm15 = vmand %vm15327_vm14, %vm15326_vm8  ;;  %vm15331_vm5 = vcmp.ne.s32.totalorder %v13170_v52, 0  ;;  %vm15332_vm11 = vcmp.lt.s32.totalorder %v13170_v52, 0  ;;  %v15333_v43 = vmov 0 }
  0xd4   : > { %v15329_v38 = vsel %vm13289_vm15, 4294967295, %v15328_v38  ;;  %vm13303_vm0 = vmand %vm15332_vm11, %vm15331_vm5  ;;  %v13308_v7 = vadd.s32 24, %v13170_v52  ;;  %v13311_v30 = vadd.s32 24, %v13215_v32  ;;  %vm15338_vm11 = vcmp.ne.s32.totalorder %v13215_v32, 0 }
  0xd5   : > { %15330 = vst [vmem:[#allocation78_spill] sm:$0xff] %v15329_v38  ;;  %v15334_v43 = vsel %vm13303_vm0, 4294967295, %v15333_v43  ;;  %v13314_v24 = vmul.u32.u64.low 2863311531, %v13241_v19  ;;  %v13315_v13 = vmul.u32.u64.high 2863311531, %v13241_v19, %v13314_v24  ;;  %vm15339_vm8 = vcmp.lt.s32.totalorder %v13215_v32, 0 }
  0xd6   : > { %15335 = vst [vmem:[#allocation79_spill] sm:$0xff] %v15334_v43  ;;  %15336 = vst [vmem:[#allocation80_spill] sm:$0xff] %v13308_v7  ;;  %v15340_v41 = vmov 0  ;;  %v13333_v1 = vsub.s32 %v813_v57, %v1288_v60  ;;  %v1266_v24 = vmul.u32 24, %v1265_v23  ;;  %vm2310_vm5 = vcmask 1043456  }
  0xd7   : > { %15337 = vst [vmem:[#allocation81_spill] sm:$0xff] %v13311_v30  ;;  %vm13329_vm14 = vmand %vm15339_vm8, %vm15338_vm11  ;;  %v13344_v51 = vmul.u32.u64.low 2863311531, %v13266_v28  ;;  %v13345_v14 = vmul.u32.u64.high 2863311531, %v13266_v28, %v13344_v51  ;;  %vm2311_vm11 = vsmask.f32 7938  ;;  %vm15346_vm9 = vnez %v15148_v29  ;;  %v15387_v30 = vld [vmem:[#allocation13_spill] sm:$0xff] }
  0xd8   : > { %v15341_v41 = vsel %vm13329_vm14, 4294967295, %v15340_v41  ;;  %15343 = vst [vmem:[#allocation83_spill] sm:$0xff] %v13333_v1  ;;  %vm1389_vm8 = vcmp.ne.s32.totalorder %v13333_v1, 0  ;;  %vm1437_vm3 = vcmp.lt.s32.totalorder %v13333_v1, 0  ;;  %v13351_v60 = vadd.s32 24, %v13333_v1  ;;  %v15365_v1 = vld [vmem:[#allocation11_spill] sm:$0xff] }
  0xd9   : > { %15342 = vst [vmem:[#allocation82_spill] sm:$0xff] %v15341_v41  ;;  %15344 = vst [vmem:[#allocation84_spill] sm:$0xff] %v13345_v14  ;;  %v15347_v51 = vsel %vm15346_vm9, %v12368_v0, %v12323_v44  ;;  %v15350_v28 = vmov 0  ;;  %v13376_v44 = vsub.s32 %v13159_v55, %v1266_v24  ;;  %vm15354_vm9 = vnez %v15150_v39  ;;  %v15388_v41 = vld [vmem:[#allocation7_spill] sm:$0xff] }
  0xda   : > { %15345 = vst [vmem:[#allocation85_spill] sm:$0xff] %v13351_v60  ;;  %vm13359_vm6 = vcmp.lt.s32.totalorder %v15347_v51, 16  ;;  %vm13371_vm15 = vmand %vm1437_vm3, %vm1389_vm8  ;;  %v15355_v11 = vsel %vm15354_vm9, %v12383_v63, %v12336_v50  ;;  %v13390_v32 = vadd.s32 368, %v12171_v37  ;;  %v15372_v60 = vld [vmem:[#allocation12_spill] sm:$0xff] }
  0xdb   : > { %v15351_v28 = vsel %vm13371_vm15, 4294967295, %v15350_v28  ;;  %15353 = vst [vmem:[#allocation87_spill] sm:$0xff] %v13376_v44  ;;  %vm13384_vm10 = vcmp.lt.s32.totalorder %v15355_v11, 16  ;;  %vm1387_vm3 = vcmp.ne.s32.totalorder %v13376_v44, 0  ;;  %vm1435_vm8 = vcmp.lt.s32.totalorder %v13376_v44, 0 }
  0xdc   : > { %15352 = vst [vmem:[#allocation86_spill] sm:$0xff] %v15351_v28  ;;  %15358 = vst [vmem:[#allocation88_spill] sm:$0xff] %v13390_v32  ;;  %v13402_v11 = vadd.s32 24, %v13376_v44  ;;  %v15375_v28 = vld [vmem:[#allocation6_spill] sm:$0xff] }
  0xdd   : > { %vm13406_vm9 = vmand %vm1435_vm8, %vm1387_vm3  ;;  %vm15381_vm8 = vsmask.f32 4368 }
  0xde   : > { %15359 = vst [vmem:[#allocation89_spill] sm:$0xff] %v13402_v11  ;;  %vm13446_vm3 = vmand %vm2310_vm5, %vm2311_vm11 }
 0x101   : > { %v10564_v19 = vpop.f32.mrb[0].mxu0 }
 0x102   : > { %v540_v59 = vadd.f32 %v10564_v19, %v13297_v36  ;;  %v531_v57 = vpop.f32.mrb[1].mxu0  ;;  %v15399_v19 = vld [vmem:[#allocation28_spill] sm:$0xff] }
 0x103   : > { %v532_v23 = vadd.f32 %v13297_v36, %v531_v57  ;;  %v10565_v46 = vpop.f32.mrb[2].mxu0  ;;  %v1298_v57 = vshrl.u32 %v13315_v13, 4 }
 0x104   : > { %v724_v0 = vmax.f32 %v540_v59, 0.0  ;;  %v543_v29 = vadd.f32 %v10565_v46, %v13297_v36  ;;  %v534_v51 = vpop.f32.mrb[3].mxu0 }
 0x105   : > { %v722_v55 = vmax.f32 %v532_v23, 0.0  ;;  %v535_v59 = vadd.f32 %v13297_v36, %v534_v51  ;;  %v15360_v23 = vmov 0  ;;  %v13411_v51 = vadd.s32 352, %v12171_v37 }
 0x106   : > { %v1637_v50 = vsel %vm13203_vm12, %v724_v0, 0.0  ;;  %v725_v63 = vmax.f32 %v543_v29, 0.0  ;;  %v15361_v23 = vsel %vm13406_vm9, 4294967295, %v15360_v23  ;;  %v15368_v29 = vld [vmem:[#allocation5_spill] sm:$0xff] }
 0x107   : > { %v9870_v46 = vpack.c.bf16 %v1637_v50, %v1637_v50  ;;  %v1635_v13 = vsel %vm13223_vm2, %v722_v55, 0.0  ;;  %v723_v24 = vmax.f32 %v535_v59, 0.0  ;;  %15362 = vst [vmem:[#allocation90_spill] sm:$0xff] %v15361_v23  ;;  %15363 = vst [vmem:[#allocation91_spill] sm:$0xff] %v13411_v51  ;;  %v13419_v50 = vmul.u32 24, %v1298_v57  ;;  %v15367_v23 = vld [vmem:[#allocation8_spill] sm:$0xff] }
 0x108   : > { %v9868_v33 = vpack.c.bf16 %v1635_v13, %v1635_v13  ;;  %v1638_v0 = vsel %vm13248_vm1, %v725_v63, 0.0  ;;  %vm15366_vm1 = vnez %v15365_v1  ;;  %v15374_v1 = vld [vmem:[#allocation10_spill] sm:$0xff] }
 0x109   : > { %15364 = vst [vmem:[#allocation92_spill] sm:$0xff] %v13419_v50  ;;  %v1848_v27 = vshrl.u32 %v9870_v46, 16  ;;  %v9871_v55 = vpack.c.bf16 %v1638_v0, %v1638_v0  ;;  %v1636_v59 = vsel %vm13273_vm4, %v723_v24, 0.0  ;;  %v10568_v39 = vpop.f32.mrb[4].mxu0  ;;  %v1851_v51 = vshll.u32 %v9870_v46, 16 }
 0x10a   : > { %v1831_v13 = vshrl.u32 %v9868_v33, 16  ;;  %v9869_v32 = vpack.c.bf16 %v1636_v59, %v1636_v59  ;;  %v556_v42 = vadd.f32 %v10568_v39, %v13297_v36  ;;  %v547_v63 = vpop.f32.mrb[5].mxu0  ;;  %v15369_v57 = vsel %vm15366_vm1, %v15367_v23, %v15368_v29 }
 0x10b   : > { %vm13430_vm12 = vcmp.lt.s32.totalorder %v15369_v57, 16  ;;  %v1850_v20 = vrot.slane %v1848_v27, 7  ;;  %v1834_v24 = vshll.u32 %v9868_v33, 16  ;;  %v1857_v0 = vshrl.u32 %v9871_v55, 16  ;;  %v10569_v46 = vpop.f32.mrb[6].mxu0 }
 0x10c   : > { %v548_v37 = vadd.f32 %v13297_v36, %v547_v63  ;;  %v1833_v14 = vrot.slane %v1831_v13, 7  ;;  %v1860_v59 = vshll.u32 %v9871_v55, 16  ;;  %v1839_v44 = vshrl.u32 %v9869_v32, 16  ;;  %v550_v11 = vpop.f32.mrb[7].mxu0  ;;  %v2313_v55 = vld [vmem:[#allocation2 + $0xc] sm:$0xf] }
 0x10d   : > { %v728_v39 = vmax.f32 %v556_v42, 0.0  ;;  %vm15373_vm4 = vnez %v15372_v60  ;;  %v1853_v27 = vor.u32 %v1851_v51, %v1850_v20  ;;  %v1859_v13 = vrot.slane %v1857_v0, 7 }
 0x10e   : > { %v15376_v23 = vsel %vm15373_vm4, %v15374_v1, %v15375_v28  ;;  %v1842_v42 = vshll.u32 %v9869_v32, 16  ;;  %v726_v63 = vmax.f32 %v548_v37, 0.0  ;;  %v1855_v57 = vrot.slane %v1850_v20, 4  ;;  %v15392_v37 = vld [vmem:[#allocation17_spill] sm:$0xff]  ;;  %v15394_v20 = vld [vmem:[#allocation16_spill] sm:$0xff] }
 0x10f   : > { %vm13440_vm2 = vcmp.lt.s32.totalorder %v15376_v23, 16  ;;  %v1836_v60 = vor.u32 %v1834_v24, %v1833_v14  ;;  %vm15382_vm1 = vsmask.f32 256  ;;  %v1841_v1 = vrot.slane %v1839_v44, 7  ;;  %v15385_v23 = vld [vmem:[#allocation15_spill] sm:$0xff]  ;;  %v15395_v24 = vld [vmem:[#allocation9_spill] sm:$0xff] }
 0x110   : > { %vm13452_vm4 = vmor %vm15382_vm1, %vm15381_vm8  ;;  %v1641_v51 = vsel %vm13359_vm6, %v728_v39, 0.0  ;;  %vm15386_vm5 = vnez %v15385_v23  ;;  %vm15393_vm9 = vnez %v15392_v37  ;;  %vm15400_vm6 = vnez %v15399_v19  ;;  %v15401_v44 = vld [vmem:[#allocation19_spill] sm:$0xff]  ;;  %v15402_v39 = vld [vmem:[#allocation14_spill] sm:$0xff] }
 0x111   : > { %v15389_v7 = vsel %vm15386_vm5, %v15387_v30, %v15388_v41  ;;  %v15396_v0 = vsel %vm15393_vm9, %v15394_v20, %v15395_v24  ;;  %v15403_v23 = vsel %vm15400_vm6, %v15401_v44, %v15402_v39  ;;  %v1862_v30 = vor.u32 %v1860_v59, %v1859_v13  ;;  %v11813_v32 = vld [vmem:[%s15004_s2 + $0x48] sm:$0xff]   ;;  %v15422_v44 = vld [vmem:[#allocation32_spill] sm:$0xff] }
 0x112   : > { %vm13463_vm11 = vcmp.lt.s32.totalorder %v15389_v7, 16  ;;  %vm13472_vm8 = vcmp.lt.s32.totalorder %v15396_v0, 16  ;;  %vm13481_vm1 = vcmp.lt.s32.totalorder %v15403_v23, 16  ;;  %v1837_v7 = vrot.slane %v1833_v14, 4 }
 0x113   : > { %v9874_v22 = vpack.c.bf16 %v1641_v51, %v1641_v51  ;;  %v1639_v37 = vsel %vm13384_vm10, %v726_v63, 0.0  ;;  %v2314_v20 = vsel %vm13446_vm3, %v1836_v60, %v2313_v55  ;;  %v1844_v24 = vor.u32 %v1842_v42, %v1841_v1  ;;  %v10572_v55 = vpop.f32.mrb[8].mxu0 }
 0x114   : > { %v1846_v0 = vrot.slane %v1841_v1, 4  ;;  %v9872_v15 = vpack.c.bf16 %v1639_v37, %v1639_v37  ;;  %vm15406_vm9 = vnez %v15184_v40  ;;  %2315 = vst [vmem:[#allocation2 + $0xc] sm:$0xf] %v2314_v20  ;;  %v1863_v52 = vsel %vm13452_vm4, %v1855_v57, %v1862_v30  ;;  %v563_v63 = vpop.f32.mrb[9].mxu0  ;;  %v11810_v20 = vld [vmem:[%s15004_s2 + $0x40] sm:$0xff]  }
 0x115   : > { %v15407_v19 = vsel %vm15406_vm9, %v12580_v17, %v12516_v8  ;;  %v1864_v14 = vrot.slane %v1859_v13, 4  ;;  %v1884_v59 = vshrl.u32 %v9874_v22, 16  ;;  %v559_v33 = vadd.f32 %v10569_v46, %v13297_v36  ;;  %2318 = vst [vmem:[#allocation2 + $0x18] sm:$0xf] %v1863_v52  ;;  %v10573_v1 = vpop.f32.mrb[10].mxu0  ;;  %10674 = vmatprep.subr.bf16.mxu0 %v11810_v20 }
 0x116   : > { %vm13494_vm5 = vcmp.lt.s32.totalorder %v15407_v19, 16  ;;  %v1845_v40 = vsel %vm13452_vm4, %v1837_v7, %v1844_v24  ;;  %v1854_v8 = vsel %vm13452_vm4, %v1846_v0, %v1853_v27  ;;  %v1887_v17 = vshll.u32 %v9874_v22, 16  ;;  %v566_v22 = vpop.f32.mrb[11].mxu0 }
 0x117   : > { %v1866_v42 = vshrl.u32 %v9872_v15, 16  ;;  %2316 = vst [vmem:[#allocation2 + $0x10] sm:$0xf] %v1845_v40  ;;  %2317 = vst [vmem:[#allocation2 + $0x14] sm:$0xf] %v1854_v8  ;;  %v13505_v60 = vrot.slane %v1884_v59, 7  ;;  %v551_v13 = vadd.f32 %v13297_v36, %v550_v11  ;;  %v572_v46 = vadd.f32 %v10572_v55, %v13297_v36 }
 0x118   : > { %v729_v57 = vmax.f32 %v559_v33, 0.0  ;;  %v1869_v39 = vshll.u32 %v9872_v15, 16  ;;  %v564_v23 = vadd.f32 %v13297_v36, %v563_v63  ;;  %v575_v27 = vadd.f32 %v10573_v1, %v13297_v36 }
 0x119   : > { %v13509_v51 = vrot.slane %v1866_v42, 7  ;;  %v13514_v7 = vor.u32 %v1887_v17, %v13505_v60  ;;  %v1891_v30 = vrot.slane %v13505_v60, 4  ;;  %v727_v11 = vmax.f32 %v551_v13, 0.0  ;;  %v10576_v13 = vpop.f32.mrb[12].mxu0 }
 0x11a   : > { %v1642_v37 = vsel %vm13430_vm12, %v729_v57, 0.0  ;;  %v732_v19 = vmax.f32 %v572_v46, 0.0  ;;  %v730_v59 = vmax.f32 %v564_v23, 0.0  ;;  %v733_v33 = vmax.f32 %v575_v27, 0.0  ;;  %v15411_v46 = vld [vmem:[#allocation22_spill] sm:$0xff]  ;;  %v579_v27 = vpop.f32.mrb[13].mxu0 }
 0x11b   : > { %v1871_v15 = vor.u32 %v1869_v39, %v13509_v51  ;;  %v1873_v24 = vrot.slane %v13509_v51, 4  ;;  %v9875_v0 = vpack.c.bf16 %v1642_v37, %v1642_v37  ;;  %v1640_v52 = vsel %vm13440_vm2, %v727_v11, 0.0  ;;  %v11770_v42 = vld [vmem:[#allocation2 + $0x8] sm:$0xff]  }
 0x11c   : > { %v567_v55 = vadd.f32 %v13297_v36, %v566_v22  ;;  %v9873_v17 = vpack.c.bf16 %v1640_v52, %v1640_v52  ;;  %v1645_v63 = vsel %vm13463_vm11, %v732_v19, 0.0  ;;  %v1643_v29 = vsel %vm13472_vm8, %v730_v59, 0.0  ;;  %10627 = vmatmul.mubr.bf16.vlgmr.msra.gmra.mrb[48].mxu0 %v11770_v42  ;;  %v10577_v59 = vpop.f32.mrb[14].mxu0  ;;  %v15424_v42 = vld [vmem:[#allocation26_spill] sm:$0xff] }
 0x11d   : > { %v1872_v50 = vsel %vm13452_vm4, %v1864_v14, %v1871_v15  ;;  %v1893_v40 = vshrl.u32 %v9875_v0, 16  ;;  %v1896_v8 = vshll.u32 %v9875_v0, 16  ;;  %v1646_v60 = vsel %vm13481_vm1, %v733_v33, 0.0  ;;  %v15412_v14 = vld [vmem:[#allocation18_spill] sm:$0xff]  ;;  %v15417_v15 = vld [vmem:[#allocation24_spill] sm:$0xff]  ;;  %10675 = vmatpush3.bf16.msra.mxu0 %v11810_v20  ;;  %v15429_v20 = vld [vmem:[#allocation33_spill] sm:$0xff] }
 0x11e   : > { %2319 = vst [vmem:[#allocation2 + $0x1c] sm:$0xf] %v1872_v50  ;;  %v731_v57 = vmax.f32 %v567_v55, 0.0  ;;  %vm15410_vm10 = vnez %v15189_v34  ;;  %v1875_v39 = vshrl.u32 %v9873_v17, 16  ;;  %v1878_v23 = vshll.u32 %v9873_v17, 16  ;;  %v15418_v0 = vld [vmem:[#allocation20_spill] sm:$0xff]  ;;  %10676 = vmatprep.subr.bf16.mxu0 %v11813_v32 }
 0x11f   : > { %v15413_v1 = vsel %vm15410_vm10, %v15411_v46, %v15412_v14  ;;  %v1895_v43 = vrot.slane %v1893_v40, 7  ;;  %v9878_v41 = vpack.c.bf16 %v1645_v63, %v1645_v63  ;;  %v9876_v22 = vpack.c.bf16 %v1643_v29, %v1643_v29  ;;  %v11771_v33 = vld [vmem:[#allocation2 + $0x10] sm:$0xff]   ;;  %v15425_v63 = vld [vmem:[#allocation21_spill] sm:$0xff] }
 0x120   : > { %vm13540_vm12 = vcmp.lt.s32.totalorder %v15413_v1, 16  ;;  %v9879_v37 = vpack.c.bf16 %v1646_v60, %v1646_v60  ;;  %v1644_v34 = vsel %vm13494_vm5, %v731_v57, 0.0  ;;  %v588_v11 = vadd.f32 %v10576_v13, %v13297_v36  ;;  %v582_v60 = vpop.f32.mrb[15].mxu0  ;;  %v15432_v1 = vld [vmem:[#allocation23_spill] sm:$0xff]  ;;  %10630 = vmatprep.mubr.bf16.mxu0 %v11771_v33 }
 0x121   : > { %vm15416_vm2 = vnez %v15194_v4  ;;  %v1898_v55 = vor.u32 %v1896_v8, %v1895_v43  ;;  %v1900_v50 = vrot.slane %v1895_v43, 4  ;;  %v1877_v40 = vrot.slane %v1875_v39, 7  ;;  %v15431_v8 = vld [vmem:[#allocation30_spill] sm:$0xff]  ;;  %10677 = vmatpush3.bf16.msra.mxu0 %v11813_v32  ;;  %v15443_v32 = vld [vmem:[#allocation36_spill] sm:$0xff] }
 0x122   : > { %v15419_v19 = vsel %vm15416_vm2, %v15417_v15, %v15418_v0  ;;  %v1920_v17 = vshrl.u32 %v9878_v41, 16  ;;  %vm15423_vm11 = vnez %v15422_v44  ;;  %v1923_v57 = vshll.u32 %v9878_v41, 16 }
 0x123   : > { %vm13555_vm3 = vcmp.lt.s32.totalorder %v15419_v19, 16  ;;  %v15426_v29 = vsel %vm15423_vm11, %v15424_v42, %v15425_v63  ;;  %v1902_v13 = vshrl.u32 %v9876_v22, 16  ;;  %v1905_v46 = vshll.u32 %v9876_v22, 16 }
 0x124   : > { %vm13564_vm8 = vcmp.lt.s32.totalorder %v15426_v29, 16  ;;  %v1929_v14 = vshrl.u32 %v9879_v37, 16  ;;  %vm15430_vm6 = vnez %v15429_v20  ;;  %v1899_v15 = vsel %vm13452_vm4, %v1891_v30, %v1898_v55  ;;  %v15436_v29 = vld [vmem:[#allocation34_spill] sm:$0xff]  ;;  %v15438_v20 = vld [vmem:[#allocation35_spill] sm:$0xff] }
 0x125   : > { %v15433_v43 = vsel %vm15430_vm6, %v15431_v8, %v15432_v1  ;;  %v1880_v0 = vor.u32 %v1878_v23, %v1877_v40  ;;  %v1882_v19 = vrot.slane %v1877_v40, 4  ;;  %v1922_v44 = vrot.slane %v1920_v17, 7  ;;  %2322 = vst [vmem:[#allocation2 + $0x28] sm:$0xf] %v1899_v15  ;;  %v15439_v8 = vld [vmem:[#allocation25_spill] sm:$0xff] }
 0x126   : > { %vm13573_vm1 = vcmp.lt.s32.totalorder %v15433_v43, 16  ;;  %v1904_v41 = vrot.slane %v1902_v13, 7  ;;  %v13579_v22 = vrot.slane %v1929_v14, 7  ;;  %v1932_v42 = vshll.u32 %v9879_v37, 16  ;;  %v10580_v14 = vpop.f32.mrb[16].mxu0  ;;  %v15445_v15 = vld [vmem:[#allocation37_spill] sm:$0xff] }
 0x127   : > { %v9877_v63 = vpack.c.bf16 %v1644_v34, %v1644_v34  ;;  %vm15437_vm9 = vnez %v15436_v29  ;;  %v1881_v30 = vsel %vm13452_vm4, %v1873_v24, %v1880_v0  ;;  %v1890_v23 = vsel %vm13452_vm4, %v1882_v19, %v13514_v7  ;;  %v11774_v34 = vld [vmem:[#allocation2 + $0x18] sm:$0xff]   ;;  %v11816_v7 = vld [vmem:[%s15004_s2 + $0x50] sm:$0xff]  }
 0x128   : > { %v15440_v1 = vsel %vm15437_vm9, %v15438_v20, %v15439_v8  ;;  %v1925_v33 = vor.u32 %v1923_v57, %v1922_v44  ;;  %v1927_v37 = vrot.slane %v1922_v44, 4  ;;  %2320 = vst [vmem:[#allocation2 + $0x20] sm:$0xf] %v1881_v30  ;;  %2321 = vst [vmem:[#allocation2 + $0x24] sm:$0xf] %v1890_v23  ;;  %v1907_v55 = vor.u32 %v1905_v46, %v1904_v41  ;;  %v15446_v24 = vld [vmem:[#allocation27_spill] sm:$0xff] }
 0x129   : > { %vm13586_vm5 = vcmp.lt.s32.totalorder %v15440_v1, 16  ;;  %v1909_v40 = vrot.slane %v1904_v41, 4  ;;  %v1934_v17 = vor.u32 %v1932_v42, %v13579_v22  ;;  %v1936_v13 = vrot.slane %v13579_v22, 4  ;;  %v595_v41 = vpop.f32.mrb[17].mxu0  ;;  %10631 = vmatmul.mubr.bf16.gmra.mrb[52].mxu0 %v11774_v34  ;;  %v11820_v42 = vld [vmem:[%s15004_s2 + $0x58] sm:$0xff]   ;;  %10678 = vmatprep.subr.bf16.mxu0 %v11816_v7 }
 0x12a   : > { %vm15444_vm10 = vnez %v15443_v32  ;;  %v1911_v57 = vshrl.u32 %v9877_v63, 16  ;;  %v1914_v46 = vshll.u32 %v9877_v63, 16  ;;  %v736_v19 = vmax.f32 %v588_v11, 0.0  ;;  %v13619_v63 = vpop.f32.mrb[18].mxu0  ;;  %10679 = vmatpush3.bf16.msra.mxu0 %v11816_v7  ;;  %v11823_v7 = vld [vmem:[%s15004_s2 + $0x60] sm:$0xff]   ;;  %v15471_v29 = vld [vmem:[#allocation47_spill] sm:$0xff] }
 0x12b   : > { %v15447_v0 = vsel %vm15444_vm10, %v15445_v15, %v15446_v24  ;;  %v580_v44 = vadd.f32 %v13297_v36, %v579_v27  ;;  %v1908_v20 = vsel %vm13452_vm4, %v1900_v50, %v1907_v55  ;;  %v1935_v8 = vsel %vm13452_vm4, %v1927_v37, %v1934_v17  ;;  %v13624_v50 = vpop.f32.mrb[19].mxu0  ;;  %10680 = vmatprep.subr.bf16.mxu0 %v11820_v42 }
 0x12c   : > { %vm13602_vm2 = vcmp.lt.s32.totalorder %v15447_v0, 16  ;;  %v591_v1 = vadd.f32 %v10577_v59, %v13297_v36  ;;  %v583_v30 = vadd.f32 %v13297_v36, %v582_v60  ;;  %2323 = vst [vmem:[#allocation2 + $0x2c] sm:$0xf] %v1908_v20  ;;  %2326 = vst [vmem:[#allocation2 + $0x38] sm:$0xf] %v1935_v8  ;;  %v1913_v27 = vrot.slane %v1911_v57, 7 }
 0x12d   : > { %v1649_v11 = vsel %vm13540_vm12, %v736_v19, 0.0  ;;  %v734_v23 = vmax.f32 %v580_v44, 0.0  ;;  %v604_v34 = vadd.f32 %v10580_v14, %v13297_v36  ;;  %v596_v60 = vadd.f32 %v13297_v36, %v595_v41 }
 0x12e   : > { %v9882_v37 = vpack.c.bf16 %v1649_v11, %v1649_v11  ;;  %v737_v55 = vmax.f32 %v591_v1, 0.0  ;;  %v735_v59 = vmax.f32 %v583_v30, 0.0  ;;  %v1916_v17 = vor.u32 %v1914_v46, %v1913_v27  ;;  %10681 = vmatpush3.bf16.msra.mxu0 %v11820_v42  ;;  %v15450_v30 = vld [vmem:[#allocation39_spill] sm:$0xff]  ;;  %v15453_v11 = vld [vmem:[#allocation29_spill] sm:$0xff] }
 0x12f   : > { %v1918_v32 = vrot.slane %v1913_v27, 4  ;;  %v1647_v15 = vsel %vm13555_vm3, %v734_v23, 0.0  ;;  %v740_v24 = vmax.f32 %v604_v34, 0.0  ;;  %v11777_v41 = vld [vmem:[#allocation2 + $0x20] sm:$0xff]   ;;  %vm15451_vm12 = vnez %v15450_v30  ;;  %v15452_v27 = vld [vmem:[#allocation38_spill] sm:$0xff]  ;;  %10682 = vmatprep.subr.bf16.mxu0 %v11823_v7  ;;  %v11834_v23 = vld [vmem:[%s15004_s2 + $0x78] sm:$0xff]  }
 0x130   : > { %v1956_v51 = vshrl.u32 %v9882_v37, 16  ;;  %v1959_v0 = vshll.u32 %v9882_v37, 16  ;;  %v9880_v57 = vpack.c.bf16 %v1647_v15, %v1647_v15  ;;  %v1650_v14 = vsel %vm13564_vm8, %v737_v55, 0.0  ;;  %v15457_v55 = vld [vmem:[#allocation41_spill] sm:$0xff]  ;;  %10634 = vmatprep.mubr.bf16.mxu0 %v11777_v41 }
 0x131   : > { %v1917_v19 = vsel %vm13452_vm4, %v1909_v40, %v1916_v17  ;;  %v1926_v46 = vsel %vm13452_vm4, %v1918_v32, %v1925_v33  ;;  %v9883_v44 = vpack.c.bf16 %v1650_v14, %v1650_v14  ;;  %v1648_v52 = vsel %vm13573_vm1, %v735_v59, 0.0  ;;  %v13649_v33 = vpop.f32.mrb[20].mxu0  ;;  %v15459_v59 = vld [vmem:[#allocation40_spill] sm:$0xff]  ;;  %v15460_v17 = vld [vmem:[#allocation31_spill] sm:$0xff]  ;;  %v15486_v15 = vld [vmem:[#allocation45_spill] sm:$0xff] }
 0x132   : > { %2324 = vst [vmem:[#allocation2 + $0x30] sm:$0xf] %v1917_v19  ;;  %2325 = vst [vmem:[#allocation2 + $0x34] sm:$0xf] %v1926_v46  ;;  %v1958_v4 = vrot.slane %v1956_v51, 7  ;;  %v1938_v20 = vshrl.u32 %v9880_v57, 16  ;;  %v9881_v1 = vpack.c.bf16 %v1648_v52, %v1648_v52  ;;  %v15454_v40 = vsel %vm15451_vm12, %v15452_v27, %v15453_v11  ;;  %10683 = vmatpush3.bf16.msra.mxu0 %v11823_v7 }
 0x133   : > { %v1941_v8 = vshll.u32 %v9880_v57, 16  ;;  %vm13645_vm3 = vcmp.lt.s32.totalorder %v15454_v40, 16  ;;  %v1965_v39 = vshrl.u32 %v9883_v44, 16  ;;  %v1968_v42 = vshll.u32 %v9883_v44, 16  ;;  %v13662_v51 = vpop.f32.mrb[21].mxu0  ;;  %v11781_v30 = vld [vmem:[#allocation2 + $0x28] sm:$0xff]  }
 0x134   : > { %v1653_v34 = vsel %vm13586_vm5, %v740_v24, 0.0  ;;  %v738_v37 = vmax.f32 %v596_v60, 0.0  ;;  %vm15458_vm11 = vnez %v15457_v55  ;;  %v1961_v57 = vor.u32 %v1959_v0, %v1958_v4  ;;  %v13664_v44 = vpop.f32.mrb[22].mxu0  ;;  %v15466_v55 = vld [vmem:[#allocation42_spill] sm:$0xff]  ;;  %10635 = vmatmul.mubr.bf16.gmra.mrb[56].mxu0 %v11781_v30  ;;  %v15493_v7 = vld [vmem:[#allocation48_spill] sm:$0xff] }
 0x135   : > { %v15461_v32 = vsel %vm15458_vm11, %v15459_v59, %v15460_v17  ;;  %v1963_v14 = vrot.slane %v1958_v4, 4  ;;  %v1940_v19 = vrot.slane %v1938_v20, 7  ;;  %v1947_v46 = vshrl.u32 %v9881_v1, 16  ;;  %v13670_v27 = vpop.f32.mrb[23].mxu0  ;;  %v15465_v20 = vld [vmem:[#allocation46_spill] sm:$0xff] }
 0x136   : > { %vm13658_vm8 = vcmp.lt.s32.totalorder %v15461_v32, 16  ;;  %v13666_v43 = vrot.slane %v1965_v39, 7  ;;  %v1950_v60 = vshll.u32 %v9881_v1, 16  ;;  %v9886_v24 = vpack.c.bf16 %v1653_v34, %v1653_v34  ;;  %v15472_v34 = vld [vmem:[#allocation43_spill] sm:$0xff]  ;;  %v13715_v1 = vpop.f32.mrb[24].mxu0 }
 0x137   : > { %v1651_v52 = vsel %vm13602_vm2, %v738_v37, 0.0  ;;  %v1943_v41 = vor.u32 %v1941_v8, %v1940_v19  ;;  %v1945_v11 = vrot.slane %v1940_v19, 4  ;;  %v1949_v40 = vrot.slane %v1947_v46, 7  ;;  %v11775_v46 = vld [vmem:[#allocation2 + $0xc] sm:$0xff]   ;;  %v15490_v39 = vld [vmem:[#allocation59_spill] sm:$0xff] }
 0x138   : > { %v9884_v0 = vpack.c.bf16 %v1651_v52, %v1651_v52  ;;  %v15467_v59 = vsel %vm12896_vm7, %v15465_v20, %v15466_v55  ;;  %v15473_v37 = vsel %vm12912_vm13, %v15471_v29, %v15472_v34  ;;  %v1970_v8 = vor.u32 %v1968_v42, %v13666_v43  ;;  %v11826_v42 = vld [vmem:[%s15004_s2 + $0x68] sm:$0xff]   ;;  %v13721_v34 = vpop.f32.mrb[25].mxu0 }
 0x139   : > { %vm13677_vm6 = vcmp.lt.s32.totalorder %v15467_v59, 16  ;;  %vm13686_vm1 = vcmp.lt.s32.totalorder %v15473_v37, 16  ;;  %v1972_v17 = vrot.slane %v13666_v43, 4  ;;  %v1992_v32 = vshrl.u32 %v9886_v24, 16  ;;  %v13696_v59 = vld [vmem:[#allocation2 + $0x14] sm:$0xff]   ;;  %10684 = vmatprep.subr.bf16.mxu0 %v11826_v42 }
 0x13a   : > { %v1995_v19 = vshll.u32 %v9886_v24, 16  ;;  %v1944_v52 = vsel %vm13452_vm4, %v1936_v13, %v1943_v41  ;;  %v1952_v4 = vor.u32 %v1950_v60, %v1949_v40  ;;  %v1954_v20 = vrot.slane %v1949_v40, 4  ;;  %10685 = vmatpush3.bf16.msra.mxu0 %v11826_v42  ;;  %v15476_v42 = vld [vmem:[#allocation56_spill] sm:$0xff] }
 0x13b   : > { %v1974_v55 = vshrl.u32 %v9884_v0, 16  ;;  %2327 = vst [vmem:[#allocation2 + $0x3c] sm:$0xf] %v1944_v52  ;;  %v1971_v43 = vsel %vm13452_vm4, %v1963_v14, %v1970_v8  ;;  %v13703_v24 = vrot.slane %v1992_v32, 7  ;;  %v1977_v30 = vshll.u32 %v9884_v0, 16  ;;  %v11783_v14 = vld [vmem:[#allocation2 + $0x30] sm:$0xff]  }
 0x13c   : > { %v607_v22 = vadd.f32 %v13619_v63, %v13297_v36  ;;  %vm3189_vm13 = vsmask.f32 7424  ;;  %2330 = vst [vmem:[#allocation2 + $0x48] sm:$0xf] %v1971_v43  ;;  %v1953_v13 = vsel %vm13452_vm4, %v1945_v11, %v1952_v4  ;;  %v1962_v60 = vsel %vm13452_vm4, %v1954_v20, %v1961_v57  ;;  %10638 = vmatprep.mubr.bf16.mxu0 %v11783_v14  ;;  %v13725_v32 = vpop.f32.mrb[26].mxu0  ;;  %v15479_v43 = vld [vmem:[#allocation44_spill] sm:$0xff] }
 0x13d   : > { %v13711_v41 = vrot.slane %v1974_v55, 7  ;;  %v599_v40 = vadd.f32 %v13297_v36, %v13624_v50  ;;  %2328 = vst [vmem:[#allocation2 + $0x40] sm:$0xf] %v1953_v13  ;;  %2329 = vst [vmem:[#allocation2 + $0x44] sm:$0xf] %v1962_v60  ;;  %v13718_v63 = vor.u32 %v1995_v19, %v13703_v24  ;;  %v5323_v29 = vshrl.u32 %v11775_v46, 16 }
 0x13e   : > { %v741_v11 = vmax.f32 %v607_v22, 0.0  ;;  %v5325_v8 = vshll.u32 %v11775_v46, 16  ;;  %v11830_v19 = vld [vmem:[%s15004_s2 + $0x70] sm:$0xff]   ;;  %v5330_v4 = vshll.u32 %v13696_v59, 16  ;;  %v620_v20 = vadd.f32 %v13649_v33, %v13297_v36  ;;  %v15478_v46 = vld [vmem:[#allocation49_spill] sm:$0xff]  ;;  %v13746_v13 = vpop.f32.mrb[27].mxu0 }
 0x13f   : > { %v1979_v57 = vor.u32 %v1977_v30, %v13711_v41  ;;  %v739_v37 = vmax.f32 %v599_v40, 0.0  ;;  %v612_v55 = vadd.f32 %v13297_v36, %v13662_v51  ;;  %vm15477_vm7 = vnez %v15476_v42  ;;  %10686 = vmatprep.subr.bf16.mxu0 %v11830_v19 }
 0x140   : > { %v1654_v52 = vsel %vm13645_vm3, %v741_v11, 0.0  ;;  %v15480_v30 = vsel %vm15477_vm7, %v15478_v46, %v15479_v43  ;;  %v5327_v40 = vrot.slane %v5325_v8, 1  ;;  %v5332_v11 = vrot.slane %v5330_v4, 1  ;;  %v13755_v43 = vld [vmem:[#allocation2 + $0x1c] sm:$0xff]   ;;  %10687 = vmatpush3.bf16.msra.mxu0 %v11830_v19 }
 0x141   : > { %vm13742_vm9 = vcmp.lt.s32.totalorder %v15480_v30, 16  ;;  %v1980_v33 = vsel %vm13452_vm4, %v1972_v17, %v1979_v57  ;;  %v9887_v60 = vpack.c.bf16 %v1654_v52, %v1654_v52  ;;  %v1652_v51 = vsel %vm13658_vm8, %v739_v37, 0.0  ;;  %v15483_v17 = vld [vmem:[#allocation58_spill] sm:$0xff]  ;;  %10688 = vmatprep.subr.bf16.mxu0 %v11834_v23 }
 0x142   : > { %2331 = vst [vmem:[#allocation2 + $0x4c] sm:$0xf] %v1980_v33  ;;  %v9885_v14 = vpack.c.bf16 %v1652_v51, %v1652_v51  ;;  %v744_v42 = vmax.f32 %v620_v20, 0.0  ;;  %v742_v46 = vmax.f32 %v612_v55, 0.0  ;;  %v5328_v0 = vor.u32 %v5327_v40, %v5323_v29  ;;  %v15485_v57 = vld [vmem:[#allocation54_spill] sm:$0xff]  ;;  %v11785_v52 = vld [vmem:[#allocation2 + $0x38] sm:$0xff]  }
 0x143   : > { %v2001_v30 = vshrl.u32 %v9887_v60, 16  ;;  %v2004_v50 = vshll.u32 %v9887_v60, 16  ;;  %v5334_v38 = vshrl.u32 %v13696_v59, 16  ;;  %vm15484_vm5 = vnez %v15483_v17  ;;  %10639 = vmatmul.mubr.bf16.gmra.mrb[60].mxu0 %v11785_v52  ;;  %v13786_v52 = vld [vmem:[#allocation2 + $0x24] sm:$0xff]  }
 0x144   : > { %v15487_v37 = vsel %vm15484_vm5, %v15485_v57, %v15486_v15  ;;  %v1983_v4 = vshrl.u32 %v9885_v14, 16  ;;  %v1986_v20 = vshll.u32 %v9885_v14, 16  ;;  %v1657_v19 = vsel %vm13677_vm6, %v744_v42, 0.0  ;;  %v11787_v51 = vld [vmem:[#allocation2 + $0x40] sm:$0xff]   ;;  %10689 = vmatpush3.bf16.msra.mxu0 %v11834_v23 }
 0x145   : > { %vm13763_vm10 = vcmp.lt.s32.totalorder %v15487_v37, 16  ;;  %v1655_v29 = vsel %vm13686_vm1, %v742_v46, 0.0  ;;  %v2003_v59 = vrot.slane %v2001_v30, 7  ;;  %v5333_v55 = vsel %vm3189_vm13, %v5328_v0, %v5332_v11  ;;  %v15492_v42 = vld [vmem:[#allocation57_spill] sm:$0xff]  ;;  %v13784_v0 = vpop.f32.mrb[28].mxu0  ;;  %10642 = vmatprep.mubr.bf16.mxu0 %v11787_v51 }
 0x146   : > { %v9890_v33 = vpack.c.bf16 %v1657_v19, %v1657_v19  ;;  %v9888_v60 = vpack.c.bf16 %v1655_v29, %v1655_v29  ;;  %v1985_v40 = vrot.slane %v1983_v4, 7  ;;  %10882 = vmatprep.mubr.bf16.mxu1 %v5333_v55  ;;  %v5336_v17 = vor.u32 %v5334_v38, %v5332_v11  ;;  %v15497_v4 = vld [vmem:[#allocation60_spill] sm:$0xff]  ;;  %v15500_v19 = vld [vmem:[#allocation50_spill] sm:$0xff] }
 0x147   : > { %v5338_v57 = vshll.u32 %v13755_v43, 16  ;;  %v623_v14 = vadd.f32 %v13664_v44, %v13297_v36  ;;  %vm15491_vm2 = vnez %v15490_v39  ;;  %v2006_v15 = vor.u32 %v2004_v50, %v2003_v59  ;;  %v15499_v44 = vld [vmem:[#allocation61_spill] sm:$0xff]  ;;  %v13797_v39 = vpop.f32.mrb[29].mxu0 }
 0x148   : > { %v15494_v46 = vsel %vm15491_vm2, %v15492_v42, %v15493_v7  ;;  %v2008_v37 = vrot.slane %v2003_v59, 4  ;;  %v2028_v38 = vshrl.u32 %v9890_v33, 16  ;;  %v2031_v11 = vshll.u32 %v9890_v33, 16  ;;  %v13799_v7 = vpop.f32.mrb[30].mxu0 }
 0x149   : > { %vm13780_vm12 = vcmp.lt.s32.totalorder %v15494_v46, 16  ;;  %vm15498_vm3 = vnez %v15497_v4  ;;  %v1988_v42 = vor.u32 %v1986_v20, %v1985_v40  ;;  %v1990_v23 = vrot.slane %v1985_v40, 4 }
 0x14a   : > { %v15501_v29 = vsel %vm15498_vm3, %v15499_v44, %v15500_v19  ;;  %v2010_v50 = vshrl.u32 %v9888_v60, 16  ;;  %v2013_v59 = vshll.u32 %v9888_v60, 16  ;;  %v15504_v33 = vrot.slane %v13703_v24, 4 }
 0x14b   : > { %vm13793_vm11 = vcmp.lt.s32.totalorder %v15501_v29, 16  ;;  %v13805_v4 = vrot.slane %v2028_v38, 7  ;;  %v5340_v44 = vrot.slane %v5338_v57, 1  ;;  %v745_v19 = vmax.f32 %v623_v14, 0.0  ;;  %v11790_v29 = vld [vmem:[#allocation2 + $0x48] sm:$0xff]   ;;  %v13823_v14 = vpop.f32.mrb[31].mxu0 }
 0x14c   : > { %v2007_v46 = vsel %vm13452_vm4, %v15504_v33, %v2006_v15  ;;  %v15505_v51 = vrot.slane %v13711_v41, 4  ;;  %v1998_v60 = vsel %vm13452_vm4, %v1990_v23, %v13718_v63  ;;  %v13814_v40 = vrot.slane %v2010_v50, 7  ;;  %v13818_v15 = vld [vmem:[#allocation2 + $0x2c] sm:$0xff]   ;;  %10643 = vmatmul.mubr.bf16.gmra.mrb[64].mxu0 %v11790_v29 }
 0x14d   : > { %2334 = vst [vmem:[#allocation2 + $0x58] sm:$0xf] %v2007_v46  ;;  %v615_v24 = vadd.f32 %v13297_v36, %v13670_v27  ;;  %v11788_v57 = vld [vmem:[%s15004_s2 + $0x148] sm:$0xff]   ;;  %2333 = vst [vmem:[#allocation2 + $0x54] sm:$0xf] %v1998_v60  ;;  %v13826_v41 = vor.u32 %v2031_v11, %v13805_v4  ;;  %v2035_v63 = vrot.slane %v13805_v4, 4  ;;  %v5341_v38 = vsel %vm3189_vm13, %v5336_v17, %v5340_v44 }
 0x14e   : > { %v1989_v20 = vsel %vm13452_vm4, %v15505_v51, %v1988_v42  ;;  %v1658_v27 = vsel %vm13742_vm9, %v745_v19, 0.0  ;;  %v2015_v42 = vor.u32 %v2013_v59, %v13814_v40  ;;  %10883 = vmatmul.mubr.bf16.vlgmr.msra.gmra.mrb[0].mxu1 %v5341_v38  ;;  %v12050_v46 = vld [vmem:[%s15004_s2 + $0x140] sm:$0xff]   ;;  %v5342_v11 = vshrl.u32 %v13755_v43, 16  ;;  %v15506_v59 = vld [vmem:[#allocation62_spill] sm:$0xff]  ;;  %v15508_v19 = vld [vmem:[#allocation63_spill] sm:$0xff] }
 0x14f   : > { %2332 = vst [vmem:[#allocation2 + $0x50] sm:$0xf] %v1989_v20  ;;  %v9891_v50 = vpack.c.bf16 %v1658_v27, %v1658_v27  ;;  %v743_v33 = vmax.f32 %v615_v24, 0.0  ;;  %10931 = vmatpush3.bf16.msra.mxu1 %v12050_v46  ;;  %v5346_v4 = vshll.u32 %v13786_v52, 16  ;;  %v636_v22 = vadd.f32 %v13715_v1, %v13297_v36  ;;  %v15509_v51 = vld [vmem:[#allocation51_spill] sm:$0xff]  ;;  %v13852_v24 = vpop.f32.mrb[32].mxu0 }
 0x150   : > { %v628_v17 = vadd.f32 %v13297_v36, %v13721_v34  ;;  %vm15507_vm8 = vnez %v15506_v59  ;;  %v2016_v43 = vsel %vm13452_vm4, %v2008_v37, %v2015_v42  ;;  %10932 = vmatprep.subr.bf16.mxu1 %v11788_v57  ;;  %v11793_v27 = vld [vmem:[%s15004_s2 + $0x150] sm:$0xff]   ;;  %v13861_v46 = vpop.f32.mrb[33].mxu0  ;;  %v5344_v29 = vor.u32 %v5342_v11, %v5340_v44  ;;  %v15515_v37 = vld [vmem:[#allocation64_spill] sm:$0xff] }
 0x151   : > { %v15510_v20 = vsel %vm15507_vm8, %v15508_v19, %v15509_v51  ;;  %v2037_v38 = vshrl.u32 %v9891_v50, 16  ;;  %v2040_v1 = vshll.u32 %v9891_v50, 16  ;;  %v1656_v34 = vsel %vm13763_vm10, %v743_v33, 0.0  ;;  %2335 = vst [vmem:[#allocation2 + $0x5c] sm:$0xf] %v2016_v43  ;;  %v15516_v42 = vld [vmem:[#allocation52_spill] sm:$0xff] }
 0x152   : > { %vm13848_vm6 = vcmp.lt.s32.totalorder %v15510_v20, 16  ;;  %v9889_v59 = vpack.c.bf16 %v1656_v34, %v1656_v34  ;;  %v5348_v19 = vrot.slane %v5346_v4, 1  ;;  %v748_v51 = vmax.f32 %v636_v22, 0.0  ;;  %v15513_v20 = vld [vmem:[#allocation66_spill] sm:$0xff]  ;;  %v13872_v33 = vpop.f32.mrb[34].mxu0 }
 0x153   : > { %vm15514_vm1 = vnez %v15513_v20  ;;  %v13874_v23 = vrot.slane %v2037_v38, 7  ;;  %v746_v12 = vmax.f32 %v628_v17, 0.0  ;;  %v5350_v43 = vshrl.u32 %v13786_v52, 16  ;;  %v13878_v11 = vpop.f32.mrb[35].mxu0  ;;  %10933 = vmatpush3.bf16.msra.mxu1 %v11788_v57  ;;  %v11802_v38 = vld [vmem:[%s15004_s2 + $0x158] sm:$0xff]  }
 0x154   : > { %v15517_v50 = vsel %vm15514_vm1, %v15515_v37, %v15516_v42  ;;  %v5354_v44 = vshll.u32 %v13818_v15, 16  ;;  %v2019_v4 = vshrl.u32 %v9889_v59, 16  ;;  %v2022_v22 = vshll.u32 %v9889_v59, 16  ;;  %10934 = vmatprep.subr.bf16.mxu1 %v11793_v27 }
 0x155   : > { %vm13868_vm7 = vcmp.lt.s32.totalorder %v15517_v50, 16  ;;  %v5349_v34 = vsel %vm3189_vm13, %v5344_v29, %v5348_v19  ;;  %v1661_v20 = vsel %vm13780_vm12, %v748_v51, 0.0  ;;  %v2042_v17 = vor.u32 %v2040_v1, %v13874_v23  ;;  %v11827_v51 = vld [vmem:[%s15004_s2 + $0x170] sm:$0xff]  }
 0x156   : > { %v2044_v52 = vrot.slane %v13874_v23, 4  ;;  %10886 = vmatprep.mubr.bf16.mxu1 %v5349_v34  ;;  %v9894_v37 = vpack.c.bf16 %v1661_v20, %v1661_v20  ;;  %v1659_v42 = vsel %vm13793_vm11, %v746_v12, 0.0  ;;  %v2021_v59 = vrot.slane %v2019_v4, 7  ;;  %v11792_v23 = vld [vmem:[#allocation2 + $0x50] sm:$0xff]  }
 0x157   : > { %v9892_v29 = vpack.c.bf16 %v1659_v42, %v1659_v42  ;;  %v5352_v50 = vor.u32 %v5350_v43, %v5348_v19  ;;  %v5356_v30 = vrot.slane %v5354_v44, 1  ;;  %vm15520_vm9 = vnez %v15277_v62  ;;  %v11786_v4 = vld [vmem:[#allocation2 + $0x34] sm:$0xff]   ;;  %10646 = vmatprep.mubr.bf16.mxu0 %v11792_v23  ;;  %10935 = vmatpush3.bf16.msra.mxu1 %v11793_v27 }
 0x158   : > { %v15521_v57 = vsel %vm15520_vm9, %v13068_v5, %v13011_v21  ;;  %vm15524_vm10 = vnez %v15279_v54  ;;  %v2043_v62 = vsel %vm13452_vm4, %v2035_v63, %v2042_v17  ;;  %v2064_v1 = vshrl.u32 %v9894_v37, 16  ;;  %v11795_v27 = vld [vmem:[#allocation2 + $0x58] sm:$0xff]   ;;  %10936 = vmatprep.subr.bf16.mxu1 %v11802_v38 }
 0x159   : > { %vm13895_vm5 = vcmp.lt.s32.totalorder %v15521_v57, 16  ;;  %v15525_v55 = vsel %vm15524_vm10, %v13081_v18, %v13014_v47  ;;  %v2067_v19 = vshll.u32 %v9894_v37, 16  ;;  %v639_v5 = vadd.f32 %v13725_v32, %v13297_v36  ;;  %2338 = vst [vmem:[#allocation2 + $0x68] sm:$0xf] %v2043_v62  ;;  %v13912_v47 = vpop.f32.mrb[36].mxu0  ;;  %v11807_v18 = vld [vmem:[%s15004_s2 + $0x160] sm:$0xff]   ;;  %10647 = vmatmul.mubr.bf16.gmra.mrb[68].mxu0 %v11795_v27 }
 0x15a   : > { %vm13904_vm2 = vcmp.lt.s32.totalorder %v15525_v55, 16  ;;  %v2024_v21 = vor.u32 %v2022_v22, %v2021_v59  ;;  %v2026_v43 = vrot.slane %v2021_v59, 4  ;;  %v2046_v54 = vshrl.u32 %v9892_v29, 16  ;;  %v13923_v36 = vld [vmem:[%s15005_s3] ss:$0 sm:$0xff]  ;;  %v13927_v22 = vpop.f32.mrb[37].mxu0 }
 0x15b   : > { %v2049_v44 = vshll.u32 %v9892_v29, 16  ;;  %v13917_v63 = vrot.slane %v2064_v1, 7  ;;  %v5357_v34 = vsel %vm3189_vm13, %v5352_v50, %v5356_v30  ;;  %v749_v20 = vmax.f32 %v639_v5, 0.0  ;;  %v13939_v50 = vpop.f32.mrb[38].mxu0  ;;  %v13954_v5 = vld [vmem:[#allocation2 + $0x3c] sm:$0xff]   ;;  %10937 = vmatpush3.bf16.msra.mxu1 %v11802_v38 }
 0x15c   : > { %v631_v32 = vadd.f32 %v13923_v36, %v13746_v13  ;;  %v15528_v17 = vrot.slane %v13814_v40, 4  ;;  %v2034_v42 = vsel %vm13452_vm4, %v2026_v43, %v13826_v41  ;;  %v13936_v59 = vrot.slane %v2046_v54, 7  ;;  %10887 = vmatmul.mubr.bf16.gmra.mrb[4].mxu1 %v5357_v34  ;;  %v13947_v41 = vpop.f32.mrb[39].mxu0  ;;  %10938 = vmatprep.subr.bf16.mxu1 %v11807_v18 }
 0x15d   : > { %v5358_v29 = vshrl.u32 %v13818_v15, 16  ;;  %2337 = vst [vmem:[#allocation2 + $0x64] sm:$0xf] %v2034_v42  ;;  %v13942_v13 = vor.u32 %v2067_v19, %v13917_v63  ;;  %v2071_v40 = vrot.slane %v13917_v63, 4  ;;  %v1662_v57 = vsel %vm13848_vm6, %v749_v20, 0.0  ;;  %v11819_v15 = vld [vmem:[%s15004_s2 + $0x168] sm:$0xff]  }
 0x15e   : > { %v2025_v37 = vsel %vm13452_vm4, %v15528_v17, %v2024_v21  ;;  %v747_v55 = vmax.f32 %v631_v32, 0.0  ;;  %v2051_v23 = vor.u32 %v2049_v44, %v13936_v59  ;;  %v2053_v62 = vrot.slane %v13936_v59, 4 }
 0x15f   : > { %2336 = vst [vmem:[#allocation2 + $0x60] sm:$0xf] %v2025_v37  ;;  %v9895_v1 = vpack.c.bf16 %v1662_v57, %v1662_v57  ;;  %v5360_v19 = vor.u32 %v5358_v29, %v5356_v30  ;;  %v5362_v21 = vshll.u32 %v11786_v4, 16  ;;  %v652_v43 = vadd.f32 %v13923_v36, %v13784_v0  ;;  %10939 = vmatpush3.bf16.msra.mxu1 %v11807_v18  ;;  %v13999_v29 = vpop.f32.mrb[40].mxu0 }
 0x160   : > { %v1660_v60 = vsel %vm13868_vm7, %v747_v55, 0.0  ;;  %v644_v54 = vadd.f32 %v13923_v36, %v13797_v39  ;;  %vm15529_vm12 = vnez %v15281_v25  ;;  %v2052_v8 = vsel %vm13452_vm4, %v2044_v52, %v2051_v23  ;;  %10940 = vmatprep.subr.bf16.mxu1 %v11819_v15 }
 0x161   : > { %v15530_v44 = vsel %vm15529_vm12, %v13092_v45, %v13021_v3  ;;  %v2073_v38 = vshrl.u32 %v9895_v1, 16  ;;  %v2076_v63 = vshll.u32 %v9895_v1, 16  ;;  %v9893_v34 = vpack.c.bf16 %v1660_v60, %v1660_v60  ;;  %2339 = vst [vmem:[#allocation2 + $0x6c] sm:$0xf] %v2052_v8  ;;  %v14010_v1 = vld [vmem:[#allocation2 + $0x44] sm:$0xff]   ;;  %v14012_v60 = vpop.f32.mrb[41].mxu0 }
 0x162   : > { %vm13967_vm3 = vcmp.lt.s32.totalorder %v15530_v44, 16  ;;  %vm15533_vm11 = vnez %v15284_v10  ;;  %v5364_v3 = vrot.slane %v5362_v21, 1  ;;  %v752_v45 = vmax.f32 %v652_v43, 0.0  ;;  %v14016_v8 = vpop.f32.mrb[42].mxu0 }
 0x163   : > { %v15534_v0 = vsel %vm15533_vm11, %v13095_v16, %v13027_v49  ;;  %v750_v39 = vmax.f32 %v644_v54, 0.0  ;;  %v5366_v20 = vshrl.u32 %v11786_v4, 16  ;;  %v13982_v32 = vrot.slane %v2073_v38, 7  ;;  %10941 = vmatpush3.bf16.msra.mxu1 %v11819_v15  ;;  %v14031_v15 = vpop.f32.mrb[43].mxu0 }
 0x164   : > { %vm13978_vm8 = vcmp.lt.s32.totalorder %v15534_v0, 16  ;;  %v2055_v52 = vshrl.u32 %v9893_v34, 16  ;;  %v2058_v27 = vshll.u32 %v9893_v34, 16  ;;  %v5370_v17 = vshll.u32 %v13954_v5, 16  ;;  %10942 = vmatprep.subr.bf16.mxu1 %v11827_v51 }
 0x165   : > { %v5365_v10 = vsel %vm3189_vm13, %v5360_v19, %v5364_v3  ;;  %v1665_v16 = vsel %vm13895_vm5, %v752_v45, 0.0  ;;  %v1663_v49 = vsel %vm13904_vm2, %v750_v39, 0.0  ;;  %v5368_v37 = vor.u32 %v5366_v20, %v5364_v3 }
 0x166   : > { %vm15537_vm6 = vnez %v15292_v6  ;;  %v2078_v12 = vor.u32 %v2076_v63, %v13982_v32  ;;  %v2080_v18 = vrot.slane %v13982_v32, 4  ;;  %v2057_v57 = vrot.slane %v2055_v52, 7  ;;  %10890 = vmatprep.mubr.bf16.mxu1 %v5365_v10  ;;  %v11797_v19 = vld [vmem:[#allocation2 + $0x60] sm:$0xff]  }
 0x167   : > { %v15538_v4 = vsel %vm15537_vm6, %v13147_v9, %v13111_v26  ;;  %v9898_v6 = vpack.c.bf16 %v1665_v16, %v1665_v16  ;;  %v9896_v55 = vpack.c.bf16 %v1663_v49, %v1663_v49  ;;  %v5372_v26 = vrot.slane %v5370_v17, 1  ;;  %10650 = vmatprep.mubr.bf16.mxu0 %v11797_v19  ;;  %v14054_v17 = vpop.f32.mrb[44].mxu0  ;;  %10943 = vmatpush3.bf16.msra.mxu1 %v11827_v51  ;;  %v15552_v51 = vld [vmem:[#allocation68_spill] sm:$0xff] }
 0x168   : > { %vm13995_vm1 = vcmp.lt.s32.totalorder %v15538_v4, 16  ;;  %v655_v9 = vadd.f32 %v13923_v36, %v13799_v7  ;;  %v647_v23 = vadd.f32 %v13923_v36, %v13823_v14  ;;  %v2079_v21 = vsel %vm13452_vm4, %v2071_v40, %v2078_v12  ;;  %v11839_v7 = vld [vmem:[%s15004_s2 + $0x178] sm:$0xff]   ;;  %v14078_v25 = vpop.f32.mrb[45].mxu0 }
 0x169   : > { %v2060_v43 = vor.u32 %v2058_v27, %v2057_v57  ;;  %v2062_v54 = vrot.slane %v2057_v57, 4  ;;  %v2100_v44 = vshrl.u32 %v9898_v6, 16  ;;  %2342 = vst [vmem:[#allocation2 + $0x78] sm:$0xf] %v2079_v21  ;;  %v2103_v14 = vshll.u32 %v9898_v6, 16  ;;  %v15551_v4 = vld [vmem:[#allocation72_spill] sm:$0xff]  ;;  %10944 = vmatprep.subr.bf16.mxu1 %v11839_v7 }
 0x16a   : > { %v2082_v38 = vshrl.u32 %v9896_v55, 16  ;;  %v2085_v63 = vshll.u32 %v9896_v55, 16  ;;  %v5373_v34 = vsel %vm3189_vm13, %v5368_v37, %v5372_v26  ;;  %vm15541_vm7 = vnez %v15294_v56 }
 0x16b   : > { %v15542_v40 = vsel %vm15541_vm7, %v13164_v53, %v13137_v58  ;;  %v2061_v3 = vsel %vm13452_vm4, %v2053_v62, %v2060_v43  ;;  %v2070_v56 = vsel %vm13452_vm4, %v2062_v54, %v13942_v13  ;;  %v14040_v45 = vrot.slane %v2100_v44, 7  ;;  %10891 = vmatmul.mubr.bf16.gmra.mrb[8].mxu1 %v5373_v34  ;;  %v11799_v53 = vld [vmem:[#allocation2 + $0x68] sm:$0xff]  }
 0x16c   : > { %vm14027_vm9 = vcmp.lt.s32.totalorder %v15542_v40, 16  ;;  %v753_v58 = vmax.f32 %v655_v9, 0.0  ;;  %2340 = vst [vmem:[#allocation2 + $0x70] sm:$0xf] %v2061_v3  ;;  %2341 = vst [vmem:[#allocation2 + $0x74] sm:$0xf] %v2070_v56  ;;  %v668_v27 = vadd.f32 %v13923_v36, %v13852_v24  ;;  %10651 = vmatmul.mubr.bf16.gmra.mrb[72].mxu0 %v11799_v53  ;;  %vm15545_vm5 = vnez %v15301_v61  ;;  %10945 = vmatpush3.bf16.msra.mxu1 %v11839_v7 }
 0x16d   : > { %v14042_v39 = vrot.slane %v2082_v38, 7  ;;  %v751_v20 = vmax.f32 %v647_v23, 0.0  ;;  %v5374_v32 = vshrl.u32 %v13954_v5, 16  ;;  %v5378_v59 = vshll.u32 %v14010_v1, 16  ;;  %v15549_v24 = vld [vmem:[#allocation74_spill] sm:$0xff]  ;;  %v14085_v23 = vpop.f32.mrb[46].mxu0 }
 0x16e   : > { %v14047_v62 = vor.u32 %v2103_v14, %v14040_v45  ;;  %v2107_v52 = vrot.slane %v14040_v45, 4  ;;  %v1666_v13 = vsel %vm13967_vm3, %v753_v58, 0.0  ;;  %v15546_v30 = vsel %vm15545_vm5, %v13191_v31, %v13143_v35  ;;  %v11845_v35 = vld [vmem:[%s15004_s2 + $0x180] sm:$0xff]   ;;  %v14083_v9 = vld [vmem:[#allocation2 + $0x4c] sm:$0xff]   ;;  %v14091_v44 = vpop.f32.mrb[47].mxu0 }
 0x16f   : > { %v2087_v10 = vor.u32 %v2085_v63, %v14042_v39  ;;  %v2089_v5 = vrot.slane %v14042_v39, 4  ;;  %v9899_v16 = vpack.c.bf16 %v1666_v13, %v1666_v13  ;;  %v1664_v49 = vsel %vm13978_vm8, %v751_v20, 0.0  ;;  %10994 = vmatprep.subr.bf16.mxu1 %v11845_v35 }
 0x170   : > { %vm14065_vm10 = vcmp.lt.s32.totalorder %v15546_v30, 16  ;;  %vm15550_vm2 = vnez %v15549_v24  ;;  %v9897_v31 = vpack.c.bf16 %v1664_v49, %v1664_v49  ;;  %v5376_v61 = vor.u32 %v5374_v32, %v5372_v26  ;;  %v15563_v49 = vld [vmem:[#allocation76_spill] sm:$0xff]  ;;  %v15564_v30 = vld [vmem:[#allocation70_spill] sm:$0xff] }
 0x171   : > { %v15553_v12 = vsel %vm15550_vm2, %v15551_v4, %v15552_v51  ;;  %v5380_v6 = vrot.slane %v5378_v59, 1  ;;  %v756_v55 = vmax.f32 %v668_v27, 0.0  ;;  %v2088_v19 = vsel %vm13452_vm4, %v2080_v18, %v2087_v10  ;;  %v11796_v10 = vld [vmem:[#allocation2 + $0x54] sm:$0xff]  }
 0x172   : > { %vm14074_vm12 = vcmp.lt.s32.totalorder %v15553_v12, 16  ;;  %v2109_v21 = vshrl.u32 %v9899_v16, 16  ;;  %v2112_v43 = vshll.u32 %v9899_v16, 16  ;;  %v660_v54 = vadd.f32 %v13923_v36, %v13861_v46  ;;  %2343 = vst [vmem:[#allocation2 + $0x7c] sm:$0xf] %v2088_v19  ;;  %v15561_v16 = vld [vmem:[#allocation78_spill] sm:$0xff] }
 0x173   : > { %v2091_v14 = vshrl.u32 %v9897_v31, 16  ;;  %v2094_v38 = vshll.u32 %v9897_v31, 16  ;;  %v5381_v26 = vsel %vm3189_vm13, %v5376_v61, %v5380_v6  ;;  %v1669_v63 = vsel %vm13995_vm1, %v756_v55, 0.0  ;;  %v11801_v59 = vld [vmem:[#allocation2 + $0x70] sm:$0xff]  }
 0x174   : > { %v14096_v34 = vrot.slane %v2109_v21, 7  ;;  %10894 = vmatprep.mubr.bf16.mxu1 %v5381_v26  ;;  %v9902_v18 = vpack.c.bf16 %v1669_v63, %v1669_v63  ;;  %v754_v40 = vmax.f32 %v660_v54, 0.0  ;;  %v5382_v3 = vshrl.u32 %v14010_v1, 16  ;;  %v15557_v1 = vld [vmem:[#allocation69_spill] sm:$0xff]  ;;  %10654 = vmatprep.mubr.bf16.mxu0 %v11801_v59 }
 0x175   : > { %v2093_v46 = vrot.slane %v2091_v14, 7  ;;  %v5386_v56 = vshll.u32 %v14083_v9, 16  ;;  %v671_v45 = vadd.f32 %v13923_v36, %v13872_v33  ;;  %v663_v58 = vadd.f32 %v13923_v36, %v13878_v11  ;;  %v14143_v14 = vld [vmem:[#allocation2 + $0x5c] sm:$0xff]  }
 0x176   : > { %v2114_v42 = vor.u32 %v2112_v43, %v14096_v34  ;;  %v2116_v7 = vrot.slane %v14096_v34, 4  ;;  %v2136_v53 = vshrl.u32 %v9902_v18, 16  ;;  %v2139_v39 = vshll.u32 %v9902_v18, 16 }
 0x177   : > { %vm15556_vm3 = vnez %v15319_v48  ;;  %v2096_v33 = vor.u32 %v2094_v38, %v2093_v46  ;;  %v2098_v13 = vrot.slane %v2093_v46, 4  ;;  %v1667_v11 = vsel %vm14027_vm9, %v754_v40, 0.0  ;;  %v15569_v46 = vld [vmem:[#allocation80_spill] sm:$0xff] }
 0x178   : > { %v15558_v20 = vsel %vm15556_vm3, %v13236_v2, %v15557_v1  ;;  %v5384_v27 = vor.u32 %v5382_v3, %v5380_v6  ;;  %vm15562_vm8 = vnez %v15561_v16  ;;  %v2115_v2 = vsel %vm13452_vm4, %v2107_v52, %v2114_v42 }
 0x179   : > { %vm14111_vm11 = vcmp.lt.s32.totalorder %v15558_v20, 16  ;;  %v15565_v48 = vsel %vm15562_vm8, %v15563_v49, %v15564_v30  ;;  %v14128_v4 = vrot.slane %v2136_v53, 7  ;;  %v9900_v51 = vpack.c.bf16 %v1667_v11, %v1667_v11  ;;  %2346 = vst [vmem:[#allocation2 + $0x88] sm:$0xf] %v2115_v2  ;;  %v11804_v21 = vld [vmem:[#allocation2 + $0x78] sm:$0xff]  }
 0x17a   : > { %vm14122_vm6 = vcmp.lt.s32.totalorder %v15565_v48, 16  ;;  %v5388_v12 = vrot.slane %v5386_v56, 1  ;;  %v2097_v0 = vsel %vm13452_vm4, %v2089_v5, %v2096_v33  ;;  %v2106_v35 = vsel %vm13452_vm4, %v2098_v13, %v14047_v62  ;;  %10655 = vmatmul.mubr.bf16.gmra.mrb[76].mxu0 %v11804_v21  ;;  %v15576_v13 = vld [vmem:[#allocation73_spill] sm:$0xff] }
 0x17b   : > { %v757_v31 = vmax.f32 %v671_v45, 0.0  ;;  %v755_v61 = vmax.f32 %v663_v58, 0.0  ;;  %2344 = vst [vmem:[#allocation2 + $0x80] sm:$0xf] %v2097_v0  ;;  %2345 = vst [vmem:[#allocation2 + $0x84] sm:$0xf] %v2106_v35  ;;  %v2141_v6 = vor.u32 %v2139_v39, %v14128_v4  ;;  %v684_v40 = vadd.f32 %v13923_v36, %v13912_v47 }
 0x17c   : > { %v2143_v52 = vrot.slane %v14128_v4, 4  ;;  %v2118_v55 = vshrl.u32 %v9900_v51, 16  ;;  %v2121_v19 = vshll.u32 %v9900_v51, 16  ;;  %v5389_v43 = vsel %vm3189_vm13, %v5384_v27, %v5388_v12  ;;  %v15581_v0 = vld [vmem:[#allocation85_spill] sm:$0xff]  ;;  %v15582_v35 = vld [vmem:[#allocation83_spill] sm:$0xff] }
 0x17d   : > { %v1670_v5 = vsel %vm14065_vm10, %v757_v31, 0.0  ;;  %v1668_v54 = vsel %vm14074_vm12, %v755_v61, 0.0  ;;  %v5390_v62 = vshrl.u32 %v14083_v9, 16  ;;  %10895 = vmatmul.mubr.bf16.gmra.mrb[12].mxu1 %v5389_v43  ;;  %v5394_v34 = vshll.u32 %v11796_v10, 16  ;;  %v15570_v9 = vld [vmem:[#allocation71_spill] sm:$0xff]  ;;  %v14184_v43 = vld [vmem:[#allocation2 + $0x64] sm:$0xff]  }
 0x17e   : > { %v2120_v38 = vrot.slane %v2118_v55, 7  ;;  %v9903_v26 = vpack.c.bf16 %v1670_v5, %v1670_v5  ;;  %v9901_v63 = vpack.c.bf16 %v1668_v54, %v1668_v54  ;;  %v676_v37 = vadd.f32 %v13923_v36, %v13927_v22  ;;  %v15575_v22 = vld [vmem:[#allocation81_spill] sm:$0xff] }
 0x17f   : > { %v5392_v18 = vor.u32 %v5390_v62, %v5388_v12  ;;  %v5398_v3 = vshrl.u32 %v11796_v10, 16  ;;  %v15571_v56 = vsel %vm13303_vm0, %v15569_v46, %v15570_v9  ;;  %v5396_v47 = vrot.slane %v5394_v34, 1  ;;  %v15589_v34 = vld [vmem:[#allocation87_spill] sm:$0xff] }
 0x180   : > { %vm14154_vm1 = vcmp.lt.s32.totalorder %v15571_v56, 16  ;;  %v2123_v58 = vor.u32 %v2121_v19, %v2120_v38  ;;  %v2125_v42 = vrot.slane %v2120_v38, 4  ;;  %v2145_v53 = vshrl.u32 %v9903_v26, 16 }
 0x181   : > { %v2148_v39 = vshll.u32 %v9903_v26, 16  ;;  %v2127_v1 = vshrl.u32 %v9901_v63, 16  ;;  %v2130_v20 = vshll.u32 %v9901_v63, 16  ;;  %v760_v59 = vmax.f32 %v684_v40, 0.0  ;;  %v15586_v26 = vld [vmem:[#allocation90_spill] sm:$0xff]  ;;  %v15588_v63 = vld [vmem:[#allocation89_spill] sm:$0xff] }
 0x182   : > { %v15577_v11 = vsel %vm13329_vm14, %v15575_v22, %v15576_v13  ;;  %v2124_v10 = vsel %vm13452_vm4, %v2116_v7, %v2123_v58  ;;  %v2147_v16 = vrot.slane %v2145_v53, 7  ;;  %v758_v49 = vmax.f32 %v676_v37, 0.0  ;;  %v11806_v32 = vld [vmem:[#allocation2 + $0x80] sm:$0xff]  }
 0x183   : > { %vm14163_vm7 = vcmp.lt.s32.totalorder %v15577_v11, 16  ;;  %v5402_v30 = vshll.u32 %v14143_v14, 16  ;;  %2347 = vst [vmem:[#allocation2 + $0x8c] sm:$0xf] %v2124_v10  ;;  %v2129_v48 = vrot.slane %v2127_v1, 7  ;;  %v5397_v2 = vsel %vm3189_vm13, %v5392_v18, %v5396_v47  ;;  %10658 = vmatprep.mubr.bf16.mxu0 %v11806_v32 }
 0x184   : > { %v1673_v4 = vsel %vm14111_vm11, %v760_v59, 0.0  ;;  %v5400_v51 = vor.u32 %v5398_v3, %v5396_v47  ;;  %v15583_v31 = vsel %vm13371_vm15, %v15581_v0, %v15582_v35  ;;  %v2150_v7 = vor.u32 %v2148_v39, %v2147_v16  ;;  %10898 = vmatprep.mubr.bf16.mxu1 %v5397_v2 }
 0x185   : > { %vm14178_vm0 = vcmp.lt.s32.totalorder %v15583_v31, 16  ;;  %v2152_v55 = vrot.slane %v2147_v16, 4  ;;  %v9906_v19 = vpack.c.bf16 %v1673_v4, %v1673_v4  ;;  %v1671_v21 = vsel %vm14122_vm6, %v758_v49, 0.0 }
 0x186   : > { %v2132_v5 = vor.u32 %v2130_v20, %v2129_v48  ;;  %v2134_v54 = vrot.slane %v2129_v48, 4  ;;  %v9904_v62 = vpack.c.bf16 %v1671_v21, %v1671_v21  ;;  %v5404_v38 = vrot.slane %v5402_v30, 1  ;;  %v14216_v48 = vld [vmem:[#allocation2 + $0x6c] sm:$0xff]  }
 0x187   : > { %vm15587_vm15 = vnez %v15586_v26  ;;  %v2151_v24 = vsel %vm13452_vm4, %v2143_v52, %v2150_v7  ;;  %v2172_v37 = vshrl.u32 %v9906_v19, 16  ;;  %v2175_v3 = vshll.u32 %v9906_v19, 16 }
 0x188   : > { %v15590_v18 = vsel %vm15587_vm15, %v15588_v63, %v15589_v34  ;;  %v687_v57 = vadd.f32 %v13923_v36, %v13939_v50  ;;  %2350 = vst [vmem:[#allocation2 + $0x98] sm:$0xf] %v2151_v24  ;;  %v2133_v46 = vsel %vm13452_vm4, %v2125_v42, %v2132_v5  ;;  %v2142_v9 = vsel %vm13452_vm4, %v2134_v54, %v2141_v6 }
 0x189   : > { %vm14191_vm14 = vcmp.lt.s32.totalorder %v15590_v18, 16  ;;  %v2154_v56 = vshrl.u32 %v9904_v62, 16  ;;  %v2157_v58 = vshll.u32 %v9904_v62, 16  ;;  %2348 = vst [vmem:[#allocation2 + $0x90] sm:$0xf] %v2133_v46  ;;  %v2174_v53 = vrot.slane %v2172_v37, 7 }
 0x18a   : > { %2349 = vst [vmem:[#allocation2 + $0x94] sm:$0xf] %v2142_v9  ;;  %v5405_v52 = vsel %vm3189_vm13, %v5400_v51, %v5404_v38  ;;  %v761_v39 = vmax.f32 %v687_v57, 0.0  ;;  %v679_v1 = vadd.f32 %v13923_v36, %v13947_v41  ;;  %v5406_v20 = vshrl.u32 %v14143_v14, 16  ;;  %v11809_v22 = vld [vmem:[#allocation2 + $0x88] sm:$0xff]   ;;  %v14233_v18 = vld [vmem:[#allocation2 + $0x74] sm:$0xff]  }
 0x18b   : > { %v2156_v50 = vrot.slane %v2154_v56, 7  ;;  %10899 = vmatmul.mubr.bf16.gmra.mrb[16].mxu1 %v5405_v52  ;;  %v5410_v42 = vshll.u32 %v14184_v43, 16  ;;  %v700_v6 = vadd.f32 %v13923_v36, %v13999_v29  ;;  %v2179_v47 = vrot.slane %v2174_v53, 4  ;;  %10659 = vmatmul.mubr.bf16.gmra.mrb[80].mxu0 %v11809_v22  ;;  %v15593_v9 = vld [vmem:[#allocation92_spill] sm:$0xff]  ;;  %v15594_v56 = vld [vmem:[#allocation75_spill] sm:$0xff] }
 0x18c   : > { %v1674_v59 = vsel %vm14154_vm1, %v761_v39, 0.0  ;;  %v759_v33 = vmax.f32 %v679_v1, 0.0  ;;  %v5408_v16 = vor.u32 %v5406_v20, %v5404_v38  ;;  %v692_v30 = vadd.f32 %v13923_v36, %v14012_v60 }
 0x18d   : > { %v2159_v13 = vor.u32 %v2157_v58, %v2156_v50  ;;  %v2161_v11 = vrot.slane %v2156_v50, 4  ;;  %v9907_v10 = vpack.c.bf16 %v1674_v59, %v1674_v59  ;;  %v5412_v49 = vrot.slane %v5410_v42, 1 }
 0x18e   : > { %v1672_v41 = vsel %vm14163_vm7, %v759_v33, 0.0  ;;  %v764_v14 = vmax.f32 %v700_v6, 0.0  ;;  %v762_v12 = vmax.f32 %v692_v30, 0.0  ;;  %v5414_v0 = vshrl.u32 %v14184_v43, 16  ;;  %v15595_v6 = vld [vmem:[#allocation84_spill] sm:$0xff] }
 0x18f   : > { %v2160_v29 = vsel %vm13452_vm4, %v2152_v55, %v2159_v13  ;;  %v2181_v45 = vshrl.u32 %v9907_v10, 16  ;;  %v2184_v2 = vshll.u32 %v9907_v10, 16  ;;  %v9905_v4 = vpack.c.bf16 %v1672_v41, %v1672_v41  ;;  %v15597_v41 = vld [vmem:[#allocation77_spill] sm:$0xff] }
 0x190   : > { %2351 = vst [vmem:[#allocation2 + $0x9c] sm:$0xf] %v2160_v29  ;;  %v5413_v51 = vsel %vm3189_vm13, %v5408_v16, %v5412_v49  ;;  %v1677_v27 = vsel %vm14178_vm0, %v764_v14, 0.0  ;;  %v2177_v55 = vor.u32 %v2175_v3, %v2174_v53  ;;  %v1675_v21 = vsel %vm14191_vm14, %v762_v12, 0.0  ;;  %v15598_v12 = vld [vmem:[#allocation88_spill] sm:$0xff] }
 0x191   : > { %v2183_v35 = vrot.slane %v2181_v45, 7  ;;  %v2163_v60 = vshrl.u32 %v9905_v4, 16  ;;  %v2166_v31 = vshll.u32 %v9905_v4, 16  ;;  %10902 = vmatprep.mubr.bf16.mxu1 %v5413_v51  ;;  %v14224_v7 = vpack.c.bf16 %v1677_v27, %v1677_v27  ;;  %v11812_v19 = vld [vmem:[#allocation2 + $0x90] sm:$0xff]   ;;  %v14264_v51 = vld [vmem:[#allocation2 + $0x7c] sm:$0xff]  }
 0x192   : > { %v5418_v32 = vshll.u32 %v14216_v48, 16  ;;  %v703_v61 = vadd.f32 %v13923_v36, %v14016_v8  ;;  %v5416_v62 = vor.u32 %v5414_v0, %v5412_v49  ;;  %10662 = vmatprep.mubr.bf16.mxu0 %v11812_v19  ;;  %v9908_v63 = vpack.c.bf16 %v1675_v21, %v1675_v21 }
 0x193   : > { %v2186_v5 = vor.u32 %v2184_v2, %v2183_v35  ;;  %v2165_v54 = vrot.slane %v2163_v60, 7  ;;  %v2208_v43 = vshrl.u32 %v14224_v7, 16  ;;  %v2188_v38 = vrot.slane %v2183_v35, 4 }
 0x194   : > { %v2211_v26 = vshll.u32 %v14224_v7, 16  ;;  %v5420_v34 = vrot.slane %v5418_v32, 1  ;;  %v765_v3 = vmax.f32 %v703_v61, 0.0  ;;  %v2190_v57 = vshrl.u32 %v9908_v63, 16  ;;  %v15599_v32 = vld [vmem:[#allocation91_spill] sm:$0xff] }
 0x195   : > { %v2187_v40 = vsel %vm13452_vm4, %v2179_v47, %v2186_v5  ;;  %v2168_v24 = vor.u32 %v2166_v31, %v2165_v54  ;;  %v2170_v37 = vrot.slane %v2165_v54, 4  ;;  %v14237_v8 = vrot.slane %v2208_v43, 7 }
 0x196   : > { %2354 = vst [vmem:[#allocation2 + $0xa8] sm:$0xf] %v2187_v40  ;;  %v5421_v46 = vsel %vm3189_vm13, %v5416_v62, %v5420_v34  ;;  %v1300_v58 = vsub.s32 %v15594_v56, %v15593_v9  ;;  %v2193_v39 = vshll.u32 %v9908_v63, 16  ;;  %v14246_v50 = vrot.slane %v2190_v57, 7  ;;  %v15600_v57 = vld [vmem:[#allocation4_spill] sm:$0xff] }
 0x197   : > { %v2169_v53 = vsel %vm13452_vm4, %v2161_v11, %v2168_v24  ;;  %v2178_v52 = vsel %vm13452_vm4, %v2170_v37, %v2177_v55  ;;  %10903 = vmatmul.mubr.bf16.gmra.mrb[20].mxu1 %v5421_v46  ;;  %v11815_v1 = vld [vmem:[#allocation2 + $0x98] sm:$0xff]   ;;  %v695_v42 = vadd.f32 %v13923_v36, %v14031_v15  ;;  %v15596_v47 = vshrl.u32 %v15595_v6, 4 }
 0x198   : > { %2352 = vst [vmem:[#allocation2 + $0xa0] sm:$0xf] %v2169_v53  ;;  %2353 = vst [vmem:[#allocation2 + $0xa4] sm:$0xf] %v2178_v52  ;;  %vm1390_vm9 = vcmp.ne.s32.totalorder %v1300_v58, 0  ;;  %vm1438_vm5 = vcmp.lt.s32.totalorder %v1300_v58, 0  ;;  %10663 = vmatmul.mubr.bf16.gmra.mrb[84].mxu0 %v11815_v1  ;;  %v2195_v11 = vor.u32 %v2193_v39, %v14246_v50  ;;  %v14260_v15 = vadd.f32 %v13923_v36, %v14054_v17 }
 0x199   : > { %v1534_v20 = vadd.s32 24, %v1300_v58  ;;  %vm1486_vm10 = vmand %vm1438_vm5, %vm1390_vm9  ;;  %v1277_v59 = vmul.u32 24, %v15596_v47  ;;  %v5422_v33 = vshrl.u32 %v14216_v48, 16  ;;  %v5426_v22 = vshll.u32 %v14233_v18, 16 }
 0x19a   : > { %v2215_v13 = vrot.slane %v14237_v8, 4  ;;  %v2197_v10 = vrot.slane %v14246_v50, 4  ;;  %v2196_v30 = vsel %vm13452_vm4, %v2188_v38, %v2195_v11  ;;  %v763_v29 = vmax.f32 %v695_v42, 0.0 }
 0x19b   : > { %v1582_v16 = vsel %vm1486_vm10, %v1534_v20, %v1300_v58  ;;  %v1278_v49 = vsub.s32 %v15597_v41, %v1277_v59  ;;  %v5424_v14 = vor.u32 %v5422_v33, %v5420_v34  ;;  %v5428_v45 = vrot.slane %v5426_v22, 1  ;;  %2355 = vst [vmem:[#allocation2 + $0xac] sm:$0xf] %v2196_v30  ;;  %v11811_v33 = vld [vmem:[#allocation2 + $0x84] sm:$0xff]  }
 0x19c   : > { %vm1630_vm2 = vcmp.lt.s32.totalorder %v1582_v16, 16  ;;  %v14268_v0 = vmul.u32.u64.low 2863311531, %v15598_v12  ;;  %v14269_v17 = vmul.u32.u64.high 2863311531, %v15598_v12, %v14268_v0  ;;  %v14273_v35 = vadd.f32 %v13923_v36, %v14078_v25  ;;  %v14314_v16 = vld [vmem:[#allocation2 + $0x8c] sm:$0xff]  }
 0x19d   : > { %v1678_v48 = vsel %vm1630_vm2, %v765_v3, 0.0  ;;  %vm1388_vm12 = vcmp.ne.s32.totalorder %v1278_v49, 0  ;;  %vm1436_vm3 = vcmp.lt.s32.totalorder %v1278_v49, 0  ;;  %v1532_v4 = vadd.s32 24, %v1278_v49 }
 0x19e   : > { %v9911_v2 = vpack.c.bf16 %v1678_v48, %v1678_v48  ;;  %vm1484_vm11 = vmand %vm1436_vm3, %vm1388_vm12  ;;  %v5429_v27 = vsel %vm3189_vm13, %v5424_v14, %v5428_v45  ;;  %v768_v55 = vmax.f32 %v14260_v15, 0.0  ;;  %v5430_v54 = vshrl.u32 %v14233_v18, 16 }
 0x19f   : > { %v1580_v19 = vsel %vm1484_vm11, %v1532_v4, %v1278_v49  ;;  %10906 = vmatprep.mubr.bf16.mxu1 %v5429_v27  ;;  %v11818_v21 = vld [vmem:[#allocation2 + $0xa0] sm:$0xff]   ;;  %v14277_v61 = vmul.u32.u64.low 2863311531, %v15599_v32  ;;  %v14278_v5 = vmul.u32.u64.high 2863311531, %v15599_v32, %v14277_v61  ;;  %v766_v25 = vmax.f32 %v14273_v35, 0.0 }
 0x1a0   : > { %v2217_v60 = vshrl.u32 %v9911_v2, 16  ;;  %v2220_v31 = vshll.u32 %v9911_v2, 16  ;;  %vm1628_vm8 = vcmp.lt.s32.totalorder %v1580_v19, 16  ;;  %v5434_v38 = vshll.u32 %v14264_v51, 16  ;;  %10666 = vmatprep.mubr.bf16.mxu0 %v11818_v21 }
 0x1a1   : > { %v1676_v62 = vsel %vm1628_vm8, %v763_v29, 0.0  ;;  %v1331_v34 = vshrl.u32 %v14269_v17, 4  ;;  %v5432_v40 = vor.u32 %v5430_v54, %v5428_v45  ;;  %v14288_v24 = vadd.f32 %v13923_v36, %v14085_v23 }
 0x1a2   : > { %v14281_v43 = vrot.slane %v2217_v60, 7  ;;  %v9909_v63 = vpack.c.bf16 %v1676_v62, %v1676_v62  ;;  %v5436_v3 = vrot.slane %v5434_v38, 1  ;;  %v14293_v46 = vadd.s32 376, %v15600_v57  ;;  %v11822_v20 = vld [vmem:[#allocation2 + $0xa8] sm:$0xff]  }
 0x1a3   : > { %v1332_v58 = vmul.u32 24, %v1331_v34  ;;  %v1309_v53 = vshrl.u32 %v14278_v5, 4  ;;  %v2213_v52 = vor.u32 %v2211_v26, %v14237_v8  ;;  %v769_v1 = vmax.f32 %v14288_v24, 0.0  ;;  %10667 = vmatmul.mubr.bf16.gmra.mrb[88].mxu0 %v11822_v20 }
 0x1a4   : > { %v2222_v37 = vor.u32 %v2220_v31, %v14281_v43  ;;  %v2224_v18 = vrot.slane %v14281_v43, 4  ;;  %v2199_v9 = vshrl.u32 %v9909_v63, 16  ;;  %v2202_v56 = vshll.u32 %v9909_v63, 16  ;;  %v11817_v31 = vld [vmem:[#allocation2 + $0x94] sm:$0xff]  }
 0x1a5   : > { %v5437_v39 = vsel %vm3189_vm13, %v5432_v40, %v5436_v3  ;;  %v1333_v6 = vsub.s32 %v15598_v12, %v1332_v58  ;;  %v1310_v47 = vmul.u32 24, %v1309_v53  ;;  %v816_v59 = vadd.s32 360, %v15600_v57 }
 0x1a6   : > { %v2223_v23 = vsel %vm13452_vm4, %v2215_v13, %v2222_v37  ;;  %v2201_v42 = vrot.slane %v2199_v9, 7  ;;  %10907 = vmatmul.mubr.bf16.gmra.mrb[24].mxu1 %v5437_v39  ;;  %v14306_v7 = vmul.u32.u64.low 2863311531, %v14293_v46  ;;  %v14307_v26 = vmul.u32.u64.high 2863311531, %v14293_v46, %v14306_v7  ;;  %v11821_v9 = vld [vmem:[#allocation2 + $0x9c] sm:$0xff]  }
 0x1a7   : > { %2358 = vst [vmem:[#allocation2 + $0xb8] sm:$0xf] %v2223_v23  ;;  %v14311_v8 = vadd.f32 %v13923_v36, %v14091_v44  ;;  %v5438_v22 = vshrl.u32 %v14264_v51, 16  ;;  %vm1393_vm6 = vcmp.ne.s32.totalorder %v1333_v6, 0  ;;  %vm1441_vm1 = vcmp.lt.s32.totalorder %v1333_v6, 0  ;;  %v14327_v36 = vld [vmem:[%s15004_s2 + $0x80] sm:$0xff]  }
 0x1a8   : > { %v2204_v13 = vor.u32 %v2202_v56, %v2201_v42  ;;  %v2206_v11 = vrot.slane %v2201_v42, 4  ;;  %vm14316_vm7 = vmand %vm1441_vm1, %vm1393_vm6  ;;  %v1537_v49 = vadd.s32 24, %v1333_v6  ;;  %v1311_v14 = vsub.s32 %v15599_v32, %v1310_v47  ;;  %10738 = vmatprep.subr.bf16.mxu0 %v14327_v36 }
 0x1a9   : > { %v14321_v30 = vmul.u32.u64.low 2863311531, %v816_v59  ;;  %v14322_v48 = vmul.u32.u64.high 2863311531, %v816_v59, %v14321_v30  ;;  %v5440_v45 = vor.u32 %v5438_v22, %v5436_v3  ;;  %v5442_v2 = vshll.u32 %v11811_v33, 16 }
 0x1aa   : > { %v2205_v44 = vsel %vm13452_vm4, %v2197_v10, %v2204_v13  ;;  %v2214_v29 = vsel %vm13452_vm4, %v2206_v11, %v2213_v52  ;;  %v1585_v4 = vsel %vm14316_vm7, %v1537_v49, %v1333_v6  ;;  %vm1391_vm0 = vcmp.ne.s32.totalorder %v1311_v14, 0  ;;  %v11824_v6 = vld [vmem:[#allocation2 + $0xa4] sm:$0xff]  }
 0x1ab   : > { %2356 = vst [vmem:[#allocation2 + $0xb0] sm:$0xf] %v2205_v44  ;;  %2357 = vst [vmem:[#allocation2 + $0xb4] sm:$0xf] %v2214_v29  ;;  %vm1439_vm15 = vcmp.lt.s32.totalorder %v1311_v14, 0  ;;  %v1535_v51 = vadd.s32 24, %v1311_v14 }
 0x1ac   : > { %vm1633_vm14 = vcmp.lt.s32.totalorder %v1585_v4, 16  ;;  %vm1487_vm9 = vmand %vm1439_vm15, %vm1391_vm0  ;;  %v1342_v50 = vshrl.u32 %v14307_v26, 4  ;;  %v5444_v10 = vrot.slane %v5442_v2, 1  ;;  %v5446_v27 = vshrl.u32 %v11811_v33, 16  ;;  %v14360_v26 = vld [vmem:[#allocation2 + $0x8] sm:$0xff]  }
 0x1ad   : > { %v1681_v12 = vsel %vm1633_vm14, %v768_v55, 0.0  ;;  %v1583_v0 = vsel %vm1487_vm9, %v1535_v51, %v1311_v14  ;;  %v1320_v17 = vshrl.u32 %v14322_v48, 4  ;;  %v5450_v60 = vshll.u32 %v14314_v16, 16  ;;  %v2365_v2 = vld [vmem:[#allocation2 + $0xcc] sm:$0x1]  ;;  %v15603_v4 = vld [vmem:[#allocation65_spill] sm:$0xff] }
 0x1ae   : > { %v14343_v19 = vpack.c.bf16 %v1681_v12, %v1681_v12  ;;  %vm1631_vm5 = vcmp.lt.s32.totalorder %v1583_v0, 16  ;;  %v1343_v21 = vmul.u32 24, %v1342_v50  ;;  %v5445_v32 = vsel %vm3189_vm13, %v5440_v45, %v5444_v10 }
 0x1af   : > { %v1679_v61 = vsel %vm1631_vm5, %v766_v25, 0.0  ;;  %v1321_v5 = vmul.u32 24, %v1320_v17  ;;  %10910 = vmatprep.mubr.bf16.mxu1 %v5445_v32  ;;  %v5448_v54 = vor.u32 %v5446_v27, %v5444_v10  ;;  %v5452_v15 = vrot.slane %v5450_v60, 1 }
 0x1b0   : > { %v2244_v55 = vshrl.u32 %v14343_v19, 16  ;;  %v9912_v62 = vpack.c.bf16 %v1679_v61, %v1679_v61  ;;  %v1344_v38 = vsub.s32 %v14293_v46, %v1343_v21  ;;  %v767_v63 = vmax.f32 %v14311_v8, 0.0 }
 0x1b1   : > { %v2247_v34 = vshll.u32 %v14343_v19, 16  ;;  %v1322_v40 = vsub.s32 %v816_v59, %v1321_v5  ;;  %v5453_v37 = vsel %vm3189_vm13, %v5448_v54, %v5452_v15  ;;  %v5458_v3 = vshll.u32 %v11817_v31, 16 }
 0x1b2   : > { %v14353_v57 = vrot.slane %v2244_v55, 7  ;;  %v2226_v35 = vshrl.u32 %v9912_v62, 16  ;;  %vm1394_vm10 = vcmp.ne.s32.totalorder %v1344_v38, 0  ;;  %vm2363_vm2 = vcmask 1040384   ;;  %10911 = vmatmul.mubr.bf16.gmra.mrb[28].mxu1 %v5453_v37  ;;  %v11825_v52 = vld [vmem:[#allocation2 + $0xb0] sm:$0xff]  }
 0x1b3   : > { %v5454_v25 = vshrl.u32 %v14314_v16, 16  ;;  %vm1442_vm12 = vcmp.lt.s32.totalorder %v1344_v38, 0  ;;  %v1538_v56 = vadd.s32 24, %v1344_v38  ;;  %vm1392_vm3 = vcmp.ne.s32.totalorder %v1322_v40, 0  ;;  %10670 = vmatprep.mubr.bf16.mxu0 %v11825_v52  ;;  %v11828_v7 = vld [vmem:[#allocation2 + $0xac] sm:$0xff]   ;;  %v14374_v27 = vld [vmem:[#allocation2 + $0xb4] sm:$0xff]  }
 0x1b4   : > { %vm1440_vm11 = vcmp.lt.s32.totalorder %v1322_v40, 0  ;;  %v14356_v46 = vrot.slane %v2226_v35, 7  ;;  %v2229_v58 = vshll.u32 %v9912_v62, 16  ;;  %vm1490_vm8 = vmand %vm1442_vm12, %vm1394_vm10  ;;  %v1536_v53 = vadd.s32 24, %v1322_v40 }
 0x1b5   : > { %v2251_v23 = vrot.slane %v14353_v57, 4  ;;  %v1586_v39 = vsel %vm1490_vm8, %v1538_v56, %v1344_v38  ;;  %vm1488_vm6 = vmand %vm1440_vm11, %vm1392_vm3  ;;  %v5456_v20 = vor.u32 %v5454_v25, %v5452_v15  ;;  %v5460_v42 = vrot.slane %v5458_v3, 1  ;;  %v11836_v38 = vld [vmem:[#allocation2 + $0x10] sm:$0xff]  }
 0x1b6   : > { %v2231_v47 = vor.u32 %v2229_v58, %v14356_v46  ;;  %vm1634_vm1 = vcmp.lt.s32.totalorder %v1586_v39, 16  ;;  %v1584_v59 = vsel %vm1488_vm6, %v1536_v53, %v1322_v40  ;;  %v5462_v33 = vshrl.u32 %v11817_v31, 16 }
 0x1b7   : > { %v1682_v8 = vsel %vm1634_vm1, %v769_v1, 0.0  ;;  %vm1632_vm7 = vcmp.lt.s32.totalorder %v1584_v59, 16  ;;  %v5461_v22 = vsel %vm3189_vm13, %v5456_v20, %v5460_v42  ;;  %v5466_v41 = vshll.u32 %v11821_v9, 16 }
 0x1b8   : > { %v2232_v13 = vsel %vm13452_vm4, %v2224_v18, %v2231_v47  ;;  %v9915_v11 = vpack.c.bf16 %v1682_v8, %v1682_v8  ;;  %v1680_v16 = vsel %vm1632_vm7, %v767_v63, 0.0  ;;  %10914 = vmatprep.mubr.bf16.mxu1 %v5461_v22  ;;  %v2233_v49 = vrot.slane %v14356_v46, 4  ;;  %v15605_v18 = vld [vmem:[#allocation67_spill] sm:$0xff]  ;;  %v11841_v47 = vld [vmem:[#allocation2 + $0x20] sm:$0xff]   ;;  %v11844_v8 = vld [vmem:[#allocation2 + $0x28] sm:$0xff]  }
 0x1b9   : > { %2359 = vst [vmem:[#allocation2 + $0xbc] sm:$0xf] %v2232_v13  ;;  %v9913_v14 = vpack.c.bf16 %v1680_v16, %v1680_v16  ;;  %v5464_v30 = vor.u32 %v5462_v33, %v5460_v42  ;;  %v5474_v48 = vshll.u32 %v11824_v6, 16  ;;  %v5468_v1 = vrot.slane %v5466_v41, 1  ;;  %v11837_v63 = vld [vmem:[#allocation2 + $0x18] sm:$0xff]  }
 0x1ba   : > { %v2253_v24 = vshrl.u32 %v9915_v11, 16  ;;  %v5470_v44 = vshrl.u32 %v11821_v9, 16  ;;  %v5482_v29 = vshll.u32 %v11828_v7, 16  ;;  %v2256_v45 = vshll.u32 %v9915_v11, 16  ;;  %v11879_v11 = vld [vmem:[%s15004_s2 + $0x88] sm:$0xff]  }
 0x1bb   : > { %v2235_v43 = vshrl.u32 %v9913_v14, 16  ;;  %v15604_v51 = vshrl.u32 %v15603_v4, 16  ;;  %v3198_v10 = vshll.u32 %v14360_v26, 16  ;;  %v5469_v0 = vsel %vm3189_vm13, %v5464_v30, %v5468_v1 }
 0x1bc   : > { %v2255_v12 = vrot.slane %v2253_v24, 7  ;;  %v5472_v17 = vor.u32 %v5470_v44, %v5468_v1  ;;  %v5476_v60 = vrot.slane %v5474_v48, 1  ;;  %vm15606_vm0 = vsmask.f32 256  ;;  %10915 = vmatmul.mubr.bf16.gmra.mrb[32].mxu1 %v5469_v0  ;;  %v11847_v1 = vld [vmem:[#allocation2 + $0x30] sm:$0xff]  }
 0x1bd   : > { %v3196_v50 = vor.u32 %v15605_v18, %v15604_v51  ;;  %vm14379_vm15 = vmand %vm2363_vm2, %vm15606_vm0  ;;  %v2237_v21 = vrot.slane %v2235_v43, 7  ;;  %v2238_v32 = vshll.u32 %v9913_v14, 16  ;;  %v5478_v61 = vshrl.u32 %v11824_v6, 16 }
 0x1be   : > { %v5484_v5 = vrot.slane %v5482_v29, 1  ;;  %v2258_v54 = vor.u32 %v2256_v45, %v2255_v12  ;;  %v2260_v15 = vrot.slane %v2255_v12, 4  ;;  %v5477_v55 = vsel %vm3189_vm13, %v5472_v17, %v5476_v60  ;;  %v11849_v17 = vld [vmem:[#allocation2 + $0x38] sm:$0xff]  }
 0x1bf   : > { %v3200_v62 = vrot.slane %v3198_v10, 1  ;;  %v2249_v40 = vor.u32 %v2247_v34, %v14353_v57  ;;  %v2240_v37 = vor.u32 %v2238_v32, %v2237_v21  ;;  %v2242_v3 = vrot.slane %v2237_v21, 4  ;;  %10918 = vmatprep.mubr.bf16.mxu1 %v5477_v55  ;;  %v11842_v10 = vld [vmem:[#allocation2 + $0xc] sm:$0xfe]   ;;  %v11886_v32 = vld [vmem:[%s15004_s2 + $0x98] sm:$0xff]  }
 0x1c0   : > { %v5486_v35 = vshrl.u32 %v11828_v7, 16  ;;  %v2259_v25 = vsel %vm13452_vm4, %v2251_v23, %v2258_v54  ;;  %v2366_v9 = vsel %vm14379_vm15, %v2260_v15, %v2365_v2  ;;  %v5480_v56 = vor.u32 %v5478_v61, %v5476_v60  ;;  %v11829_v46 = vld [vmem:[#allocation2 + $0xb8] sm:$0xff]   ;;  %v11882_v2 = vld [vmem:[%s15004_s2 + $0x90] sm:$0xff]  }
 0x1c1   : > { %2362 = vst [vmem:[#allocation2 + $0xc8] sm:$0xf] %v2259_v25  ;;  %2367 = vst [vmem:[#allocation2 + $0xcc] sm:$0x1] %v2366_v9  ;;  %v2241_v58 = vsel %vm13452_vm4, %v2233_v49, %v2240_v37  ;;  %v2250_v19 = vsel %vm13452_vm4, %v2242_v3, %v2249_v40  ;;  %v5490_v57 = vshll.u32 %v14374_v27, 16  ;;  %10671 = vmatmul.mubr.bf16.gmra.mrb[92].mxu0 %v11829_v46  ;;  %v3206_v23 = vshll.u32 %v11836_v38, 16 }
 0x1c2   : > { %v5488_v34 = vor.u32 %v5486_v35, %v5484_v5  ;;  %2360 = vst [vmem:[#allocation2 + $0xc0] sm:$0xf] %v2241_v58  ;;  %2361 = vst [vmem:[#allocation2 + $0xc4] sm:$0xf] %v2250_v19  ;;  %v5485_v53 = vsel %vm3189_vm13, %v5480_v56, %v5484_v5  ;;  %v3201_v52 = vsel %vm3189_vm13, %v3196_v50, %v3200_v62  ;;  %v3214_v39 = vshll.u32 %v11837_v63, 16  ;;  %v11851_v40 = vld [vmem:[#allocation2 + $0x40] sm:$0xff]  }
 0x1c3   : > { %v3202_v20 = vshrl.u32 %v14360_v26, 16  ;;  %10690 = vmatprep.mubr.bf16.mxu0 %v3201_v52  ;;  %v5492_v42 = vrot.slane %v5490_v57, 1  ;;  %v3208_v6 = vrot.slane %v3206_v23, 1  ;;  %v3210_v33 = vshrl.u32 %v11836_v38, 16  ;;  %v11889_v25 = vld [vmem:[%s15004_s2 + $0xa0] sm:$0xff]   ;;  %v11853_v19 = vld [vmem:[#allocation2 + $0x48] sm:$0xff]  }
 0x1c4   : > { %10919 = vmatmul.mubr.bf16.gmra.mrb[36].mxu1 %v5485_v53  ;;  %v3216_v7 = vrot.slane %v3214_v39, 1  ;;  %v3222_v13 = vshll.u32 %v11841_v47, 16  ;;  %v3230_v14 = vshll.u32 %v11844_v8, 16  ;;  %v5494_v30 = vshrl.u32 %v14374_v27, 16  ;;  %v14410_v27 = vld [vmem:[#allocation2 + $0x14] sm:$0xff]   ;;  %v11846_v57 = vld [vmem:[#allocation2 + $0x1c] sm:$0xff]  }
 0x1c5   : > { %v3204_v28 = vor.u32 %v3202_v20, %v3200_v62  ;;  %v5493_v59 = vsel %vm3189_vm13, %v5488_v34, %v5492_v42  ;;  %v3212_v22 = vor.u32 %v3210_v33, %v3208_v6  ;;  %v3218_v24 = vshrl.u32 %v11837_v63, 16  ;;  %v14424_v53 = vld [vmem:[#allocation2 + $0x24] sm:$0xff]  }
 0x1c6   : > { %10922 = vmatprep.mubr.bf16.mxu1 %v5493_v59  ;;  %v3224_v45 = vrot.slane %v3222_v13, 1  ;;  %v5496_v43 = vor.u32 %v5494_v30, %v5492_v42  ;;  %v3226_v12 = vshrl.u32 %v11841_v47, 16  ;;  %v3232_v0 = vrot.slane %v3230_v14, 1  ;;  %v11892_v20 = vld [vmem:[%s15004_s2 + $0xa8] sm:$0xff]  }
 0x1c7   : > { %v3209_v26 = vsel %vm3189_vm13, %v3204_v28, %v3208_v6  ;;  %v3217_v41 = vsel %vm3189_vm13, %v3212_v22, %v3216_v7  ;;  %v3220_v18 = vor.u32 %v3218_v24, %v3216_v7  ;;  %v3238_v21 = vshll.u32 %v11847_v1, 16  ;;  %v11896_v22 = vld [vmem:[%s15004_s2 + $0xb0] sm:$0xff]  }
 0x1c8   : > { %v11840_v29 = vld [vmem:[#allocation2 + $0xcc] ss:$0 sps:$4 sm:$0x11]   ;;  %v3228_v31 = vor.u32 %v3226_v12, %v3224_v45  ;;  %v3246_v62 = vshll.u32 %v11849_v17, 16  ;;  %v3234_v63 = vshrl.u32 %v11844_v8, 16  ;;  %v6148_v37 = vrot.slane %v11842_v10, 1 }
 0x1c9   : > { %v11835_v16 = vld [vmem:[#allocation2 + $0xbc] sm:$0xff]   ;;  %10691 = vmatmul.mubr.bf16.vlgmr.msra.gmra.mrb[48].mxu0 %v3209_v26  ;;  %v11838_v49 = vld [vmem:[#allocation2 + $0xc4] sm:$0xff]   ;;  %v5514_v54 = vshll.u32 %v11840_v29, 16  ;;  %v3225_v15 = vsel %vm3189_vm13, %v3220_v18, %v3224_v45  ;;  %v6149_v3 = vrot.slane %v14410_v27, 1  ;;  %v3240_v35 = vrot.slane %v3238_v21, 1  ;;  %v11856_v8 = vld [vmem:[#allocation2 + $0x50] sm:$0xff]  }
 0x1ca   : > { %v5498_v48 = vshll.u32 %v11835_v16, 16  ;;  %10694 = vmatprep.mubr.bf16.mxu0 %v3217_v41  ;;  %10739 = vmatpush3.bf16.msra.mxu0 %v14327_v36  ;;  %v5506_v44 = vshll.u32 %v11838_v49, 16  ;;  %v5502_v51 = vshrl.u32 %v11835_v16, 16  ;;  %v5510_v5 = vshrl.u32 %v11838_v49, 16  ;;  %v11854_v26 = vld [vmem:[%s15004_s2 + $0x188] sm:$0xff]   ;;  %v11858_v41 = vld [vmem:[#allocation2 + $0x58] sm:$0xff]  }
 0x1cb   : > { %10740 = vmatprep.subr.bf16.mxu0 %v11879_v11  ;;  %v3233_v55 = vsel %vm3189_vm13, %v3228_v31, %v3232_v0  ;;  %v5516_v9 = vrot.slane %v5514_v54, 1  ;;  %v3236_v56 = vor.u32 %v3234_v63, %v3232_v0  ;;  %v3242_v46 = vshrl.u32 %v11847_v1, 16  ;;  %v11850_v14 = vld [vmem:[#allocation2 + $0x2c] sm:$0xff]   ;;  %v12052_v29 = vld [vmem:[%s15004_s2 + $0x180] sm:$0xff]  }
 0x1cc   : > { %v5500_v4 = vrot.slane %v5498_v48, 1  ;;  %v5508_v50 = vrot.slane %v5506_v44, 1  ;;  %v3248_v58 = vrot.slane %v3246_v62, 1  ;;  %vm4016_vm4 = vcmask 1046528   ;;  %v11852_v48 = vld [vmem:[#allocation2 + $0x34] sm:$0xff]   ;;  %v11863_v0 = vld [vmem:[#allocation2 + $0x68] sm:$0xff]  }
 0x1cd   : > { %v6150_v52 = vsel %vm4016_vm4, %v6148_v37, %v6149_v3  ;;  %v3244_v23 = vor.u32 %v3242_v46, %v3240_v35  ;;  %v3254_v39 = vshll.u32 %v11851_v40, 16  ;;  %v3241_v42 = vsel %vm3189_vm13, %v3236_v56, %v3240_v35  ;;  %v11900_v44 = vld [vmem:[%s15004_s2 + $0xb8] sm:$0xff]   ;;  %v11865_v35 = vld [vmem:[#allocation2 + $0x70] sm:$0xff]  }
 0x1ce   : > { %v5501_v36 = vsel %vm3189_vm13, %v5496_v43, %v5500_v4  ;;  %v5504_v60 = vor.u32 %v5502_v51, %v5500_v4  ;;  %10741 = vmatpush3.bf16.msra.mxu0 %v11879_v11  ;;  %v5512_v38 = vor.u32 %v5510_v5, %v5508_v50  ;;  %v3262_v47 = vshll.u32 %v11853_v19, 16  ;;  %v11859_v4 = vld [vmem:[%s15004_s2 + $0x190] sm:$0xff]   ;;  %v11855_v21 = vld [vmem:[#allocation2 + $0x3c] sm:$0xff]  }
 0x1cf   : > { %10923 = vmatmul.mubr.bf16.gmra.mrb[40].mxu1 %v5501_v36  ;;  %10742 = vmatprep.subr.bf16.mxu0 %v11882_v2  ;;  %v3249_v6 = vsel %vm3189_vm13, %v3244_v23, %v3248_v58  ;;  %v6151_v28 = vrot.slane %v11846_v57, 1  ;;  %v3250_v59 = vshrl.u32 %v11849_v17, 16  ;;  %v6153_v33 = vrot.slane %v14424_v53, 1  ;;  %v11868_v17 = vld [vmem:[%s15004_s2 + $0x198] sm:$0xff]  }
 0x1d0   : > { %v5509_v61 = vsel %vm3189_vm13, %v5504_v60, %v5508_v50  ;;  %v5517_v34 = vsel %vm3189_vm13, %v5512_v38, %v5516_v9  ;;  %v3256_v7 = vrot.slane %v3254_v39, 1  ;;  %v3258_v11 = vshrl.u32 %v11851_v40, 16  ;;  %v11861_v50 = vld [vmem:[#allocation2 + $0x60] sm:$0xff]   ;;  %v11867_v46 = vld [vmem:[#allocation2 + $0x78] sm:$0xff]  }
 0x1d1   : > { %10926 = vmatprep.mubr.bf16.mxu1 %v5509_v61  ;;  %10695 = vmatmul.mubr.bf16.gmra.mrb[52].mxu0 %v3225_v15  ;;  %v3252_v13 = vor.u32 %v3250_v59, %v3248_v58  ;;  %v3264_v16 = vrot.slane %v3262_v47, 1  ;;  %v6152_v49 = vsel %vm4016_vm4, %v6149_v3, %v6151_v28  ;;  %v6154_v30 = vsel %vm4016_vm4, %v6151_v28, %v6153_v33  ;;  %v11857_v61 = vld [vmem:[#allocation2 + $0x44] sm:$0xff]   ;;  %v11862_v53 = vld [vmem:[#allocation2 + $0x54] sm:$0xff]  }
 0x1d2   : > { %10698 = vmatprep.mubr.bf16.mxu0 %v3233_v55  ;;  %10743 = vmatpush3.bf16.msra.mxu0 %v11882_v2  ;;  %v3260_v24 = vor.u32 %v3258_v11, %v3256_v7  ;;  %v3270_v1 = vshll.u32 %v11856_v8, 16  ;;  %v3278_v43 = vshll.u32 %v11858_v41, 16  ;;  %v6155_v51 = vrot.slane %v11850_v14, 1  ;;  %v11873_v38 = vld [vmem:[%s15004_s2 + $0x1a0] sm:$0xff]   ;;  %v11885_v58 = vld [vmem:[%s15004_s2 + $0x1a8] sm:$0xff]  }
 0x1d3   : > { %10744 = vmatprep.subr.bf16.mxu0 %v11886_v32  ;;  %v3257_v45 = vsel %vm3189_vm13, %v3252_v13, %v3256_v7  ;;  %v3266_v18 = vshrl.u32 %v11853_v19, 16  ;;  %v6157_v10 = vrot.slane %v11852_v48, 1  ;;  %v3274_v36 = vshrl.u32 %v11856_v8, 16  ;;  %v11870_v59 = vld [vmem:[#allocation2 + $0x80] sm:$0xff]   ;;  %v11872_v8 = vld [vmem:[#allocation2 + $0x88] sm:$0xff]   ;;  %v11905_v13 = vld [vmem:[%s15004_s2 + $0x1b8] sm:$0xff]  }
 0x1d4   : > { %v3265_v2 = vsel %vm3189_vm13, %v3260_v24, %v3264_v16  ;;  %v3272_v27 = vrot.slane %v3270_v1, 1  ;;  %v3280_v60 = vrot.slane %v3278_v43, 1  ;;  %v6156_v31 = vsel %vm4016_vm4, %v6153_v33, %v6155_v51  ;;  %v11866_v14 = vld [vmem:[#allocation2 + $0x64] sm:$0xff]  }
 0x1d5   : > { %v3268_v12 = vor.u32 %v3266_v18, %v3264_v16  ;;  %v3286_v54 = vshll.u32 %v11861_v50, 16  ;;  %v3294_v62 = vshll.u32 %v11863_v0, 16  ;;  %v6159_v63 = vrot.slane %v11855_v21, 1  ;;  %v14481_v1 = vld [vmem:[%s15004_s2 + $0x1c0] sm:$0xff]   ;;  %v11875_v18 = vld [vmem:[#allocation2 + $0x90] sm:$0xff]  }
 0x1d6   : > { %10745 = vmatpush3.bf16.msra.mxu0 %v11886_v32  ;;  %v6158_v32 = vsel %vm4016_vm4, %v6155_v51, %v6157_v10  ;;  %v3276_v5 = vor.u32 %v3274_v36, %v3272_v27  ;;  %v3282_v40 = vshrl.u32 %v11858_v41, 16  ;;  %v6161_v37 = vrot.slane %v11857_v61, 1  ;;  %v11864_v41 = vld [vmem:[#allocation2 + $0x5c] sm:$0xff]  }
 0x1d7   : > { %10927 = vmatmul.mubr.bf16.gmra.mrb[44].mxu1 %v5517_v34  ;;  %10746 = vmatprep.subr.bf16.mxu0 %v11889_v25  ;;  %v3273_v15 = vsel %vm3189_vm13, %v3268_v12, %v3272_v27  ;;  %v3288_v3 = vrot.slane %v3286_v54, 1  ;;  %v3290_v9 = vshrl.u32 %v11861_v50, 16  ;;  %v3296_v56 = vrot.slane %v3294_v62, 1  ;;  %v11860_v34 = vld [vmem:[#allocation2 + $0x4c] sm:$0xff]   ;;  %v11878_v12 = vld [vmem:[#allocation2 + $0x98] sm:$0xff]  }
 0x1d8   : > { %10946 = vmatprep.mubr.bf16.mxu1 %v6150_v52  ;;  %v3281_v55 = vsel %vm3189_vm13, %v3276_v5, %v3280_v60  ;;  %v6160_v19 = vsel %vm4016_vm4, %v6157_v10, %v6159_v63  ;;  %v6162_v57 = vsel %vm4016_vm4, %v6159_v63, %v6161_v37  ;;  %v3302_v23 = vshll.u32 %v11865_v35, 16 }
 0x1d9   : > { %10699 = vmatmul.mubr.bf16.gmra.mrb[56].mxu0 %v3241_v42  ;;  %v3292_v52 = vor.u32 %v3290_v9, %v3288_v3  ;;  %v3310_v42 = vshll.u32 %v11867_v46, 16  ;;  %v6163_v47 = vrot.slane %v11860_v34, 1  ;;  %v3298_v28 = vshrl.u32 %v11863_v0, 16 }
 0x1da   : > { %10702 = vmatprep.mubr.bf16.mxu0 %v3249_v6  ;;  %10747 = vmatpush3.bf16.msra.mxu0 %v11889_v25  ;;  %v3284_v25 = vor.u32 %v3282_v40, %v3280_v60  ;;  %v11893_v6 = vld [vmem:[%s15004_s2 + $0x1b0] sm:$0xff]   ;;  %v6165_v33 = vrot.slane %v11862_v53, 1  ;;  %v3304_v7 = vrot.slane %v3302_v23, 1  ;;  %v3306_v11 = vshrl.u32 %v11865_v35, 16 }
 0x1db   : > { %10748 = vmatprep.subr.bf16.mxu0 %v11892_v20  ;;  %v3312_v16 = vrot.slane %v3310_v42, 1  ;;  %v3318_v48 = vshll.u32 %v11870_v59, 16  ;;  %v3314_v43 = vshrl.u32 %v11867_v46, 16  ;;  %v3322_v10 = vshrl.u32 %v11870_v59, 16  ;;  %v11871_v60 = vld [vmem:[#allocation2 + $0x74] sm:$0xff]   ;;  %v11880_v42 = vld [vmem:[#allocation2 + $0x8c] sm:$0xff]  }
 0x1dc   : > { %v3289_v39 = vsel %vm3189_vm13, %v3284_v25, %v3288_v3  ;;  %v3334_v21 = vshll.u32 %v11875_v18, 16  ;;  %v3342_v5 = vshll.u32 %v11878_v12, 16  ;;  %v6173_v62 = vrot.slane %v11871_v60, 1  ;;  %v11884_v3 = vld [vmem:[#allocation2 + $0xa8] sm:$0xff]   ;;  %v11874_v25 = vld [vmem:[#allocation2 + $0x7c] sm:$0xff]   ;;  %v11888_v53 = vld [vmem:[#allocation2 + $0xb0] sm:$0xff]  }
 0x1dd   : > { %v3320_v51 = vrot.slane %v3318_v48, 1  ;;  %v3316_v50 = vor.u32 %v3314_v43, %v3312_v16  ;;  %v3338_v40 = vshrl.u32 %v11875_v18, 16  ;;  %v3346_v23 = vshrl.u32 %v11878_v12, 16  ;;  %v11887_v43 = vld [vmem:[#allocation2 + $0x9c] sm:$0xff]  }
 0x1de   : > { %10749 = vmatpush3.bf16.msra.mxu0 %v11892_v20  ;;  %v3297_v20 = vsel %vm3189_vm13, %v3292_v52, %v3296_v56  ;;  %v6175_v52 = vrot.slane %v11874_v25, 1  ;;  %v11901_v25 = vld [vmem:[#allocation2 + $0xbc] sm:$0xff]  }
 0x1df   : > { %10947 = vmatmul.mubr.bf16.vlgmr.msra.gmra.mrb[0].mxu1 %v6152_v49  ;;  %10750 = vmatprep.subr.bf16.mxu0 %v11896_v22  ;;  %v6166_v49 = vsel %vm4016_vm4, %v6163_v47, %v6165_v33 }
 0x1e0   : > { %10995 = vmatpush3.bf16.msra.mxu1 %v12052_v29  ;;  %10950 = vmatprep.mubr.bf16.mxu1 %v6154_v30  ;;  %v3308_v30 = vor.u32 %v3306_v11, %v3304_v7  ;;  %v3326_v29 = vshll.u32 %v11872_v8, 16 }
 0x1e1   : > { %10703 = vmatmul.mubr.bf16.gmra.mrb[60].mxu0 %v3257_v45  ;;  %10996 = vmatprep.subr.bf16.mxu1 %v11854_v26  ;;  %v14487_v45 = vld [vmem:[%s15004_s2 + $0xc0] sm:$0xff]  }
 0x1e2   : > { %10706 = vmatprep.mubr.bf16.mxu0 %v3265_v2  ;;  %10751 = vmatpush3.bf16.msra.mxu0 %v11896_v22  ;;  %v3300_v22 = vor.u32 %v3298_v28, %v3296_v56  ;;  %v6167_v2 = vrot.slane %v11864_v41, 1  ;;  %v3328_v27 = vrot.slane %v3326_v29, 1  ;;  %v11877_v56 = vld [vmem:[#allocation2 + $0x84] sm:$0xff]   ;;  %v6179_v41 = vrot.slane %v11880_v42, 1 }
 0x1e3   : > { %10752 = vmatprep.subr.bf16.mxu0 %v11900_v44  ;;  %v11906_v42 = vld [vmem:[#allocation2 + $0xcc] ss:$0 sps:$4 sm:$0x11]  }
 0x1e4   : > { %10997 = vmatpush3.bf16.msra.mxu1 %v11854_v26  ;;  %v6164_v26 = vsel %vm4016_vm4, %v6161_v37, %v6163_v47  ;;  %v3305_v24 = vsel %vm3189_vm13, %v3300_v22, %v3304_v7  ;;  %v6168_v0 = vsel %vm4016_vm4, %v6165_v33, %v6167_v2  ;;  %v3344_v37 = vrot.slane %v3342_v5, 1  ;;  %v11891_v47 = vld [vmem:[#allocation2 + $0xb8] sm:$0xff]  }
 0x1e5   : > { %10998 = vmatprep.subr.bf16.mxu1 %v11859_v4  ;;  %v6176_v33 = vsel %vm4016_vm4, %v6173_v62, %v6175_v52  ;;  %v11883_v7 = vld [vmem:[#allocation2 + $0x94] sm:$0xff]  }
 0x1e6   : > { %10753 = vmatpush3.bf16.msra.mxu0 %v11900_v44  ;;  %v3313_v44 = vsel %vm3189_vm13, %v3308_v30, %v3312_v16  ;;  %v6181_v30 = vrot.slane %v11883_v7, 1  ;;  %v11912_v7 = vld [vmem:[#allocation2 + $0x30] sm:$0xff]  }
 0x1e7   : > { %10951 = vmatmul.mubr.bf16.gmra.mrb[4].mxu1 %v6156_v31  ;;  %10802 = vmatprep.subr.bf16.mxu0 %v14487_v45  ;;  %v3324_v31 = vor.u32 %v3322_v10, %v3320_v51 }
 0x1e8   : > { %10954 = vmatprep.mubr.bf16.mxu1 %v6158_v32  ;;  %10999 = vmatpush3.bf16.msra.mxu1 %v11859_v4  ;;  %v6169_v4 = vrot.slane %v11866_v14, 1  ;;  %v3321_v32 = vsel %vm3189_vm13, %v3316_v50, %v3320_v51  ;;  %v11895_v14 = vld [vmem:[#allocation2 + $0xc0] ss:$0 sps:$4 sm:$0x11]   ;;  %v11890_v51 = vld [vmem:[#allocation2 + $0xa4] sm:$0xff]  }
 0x1e9   : > { %10707 = vmatmul.mubr.bf16.gmra.mrb[64].mxu0 %v3273_v15  ;;  %11000 = vmatprep.subr.bf16.mxu1 %v11868_v17  ;;  %v3329_v61 = vsel %vm3189_vm13, %v3324_v31, %v3328_v27  ;;  %v3330_v15 = vshrl.u32 %v11872_v8, 16  ;;  %v3366_v8 = vshll.u32 %v11888_v53, 16  ;;  %v3382_v10 = vshll.u32 %v11895_v14, 16  ;;  %v11957_v14 = vld [vmem:[%s15004_s2 + $0xe8] sm:$0xff]  }
 0x1ea   : > { %10710 = vmatprep.mubr.bf16.mxu0 %v3281_v55  ;;  %v6170_v36 = vsel %vm4016_vm4, %v6167_v2, %v6169_v4  ;;  %v11881_v55 = vld [vmem:[#allocation2 + $0xa0] sm:$0xff]   ;;  %v6185_v60 = vrot.slane %v11890_v51, 1  ;;  %v11919_v51 = vld [vmem:[%s15004_s2 + $0x1c8] sm:$0xff]  }
 0x1eb   : > { %v3332_v63 = vor.u32 %v3330_v15, %v3328_v27  ;;  %v3354_v28 = vshrl.u32 %v11881_v55, 16  ;;  %v3368_v48 = vrot.slane %v3366_v8, 1  ;;  %v11898_v27 = vld [vmem:[#allocation2] sm:$0xfe]   ;;  %v6195_v8 = vrot.slane %v11906_v42, 1 }
 0x1ec   : > { %11001 = vmatpush3.bf16.msra.mxu1 %v11868_v17  ;;  %v11869_v17 = vld [vmem:[#allocation2 + $0x6c] sm:$0xff]   ;;  %v11929_v42 = vld [vmem:[#allocation2 + $0x60] sm:$0xff]  }
 0x1ed   : > { %11002 = vmatprep.subr.bf16.mxu1 %v11873_v38  ;;  %v6171_v54 = vrot.slane %v11869_v17, 1  ;;  %v6183_v17 = vrot.slane %v11887_v43, 1 }
 0x1ef   : > { %10955 = vmatmul.mubr.bf16.gmra.mrb[8].mxu1 %v6160_v19  ;;  %v6172_v35 = vsel %vm4016_vm4, %v6169_v4, %v6171_v54  ;;  %v6174_v9 = vsel %vm4016_vm4, %v6171_v54, %v6173_v62  ;;  %v6182_v4 = vsel %vm4016_vm4, %v6179_v41, %v6181_v30  ;;  %v6184_v5 = vsel %vm4016_vm4, %v6181_v30, %v6183_v17  ;;  %v11894_v54 = vld [vmem:[#allocation2 + $0xac] sm:$0xff]  }
 0x1f0   : > { %10958 = vmatprep.mubr.bf16.mxu1 %v6162_v57  ;;  %11003 = vmatpush3.bf16.msra.mxu1 %v11873_v38  ;;  %v3336_v38 = vrot.slane %v3334_v21, 1  ;;  %v3358_v57 = vshll.u32 %v11884_v3, 16  ;;  %v3384_v21 = vrot.slane %v3382_v10, 1  ;;  %v6186_v15 = vsel %vm4016_vm4, %v6183_v17, %v6185_v60  ;;  %v11902_v62 = vld [vmem:[#allocation2 + $0x10] sm:$0xff]  }
 0x1f1   : > { %10711 = vmatmul.mubr.bf16.gmra.mrb[68].mxu0 %v3289_v39  ;;  %11004 = vmatprep.subr.bf16.mxu1 %v11885_v58  ;;  %v6177_v39 = vrot.slane %v11877_v56, 1  ;;  %v11924_v17 = vld [vmem:[%s15004_s2 + $0x1d0] sm:$0xff]  }
 0x1f2   : > { %10714 = vmatprep.mubr.bf16.mxu0 %v3297_v20  ;;  %v3340_v46 = vor.u32 %v3338_v40, %v3336_v38  ;;  %v3337_v19 = vsel %vm3189_vm13, %v3332_v63, %v3336_v38  ;;  %v3360_v59 = vrot.slane %v3358_v57, 1  ;;  %v11904_v40 = vld [vmem:[#allocation2 + $0x18] sm:$0xff]   ;;  %v11907_v57 = vld [vmem:[#allocation2 + $0x20] sm:$0xff]  }
 0x1f3   : > { %v6178_v22 = vsel %vm4016_vm4, %v6175_v52, %v6177_v39  ;;  %v6180_v2 = vsel %vm4016_vm4, %v6177_v39, %v6179_v41  ;;  %v11909_v52 = vld [vmem:[#allocation2 + $0x28] sm:$0xff]  }
 0x1f4   : > { %11005 = vmatpush3.bf16.msra.mxu1 %v11885_v58  ;;  %v3350_v58 = vshll.u32 %v11881_v55, 16  ;;  %v3345_v34 = vsel %vm3189_vm13, %v3340_v46, %v3344_v37  ;;  %v11897_v55 = vld [vmem:[#allocation2 + $0xb4] sm:$0xff]   ;;  %v11903_v46 = vld [vmem:[#allocation2 + $0xc4] sm:$0xff]  }
 0x1f5   : > { %11006 = vmatprep.subr.bf16.mxu1 %v11893_v6  ;;  %v6193_v39 = vrot.slane %v11903_v46, 1 }
 0x1f6   : > { %v3352_v20 = vrot.slane %v3350_v58, 1 }
 0x1f7   : > { %10959 = vmatmul.mubr.bf16.gmra.mrb[12].mxu1 %v6164_v26  ;;  %v3374_v26 = vshll.u32 %v11891_v47, 16  ;;  %v6196_v41 = vsel %vm4016_vm4, %v6193_v39, %v6195_v8  ;;  %v11934_v8 = vld [vmem:[#allocation2 + $0x70] sm:$0xff]  }
 0x1f8   : > { %10962 = vmatprep.mubr.bf16.mxu1 %v6166_v49  ;;  %11007 = vmatpush3.bf16.msra.mxu1 %v11893_v6  ;;  %v3348_v6 = vor.u32 %v3346_v23, %v3344_v37  ;;  %v3362_v49 = vshrl.u32 %v11884_v3, 16  ;;  %v6187_v37 = vrot.slane %v11894_v54, 1  ;;  %v6189_v3 = vrot.slane %v11897_v55, 1  ;;  %v11920_v55 = vld [vmem:[#allocation2 + $0x40] sm:$0xff]  }
 0x1f9   : > { %10715 = vmatmul.mubr.bf16.gmra.mrb[72].mxu0 %v3305_v24  ;;  %11008 = vmatprep.subr.bf16.mxu1 %v11905_v13  ;;  %v3376_v29 = vrot.slane %v3374_v26, 1  ;;  %v6191_v23 = vrot.slane %v11901_v25, 1 }
 0x1fa   : > { %10718 = vmatprep.mubr.bf16.mxu0 %v3313_v44  ;;  %v3353_v11 = vsel %vm3189_vm13, %v3348_v6, %v3352_v20  ;;  %v3364_v24 = vor.u32 %v3362_v49, %v3360_v59  ;;  %v3370_v44 = vshrl.u32 %v11888_v53, 16  ;;  %v6188_v56 = vsel %vm4016_vm4, %v6185_v60, %v6187_v37  ;;  %v11908_v49 = vld [vmem:[#allocation2 + $0x18] sm:$0xff]   ;;  %v11915_v60 = vld [vmem:[#allocation2 + $0x30] sm:$0xff]  }
 0x1fb   : > { %v6190_v58 = vsel %vm4016_vm4, %v6187_v37, %v6189_v3  ;;  %v4024_v6 = vrot.slane %v11907_v57, 1  ;;  %v11930_v37 = vld [vmem:[#allocation2 + $0x70] sm:$0xff]  }
 0x1fc   : > { %11009 = vmatpush3.bf16.msra.mxu1 %v11905_v13  ;;  %v3356_v13 = vor.u32 %v3354_v28, %v3352_v20  ;;  %v3372_v18 = vor.u32 %v3370_v44, %v3368_v48  ;;  %v3369_v50 = vsel %vm3189_vm13, %v3364_v24, %v3368_v48  ;;  %v11947_v20 = vld [vmem:[%s15004_s2 + $0xd0] sm:$0xff]   ;;  %v6192_v28 = vsel %vm4016_vm4, %v6189_v3, %v6191_v23  ;;  %v11916_v48 = vld [vmem:[#allocation2 + $0x40] sm:$0xff]   ;;  %v11918_v24 = vld [vmem:[#allocation2 + $0x48] sm:$0xff]  }
 0x1fd   : > { %11058 = vmatprep.subr.bf16.mxu1 %v14481_v1  ;;  %v4032_v43 = vrot.slane %v11916_v48, 1  ;;  %v4044_v46 = vrot.slane %v11930_v37, 1  ;;  %v11942_v48 = vld [vmem:[#allocation2 + $0x88] sm:$0xff]  }
 0x1fe   : > { %v3361_v16 = vsel %vm3189_vm13, %v3356_v13, %v3360_v59  ;;  %v3377_v12 = vsel %vm3189_vm13, %v3372_v18, %v3376_v29  ;;  %v6194_v59 = vsel %vm4016_vm4, %v6191_v23, %v6193_v39  ;;  %v11914_v13 = vld [vmem:[#allocation2 + $0x38] sm:$0xff]   ;;  %v11913_v18 = vld [vmem:[#allocation2 + $0x28] sm:$0xff]   ;;  %v14577_v39 = vld [vmem:[%s15004_s2 + $0x200] sm:$0xff]  }
 0x1ff   : > { %10963 = vmatmul.mubr.bf16.gmra.mrb[16].mxu1 %v6168_v0  ;;  %v11899_v0 = vld [vmem:[#allocation2 + $0x8] sm:$0xff]   ;;  %v4030_v26 = vrot.slane %v11914_v13, 1  ;;  %v11936_v13 = vld [vmem:[#allocation2 + $0x78] sm:$0xff]  }
 0x200   : > { %10966 = vmatprep.mubr.bf16.mxu1 %v6170_v36  ;;  %v3378_v36 = vshrl.u32 %v11891_v47, 16  ;;  %v4026_v47 = vrot.slane %v11909_v52, 1  ;;  %v11937_v23 = vld [vmem:[#allocation2 + $0x88] sm:$0xff]  }
 0x201   : > { %10719 = vmatmul.mubr.bf16.gmra.mrb[76].mxu0 %v3321_v32  ;;  %v4017_v32 = vrot.slane %v11898_v27, 1  ;;  %v4033_v10 = vsel %vm4016_vm4, %v4030_v26, %v4032_v43  ;;  %v11921_v27 = vld [vmem:[#allocation2 + $0x50] sm:$0xff]  }
 0x202   : > { %10722 = vmatprep.mubr.bf16.mxu0 %v3329_v61  ;;  %v3380_v31 = vor.u32 %v3378_v36, %v3376_v29  ;;  %v4018_v61 = vrot.slane %v11899_v0, 1  ;;  %v11961_v29 = vld [vmem:[%s15004_s2 + $0xf0] sm:$0xff]   ;;  %v4036_v36 = vrot.slane %v11921_v27, 1 }
 0x203   : > { %v11974_v37 = vld [vmem:[#allocation2 + $0x2c] sm:$0xff]  }
 0x204   : > { %v3385_v38 = vsel %vm3189_vm13, %v3380_v31, %v3384_v21  ;;  %v4019_v63 = vsel %vm4016_vm4, %v4017_v32, %v4018_v61  ;;  %v11933_v31 = vld [vmem:[%s15004_s2 + $0x1d8] sm:$0xff]   ;;  %v11926_v32 = vld [vmem:[#allocation2 + $0x60] sm:$0xff]  }
 0x205   : > { %v11917_v21 = vld [vmem:[#allocation2 + $0x38] sm:$0xff]  }
 0x207   : > { %10967 = vmatmul.mubr.bf16.gmra.mrb[20].mxu1 %v6172_v35  ;;  %v4020_v35 = vrot.slane %v11902_v62, 1  ;;  %v4040_v62 = vrot.slane %v11926_v32, 1  ;;  %v11972_v32 = vld [vmem:[#allocation2 + $0x18] sm:$0xff]  }
 0x208   : > { %10970 = vmatprep.mubr.bf16.mxu1 %v6174_v9  ;;  %v4022_v9 = vrot.slane %v11904_v40, 1  ;;  %v11922_v40 = vld [vmem:[#allocation2 + $0x48] sm:$0xff]  }
 0x209   : > { %10723 = vmatmul.mubr.bf16.gmra.mrb[80].mxu0 %v3337_v19  ;;  %v11944_v19 = vld [vmem:[%s15004_s2 + $0xc8] sm:$0xff]  }
 0x20a   : > { %10726 = vmatprep.mubr.bf16.mxu0 %v3345_v34  ;;  %v4021_v34 = vsel %vm4016_vm4, %v4018_v61, %v4020_v35  ;;  %v4023_v53 = vsel %vm4016_vm4, %v4020_v35, %v4022_v9  ;;  %v11932_v35 = vld [vmem:[#allocation2 + $0x78] sm:$0xff]  }
 0x20f   : > { %10971 = vmatmul.mubr.bf16.gmra.mrb[24].mxu1 %v6176_v33  ;;  %v11951_v33 = vld [vmem:[%s15004_s2 + $0xd8] sm:$0xff]  }
 0x210   : > { %10974 = vmatprep.mubr.bf16.mxu1 %v6178_v22  ;;  %v4027_v22 = vsel %vm4016_vm4, %v4024_v6, %v4026_v47 }
 0x211   : > { %10727 = vmatmul.mubr.bf16.gmra.mrb[84].mxu0 %v3353_v11  ;;  %v11954_v11 = vld [vmem:[%s15004_s2 + $0xe0] sm:$0xff]  }
 0x212   : > { %10730 = vmatprep.mubr.bf16.mxu0 %v3361_v16  ;;  %v4028_v16 = vrot.slane %v11912_v7, 1 }
 0x214   : > { %v4029_v30 = vsel %vm4016_vm4, %v4026_v47, %v4028_v16  ;;  %v4031_v44 = vsel %vm4016_vm4, %v4028_v16, %v4030_v26  ;;  %v11931_v47 = vld [vmem:[#allocation2 + $0x68] sm:$0xff]   ;;  %v11946_v16 = vld [vmem:[#allocation2 + $0xa0] sm:$0xff]  }
 0x217   : > { %10975 = vmatmul.mubr.bf16.gmra.mrb[28].mxu1 %v6180_v2  ;;  %v11911_v2 = vld [vmem:[#allocation2 + $0x20] sm:$0xff]  }
 0x218   : > { %10978 = vmatprep.mubr.bf16.mxu1 %v6182_v4  ;;  %v4034_v4 = vrot.slane %v11918_v24, 1 }
 0x219   : > { %10731 = vmatmul.mubr.bf16.gmra.mrb[88].mxu0 %v3369_v50  ;;  %v11964_v50 = vld [vmem:[%s15004_s2 + $0xf8] sm:$0xff]  }
 0x21a   : > { %10734 = vmatprep.mubr.bf16.mxu0 %v3377_v12  ;;  %v11923_v12 = vld [vmem:[#allocation2 + $0x58] sm:$0xff]   ;;  %v4035_v0 = vsel %vm4016_vm4, %v4032_v43, %v4034_v4  ;;  %v4037_v61 = vsel %vm4016_vm4, %v4034_v4, %v4036_v36  ;;  %v11945_v4 = vld [vmem:[#allocation2 + $0x90] sm:$0xff]  }
 0x21f   : > { %10979 = vmatmul.mubr.bf16.gmra.mrb[32].mxu1 %v6184_v5  ;;  %v11928_v5 = vld [vmem:[#allocation2 + $0x68] sm:$0xff]  }
 0x220   : > { %10982 = vmatprep.mubr.bf16.mxu1 %v6186_v15  ;;  %v11938_v15 = vld [vmem:[%s15004_s2 + $0x1e0] sm:$0xff]  }
 0x221   : > { %10735 = vmatmul.mubr.bf16.gmra.mrb[92].mxu0 %v3385_v38  ;;  %v4042_v38 = vrot.slane %v11928_v5, 1  ;;  %v11973_v5 = vld [vmem:[#allocation2 + $0x20] sm:$0xff]  }
 0x222   : > { %10754 = vmatprep.mubr.bf16.mxu0 %v4019_v63  ;;  %v11950_v63 = vld [vmem:[%s15004_s2 + $0x1e8] sm:$0xff]  }
 0x223   : > { %v4043_v25 = vsel %vm4016_vm4, %v4040_v62, %v4042_v38  ;;  %v4045_v57 = vsel %vm4016_vm4, %v4042_v38, %v4044_v46 }
 0x227   : > { %10983 = vmatmul.mubr.bf16.gmra.mrb[36].mxu1 %v6188_v56  ;;  %v11925_v56 = vld [vmem:[#allocation2 + $0x50] sm:$0xff]  }
 0x228   : > { %10986 = vmatprep.mubr.bf16.mxu1 %v6190_v58  ;;  %v4046_v58 = vrot.slane %v11932_v35, 1  ;;  %v11970_v35 = vld [vmem:[#allocation2 + $0xd0] sm:$0xff]  }
 0x229   : > { %10755 = vmatmul.mubr.bf16.vlgmr.msra.gmra.mrb[48].mxu0 %v4021_v34  ;;  %v11927_v34 = vld [vmem:[#allocation2 + $0x58] sm:$0xff]  }
 0x22a   : > { %10758 = vmatprep.mubr.bf16.mxu0 %v4023_v53  ;;  %10803 = vmatpush3.bf16.msra.mxu0 %v14487_v45  ;;  %v4025_v45 = vsel %vm4016_vm4, %v4022_v9, %v4024_v6  ;;  %v11958_v9 = vld [vmem:[%s15004_s2 + $0x1f0] sm:$0xff]   ;;  %v11935_v53 = vld [vmem:[#allocation2 + $0x80] sm:$0xff]   ;;  %v4047_v52 = vsel %vm4016_vm4, %v4044_v46, %v4046_v58  ;;  %v4050_v6 = vrot.slane %v11937_v23, 1 }
 0x22b   : > { %10804 = vmatprep.subr.bf16.mxu0 %v11944_v19  ;;  %v11978_v46 = vld [vmem:[#allocation2 + $0x30] sm:$0xff]  }
 0x22e   : > { %10805 = vmatpush3.bf16.msra.mxu0 %v11944_v19  ;;  %v11969_v19 = vld [vmem:[%s15004_s2 + $0x1f8] sm:$0xff]  }
 0x22f   : > { %10987 = vmatmul.mubr.bf16.gmra.mrb[40].mxu1 %v6192_v28  ;;  %10806 = vmatprep.subr.bf16.mxu0 %v11947_v20 }
 0x230   : > { %10990 = vmatprep.mubr.bf16.mxu1 %v6194_v59  ;;  %v11940_v59 = vld [vmem:[#allocation2 + $0x90] sm:$0xff]  }
 0x231   : > { %10759 = vmatmul.mubr.bf16.gmra.mrb[52].mxu0 %v4025_v45  ;;  %v11943_v45 = vld [vmem:[#allocation2 + $0x98] sm:$0xff]   ;;  %v4052_v7 = vrot.slane %v11940_v59, 1 }
 0x232   : > { %10762 = vmatprep.mubr.bf16.mxu0 %v4027_v22  ;;  %10807 = vmatpush3.bf16.msra.mxu0 %v11947_v20  ;;  %v4048_v20 = vrot.slane %v11935_v53, 1  ;;  %v4054_v22 = vrot.slane %v11943_v45, 1  ;;  %v11980_v53 = vld [vmem:[#allocation2 + $0x38] sm:$0xff]  }
 0x233   : > { %10808 = vmatprep.subr.bf16.mxu0 %v11951_v33 }
 0x234   : > { %v4049_v28 = vsel %vm4016_vm4, %v4046_v58, %v4048_v20  ;;  %v4055_v26 = vsel %vm4016_vm4, %v4052_v7, %v4054_v22 }
 0x236   : > { %10809 = vmatpush3.bf16.msra.mxu0 %v11951_v33  ;;  %v4051_v33 = vsel %vm4016_vm4, %v4048_v20, %v4050_v6  ;;  %v7465_v20 = vshrl.u32 %v11973_v5, 16 }
 0x237   : > { %10991 = vmatmul.mubr.bf16.gmra.mrb[44].mxu1 %v6196_v41  ;;  %10810 = vmatprep.subr.bf16.mxu0 %v11954_v11  ;;  %v11949_v41 = vld [vmem:[#allocation2 + $0xa8] sm:$0xff]  }
 0x238   : > { %11010 = vmatprep.mubr.bf16.mxu1 %v11908_v49  ;;  %v4056_v49 = vrot.slane %v11946_v16, 1  ;;  %v11983_v16 = vld [vmem:[#allocation2 + $0x4c] sm:$0xff]  }
 0x239   : > { %10763 = vmatmul.mubr.bf16.gmra.mrb[56].mxu0 %v4029_v30  ;;  %v4058_v30 = vrot.slane %v11949_v41, 1  ;;  %v11989_v41 = vld [vmem:[%s15004_s2 + $0x210] sm:$0xff]  }
 0x23a   : > { %10766 = vmatprep.mubr.bf16.mxu0 %v4031_v44  ;;  %10811 = vmatpush3.bf16.msra.mxu0 %v11954_v11  ;;  %v4053_v11 = vsel %vm4016_vm4, %v4050_v6, %v4052_v7  ;;  %v4057_v24 = vsel %vm4016_vm4, %v4054_v22, %v4056_v49  ;;  %v11953_v44 = vld [vmem:[#allocation2 + $0xb0] sm:$0xff]   ;;  %v11981_v22 = vld [vmem:[#allocation2 + $0x44] sm:$0xff]  }
 0x23b   : > { %10812 = vmatprep.subr.bf16.mxu0 %v11957_v14  ;;  %v4060_v43 = vrot.slane %v11953_v44, 1 }
 0x23e   : > { %10813 = vmatpush3.bf16.msra.mxu0 %v11957_v14  ;;  %v11939_v14 = vld [vmem:[#allocation2 + $0x80] sm:$0xff]  }
 0x23f   : > { %11011 = vmatmul.mubr.bf16.vlgmr.msra.gmra.mrb[0].mxu1 %v11911_v2  ;;  %10814 = vmatprep.subr.bf16.mxu0 %v11961_v29  ;;  %v11956_v2 = vld [vmem:[#allocation2 + $0xb8] sm:$0xff]  }
 0x240   : > { %11059 = vmatpush3.bf16.msra.mxu1 %v14481_v1  ;;  %11014 = vmatprep.mubr.bf16.mxu1 %v11913_v18  ;;  %v4038_v1 = vrot.slane %v11923_v12, 1  ;;  %v11948_v18 = vld [vmem:[#allocation2 + $0x98] sm:$0xff]  }
 0x241   : > { %10767 = vmatmul.mubr.bf16.gmra.mrb[60].mxu0 %v4033_v10  ;;  %11060 = vmatprep.subr.bf16.mxu1 %v11919_v51  ;;  %v11960_v10 = vld [vmem:[#allocation2 + $0xc0] ss:$0 sps:$4 sm:$0x11]  }
 0x242   : > { %10770 = vmatprep.mubr.bf16.mxu0 %v4035_v0  ;;  %10815 = vmatpush3.bf16.msra.mxu0 %v11961_v29  ;;  %v4039_v54 = vsel %vm4016_vm4, %v4036_v36, %v4038_v1  ;;  %v4041_v3 = vsel %vm4016_vm4, %v4038_v1, %v4040_v62  ;;  %v4059_v29 = vsel %vm4016_vm4, %v4056_v49, %v4058_v30  ;;  %v4064_v12 = vrot.slane %v11960_v10, 1  ;;  %v11952_v0 = vld [vmem:[#allocation2 + $0xa0] sm:$0xff]   ;;  %v11959_v1 = vld [vmem:[#allocation2 + $0xb0] sm:$0xff]  }
 0x243   : > { %10816 = vmatprep.subr.bf16.mxu0 %v11964_v50  ;;  %v11971_v62 = vld [vmem:[#allocation2 + $0x24] sm:$0xff]   ;;  %v7481_v49 = vshrl.u32 %v11978_v46, 16 }
 0x244   : > { %11061 = vmatpush3.bf16.msra.mxu1 %v11919_v51  ;;  %v4062_v51 = vrot.slane %v11956_v2, 1 }
 0x245   : > { %11062 = vmatprep.subr.bf16.mxu1 %v11924_v17 }
 0x246   : > { %10817 = vmatpush3.bf16.msra.mxu0 %v11964_v50  ;;  %v4061_v50 = vsel %vm4016_vm4, %v4058_v30, %v4060_v43  ;;  %v4063_v27 = vsel %vm4016_vm4, %v4060_v43, %v4062_v51  ;;  %v4065_v36 = vsel %vm4016_vm4, %v4062_v51, %v4064_v12 }
 0x247   : > { %11015 = vmatmul.mubr.bf16.gmra.mrb[4].mxu1 %v11915_v60  ;;  %v11963_v60 = vld [vmem:[#allocation2 + $0xc] sm:$0xff]  }
 0x248   : > { %11018 = vmatprep.mubr.bf16.mxu1 %v11917_v21  ;;  %11063 = vmatpush3.bf16.msra.mxu1 %v11924_v17  ;;  %v11955_v17 = vld [vmem:[#allocation2 + $0xa8] sm:$0xff]   ;;  %v11966_v21 = vld [vmem:[#allocation2 + $0x14] sm:$0xff]  }
 0x249   : > { %10771 = vmatmul.mubr.bf16.gmra.mrb[64].mxu0 %v4037_v61  ;;  %11064 = vmatprep.subr.bf16.mxu1 %v11933_v31  ;;  %v11968_v61 = vld [vmem:[#allocation2 + $0x1c] sm:$0xff]  }
 0x24a   : > { %10774 = vmatprep.mubr.bf16.mxu0 %v4039_v54  ;;  %v7456_v54 = vshll.u32 %v11972_v32, 16 }
 0x24c   : > { %11065 = vmatpush3.bf16.msra.mxu1 %v11933_v31  ;;  %v11962_v31 = vld [vmem:[#allocation2 + $0xb8] sm:$0xff]   ;;  %v7458_v38 = vrot.slane %v7456_v54, 1 }
 0x24d   : > { %11066 = vmatprep.subr.bf16.mxu1 %v11938_v15 }
 0x24f   : > { %11019 = vmatmul.mubr.bf16.gmra.mrb[8].mxu1 %v11920_v55  ;;  %v11967_v55 = vld [vmem:[#allocation2 + $0xc8] sm:$0xff]  }
 0x250   : > { %11022 = vmatprep.mubr.bf16.mxu1 %v11922_v40  ;;  %11067 = vmatpush3.bf16.msra.mxu1 %v11938_v15  ;;  %v11965_v15 = vld [vmem:[#allocation2 + $0xc0] sm:$0xff]   ;;  %v11976_v40 = vld [vmem:[#allocation2 + $0x28] sm:$0xff]  }
 0x251   : > { %10775 = vmatmul.mubr.bf16.gmra.mrb[68].mxu0 %v4041_v3  ;;  %11068 = vmatprep.subr.bf16.mxu1 %v11950_v63  ;;  %v7454_v3 = vshrl.u32 %v11972_v32, 16  ;;  %v7473_v23 = vshrl.u32 %v11976_v40, 16 }
 0x252   : > { %10778 = vmatprep.mubr.bf16.mxu0 %v4043_v25 }
 0x253   : > { %v7459_v25 = vor.u32 %v7458_v38, %v7454_v3  ;;  %v12017_v38 = vld [vmem:[%s15004_s2 + $0x230] sm:$0xff]  }
 0x254   : > { %11069 = vmatpush3.bf16.msra.mxu1 %v11950_v63  ;;  %v7461_v63 = vshll.u32 %v11973_v5, 16  ;;  %v11991_v5 = vld [vmem:[#allocation2 + $0x64] sm:$0xff]  }
 0x255   : > { %11070 = vmatprep.subr.bf16.mxu1 %v11958_v9 }
 0x257   : > { %11023 = vmatmul.mubr.bf16.gmra.mrb[12].mxu1 %v11925_v56  ;;  %v7469_v56 = vshll.u32 %v11976_v40, 16 }
 0x258   : > { %11026 = vmatprep.mubr.bf16.mxu1 %v11927_v34  ;;  %11071 = vmatpush3.bf16.msra.mxu1 %v11958_v9  ;;  %v7463_v9 = vrot.slane %v7461_v63, 1  ;;  %v11977_v34 = vld [vmem:[#allocation2 + $0x34] sm:$0xff]  }
 0x259   : > { %10779 = vmatmul.mubr.bf16.gmra.mrb[72].mxu0 %v4045_v57  ;;  %11072 = vmatprep.subr.bf16.mxu1 %v11969_v19  ;;  %v7477_v57 = vshll.u32 %v11978_v46, 16 }
 0x25a   : > { %10782 = vmatprep.mubr.bf16.mxu0 %v4047_v52  ;;  %v7464_v58 = vsel %vm3189_vm13, %v7459_v25, %v7463_v9  ;;  %v11979_v52 = vld [vmem:[#allocation2 + $0x3c] sm:$0xff]   ;;  %v7467_v59 = vor.u32 %v7465_v20, %v7463_v9 }
 0x25b   : > { %v7479_v6 = vrot.slane %v7477_v57, 1  ;;  %v12023_v9 = vld [vmem:[%s15004_s2 + $0x238] sm:$0xff]  }
 0x25c   : > { %11073 = vmatpush3.bf16.msra.mxu1 %v11969_v19  ;;  %v7471_v19 = vrot.slane %v7469_v56, 1  ;;  %v11999_v57 = vld [vmem:[#allocation2 + $0x78] sm:$0xff]  }
 0x25d   : > { %11122 = vmatprep.subr.bf16.mxu1 %v14577_v39  ;;  %v7483_v44 = vor.u32 %v7481_v49, %v7479_v6 }
 0x25e   : > { %v7472_v45 = vsel %vm3189_vm13, %v7467_v59, %v7471_v19 }
 0x25f   : > { %11027 = vmatmul.mubr.bf16.gmra.mrb[16].mxu1 %v11929_v42  ;;  %v7475_v42 = vor.u32 %v7473_v23, %v7471_v19  ;;  %v11995_v19 = vld [vmem:[#allocation2 + $0x74] sm:$0xff]  }
 0x260   : > { %11030 = vmatprep.mubr.bf16.mxu1 %v11931_v47  ;;  %v7485_v47 = vshll.u32 %v11980_v53, 16 }
 0x261   : > { %10783 = vmatmul.mubr.bf16.gmra.mrb[76].mxu0 %v4049_v28  ;;  %v11982_v28 = vld [vmem:[#allocation2 + $0x40] sm:$0xff]   ;;  %v7480_v7 = vsel %vm3189_vm13, %v7475_v42, %v7479_v6  ;;  %v7549_v6 = vshll.u32 %v11999_v57, 16 }
 0x262   : > { %10786 = vmatprep.mubr.bf16.mxu0 %v4051_v33  ;;  %v11984_v33 = vld [vmem:[%s15004_s2 + $0x208] sm:$0xff]   ;;  %v7497_v12 = vshrl.u32 %v11982_v28, 16 }
 0x267   : > { %11031 = vmatmul.mubr.bf16.gmra.mrb[20].mxu1 %v11934_v8  ;;  %v7487_v8 = vrot.slane %v7485_v47, 1  ;;  %v12001_v47 = vld [vmem:[#allocation2 + $0x80] sm:$0xff]  }
 0x268   : > { %11034 = vmatprep.mubr.bf16.mxu1 %v11936_v13  ;;  %v7493_v13 = vshll.u32 %v11982_v28, 16 }
 0x269   : > { %10787 = vmatmul.mubr.bf16.gmra.mrb[80].mxu0 %v4053_v11  ;;  %v11985_v11 = vld [vmem:[#allocation2 + $0x48] sm:$0xff]  }
 0x26a   : > { %10790 = vmatprep.mubr.bf16.mxu0 %v4055_v26  ;;  %v7489_v26 = vshrl.u32 %v11980_v53, 16  ;;  %v7495_v30 = vrot.slane %v7493_v13, 1  ;;  %v7505_v10 = vshrl.u32 %v11985_v11, 16  ;;  %v11997_v53 = vld [vmem:[#allocation2 + $0x7c] sm:$0xff]   ;;  %v12002_v13 = vld [vmem:[#allocation2 + $0x8c] sm:$0xff]  }
 0x26f   : > { %11035 = vmatmul.mubr.bf16.gmra.mrb[24].mxu1 %v11939_v14  ;;  %v7491_v14 = vor.u32 %v7489_v26, %v7487_v8 }
 0x270   : > { %11038 = vmatprep.mubr.bf16.mxu1 %v11942_v48  ;;  %v7501_v48 = vshll.u32 %v11985_v11, 16  ;;  %v7553_v11 = vshrl.u32 %v11999_v57, 16 }
 0x271   : > { %10791 = vmatmul.mubr.bf16.gmra.mrb[84].mxu0 %v4057_v24  ;;  %v11987_v24 = vld [vmem:[#allocation2 + $0x50] sm:$0xff]   ;;  %v7496_v2 = vsel %vm3189_vm13, %v7491_v14, %v7495_v30 }
 0x272   : > { %10794 = vmatprep.mubr.bf16.mxu0 %v4059_v29  ;;  %v7488_v29 = vsel %vm3189_vm13, %v7483_v44, %v7487_v8  ;;  %v7503_v43 = vrot.slane %v7501_v48, 1  ;;  %v7509_v51 = vshll.u32 %v11987_v24, 16  ;;  %v7513_v63 = vshrl.u32 %v11987_v24, 16  ;;  %v12006_v14 = vld [vmem:[#allocation2 + $0x90] sm:$0xff]  }
 0x273   : > { %v7557_v8 = vshll.u32 %v12001_v47, 16 }
 0x277   : > { %11039 = vmatmul.mubr.bf16.gmra.mrb[28].mxu1 %v11945_v4  ;;  %v11986_v4 = vld [vmem:[#allocation2 + $0x54] sm:$0xff]  }
 0x278   : > { %11042 = vmatprep.mubr.bf16.mxu1 %v11948_v18  ;;  %v11990_v18 = vld [vmem:[#allocation2 + $0x58] sm:$0xff]  }
 0x279   : > { %10795 = vmatmul.mubr.bf16.gmra.mrb[88].mxu0 %v4061_v50  ;;  %v11988_v50 = vld [vmem:[#allocation2 + $0x5c] sm:$0xff]  }
 0x27a   : > { %10798 = vmatprep.mubr.bf16.mxu0 %v4063_v27  ;;  %v12003_v27 = vld [vmem:[%s15004_s2 + $0x220] sm:$0xff]  }
 0x27f   : > { %11043 = vmatmul.mubr.bf16.gmra.mrb[32].mxu1 %v11952_v0  ;;  %v7507_v0 = vor.u32 %v7505_v10, %v7503_v43 }
 0x280   : > { %11046 = vmatprep.mubr.bf16.mxu1 %v11955_v17  ;;  %v7511_v17 = vrot.slane %v7509_v51, 1  ;;  %v7561_v51 = vshrl.u32 %v12001_v47, 16 }
 0x281   : > { %10799 = vmatmul.mubr.bf16.gmra.mrb[92].mxu0 %v4065_v36  ;;  %v7517_v36 = vshll.u32 %v11990_v18, 16 }
 0x282   : > { %10818 = vmatprep.mubr.bf16.mxu0 %v11963_v60  ;;  %v11992_v60 = vld [vmem:[#allocation2 + $0x60] sm:$0xff]   ;;  %v7512_v32 = vsel %vm3189_vm13, %v7507_v0, %v7511_v17  ;;  %v7515_v25 = vor.u32 %v7513_v63, %v7511_v17 }
 0x283   : > { %v7525_v54 = vshll.u32 %v11992_v60, 16  ;;  %v7529_v23 = vshrl.u32 %v11992_v60, 16  ;;  %v12009_v60 = vld [vmem:[#allocation2 + $0xa4] sm:$0xff]  }
 0x287   : > { %11047 = vmatmul.mubr.bf16.gmra.mrb[36].mxu1 %v11959_v1  ;;  %v7499_v1 = vor.u32 %v7497_v12, %v7495_v30 }
 0x288   : > { %11050 = vmatprep.mubr.bf16.mxu1 %v11962_v31  ;;  %v12012_v31 = vld [vmem:[%s15004_s2 + $0x228] sm:$0xff]  }
 0x289   : > { %10819 = vmatmul.mubr.bf16.vlgmr.msra.gmra.mrb[48].mxu0 %v11966_v21  ;;  %v7504_v21 = vsel %vm3189_vm13, %v7499_v1, %v7503_v43  ;;  %v12007_v43 = vld [vmem:[#allocation2 + $0x9c] sm:$0xff]  }
 0x28a   : > { %10822 = vmatprep.mubr.bf16.mxu0 %v11968_v61  ;;  %v7519_v61 = vrot.slane %v7517_v36, 1 }
 0x28c   : > { %v7520_v56 = vsel %vm3189_vm13, %v7515_v25, %v7519_v61  ;;  %v12016_v25 = vld [vmem:[#allocation2 + $0xbc] sm:$0xff]  }
 0x28f   : > { %11051 = vmatmul.mubr.bf16.gmra.mrb[40].mxu1 %v11965_v15  ;;  %v11994_v15 = vld [vmem:[#allocation2 + $0x68] sm:$0xff]  }
 0x290   : > { %11054 = vmatprep.mubr.bf16.mxu1 %v11967_v55  ;;  %v11993_v55 = vld [vmem:[#allocation2 + $0x6c] sm:$0xff]   ;;  %v7533_v3 = vshll.u32 %v11994_v15, 16 }
 0x291   : > { %10823 = vmatmul.mubr.bf16.gmra.mrb[52].mxu0 %v11971_v62  ;;  %v7521_v62 = vshrl.u32 %v11990_v18, 16 }
 0x292   : > { %10826 = vmatprep.mubr.bf16.mxu0 %v11974_v37  ;;  %v7527_v37 = vrot.slane %v7525_v54, 1 }
 0x293   : > { %v7523_v40 = vor.u32 %v7521_v62, %v7519_v61  ;;  %v7577_v61 = vshrl.u32 %v12006_v14, 16 }
 0x294   : > { %v7531_v28 = vor.u32 %v7529_v23, %v7527_v37 }
 0x295   : > { %v7528_v46 = vsel %vm3189_vm13, %v7523_v40, %v7527_v37  ;;  %v12014_v37 = vld [vmem:[#allocation2 + $0xb4] sm:$0xff]  }
 0x297   : > { %11055 = vmatmul.mubr.bf16.gmra.mrb[44].mxu1 %v11970_v35  ;;  %v11996_v35 = vld [vmem:[#allocation2 + $0x70] sm:$0xff]  }
 0x298   : > { %11074 = vmatprep.mubr.bf16.mxu1 %v7464_v58  ;;  %v7535_v58 = vrot.slane %v7533_v3, 1 }
 0x299   : > { %10827 = vmatmul.mubr.bf16.gmra.mrb[56].mxu0 %v11977_v34  ;;  %v7541_v34 = vshll.u32 %v11996_v35, 16 }
 0x29a   : > { %10830 = vmatprep.mubr.bf16.mxu0 %v11979_v52  ;;  %v7537_v52 = vshrl.u32 %v11994_v15, 16  ;;  %v7536_v59 = vsel %vm3189_vm13, %v7531_v28, %v7535_v58 }
 0x29b   : > { %v7543_v42 = vrot.slane %v7541_v34, 1  ;;  %v12020_v34 = vld [vmem:[#allocation2 + $0xc0] sm:$0xff]  }
 0x29c   : > { %v7539_v20 = vor.u32 %v7537_v52, %v7535_v58 }
 0x29f   : > { %11075 = vmatmul.mubr.bf16.vlgmr.msra.gmra.mrb[0].mxu1 %v7472_v45  ;;  %v7551_v45 = vrot.slane %v7549_v6, 1  ;;  %v12021_v6 = vld [vmem:[#allocation2 + $0xc8] sm:$0xff]  }
 0x2a0   : > { %11123 = vmatpush3.bf16.msra.mxu1 %v14577_v39  ;;  %11078 = vmatprep.mubr.bf16.mxu1 %v7480_v7  ;;  %v11998_v39 = vld [vmem:[%s15004_s2 + $0x218] sm:$0xff]   ;;  %v12000_v7 = vld [vmem:[#allocation2 + $0x84] sm:$0xff]  }
 0x2a1   : > { %10831 = vmatmul.mubr.bf16.gmra.mrb[60].mxu0 %v11981_v22  ;;  %11124 = vmatprep.subr.bf16.mxu1 %v11984_v33  ;;  %v12004_v22 = vld [vmem:[#allocation2 + $0x88] sm:$0xff]   ;;  %v7555_v26 = vor.u32 %v7553_v11, %v7551_v45 }
 0x2a2   : > { %10834 = vmatprep.mubr.bf16.mxu0 %v11983_v16  ;;  %v7545_v16 = vshrl.u32 %v11996_v35, 16  ;;  %v7565_v49 = vshll.u32 %v12004_v22, 16  ;;  %v12018_v35 = vld [vmem:[#allocation2 + $0xb8] sm:$0xff]  }
 0x2a3   : > { %v7617_v47 = vshrl.u32 %v12018_v35, 16 }
 0x2a4   : > { %11125 = vmatpush3.bf16.msra.mxu1 %v11984_v33  ;;  %v7544_v33 = vsel %vm3189_vm13, %v7539_v20, %v7543_v42  ;;  %v7547_v30 = vor.u32 %v7545_v16, %v7543_v42  ;;  %v7567_v44 = vrot.slane %v7565_v49, 1  ;;  %v12019_v20 = vld [vmem:[#allocation2 + $0xc4] sm:$0xff]   ;;  %v7621_v42 = vshll.u32 %v12020_v34, 16 }
 0x2a5   : > { %11126 = vmatprep.subr.bf16.mxu1 %v11989_v41  ;;  %v7633_v49 = vshrl.u32 %v12021_v6, 16 }
 0x2a6   : > { %v7552_v48 = vsel %vm3189_vm13, %v7547_v30, %v7551_v45  ;;  %v7629_v45 = vshll.u32 %v12021_v6, 16 }
 0x2a7   : > { %11079 = vmatmul.mubr.bf16.gmra.mrb[4].mxu1 %v7488_v29  ;;  %v7573_v29 = vshll.u32 %v12006_v14, 16 }
 0x2a8   : > { %11082 = vmatprep.mubr.bf16.mxu1 %v7496_v2  ;;  %11127 = vmatpush3.bf16.msra.mxu1 %v11989_v41  ;;  %v7559_v41 = vrot.slane %v7557_v8, 1  ;;  %v12008_v2 = vld [vmem:[#allocation2 + $0x98] sm:$0xff]   ;;  %v7631_v11 = vrot.slane %v7629_v45, 1 }
 0x2a9   : > { %10835 = vmatmul.mubr.bf16.gmra.mrb[64].mxu0 %v11986_v4  ;;  %11128 = vmatprep.subr.bf16.mxu1 %v11998_v39  ;;  %v7569_v4 = vshrl.u32 %v12004_v22, 16  ;;  %v7581_v10 = vshll.u32 %v12008_v2, 16 }
 0x2aa   : > { %10838 = vmatprep.mubr.bf16.mxu0 %v11988_v50  ;;  %v7560_v24 = vsel %vm3189_vm13, %v7555_v26, %v7559_v41  ;;  %v7575_v50 = vrot.slane %v7573_v29, 1  ;;  %v7563_v12 = vor.u32 %v7561_v51, %v7559_v41  ;;  %v7625_v26 = vshrl.u32 %v12020_v34, 16  ;;  %v12024_v41 = vld [vmem:[#allocation2 + $0xd8] ss:$0 sps:$4 sm:$0x11]  }
 0x2ab   : > { %v7571_v18 = vor.u32 %v7569_v4, %v7567_v44  ;;  %v7583_v36 = vrot.slane %v7581_v10, 1  ;;  %v7635_v30 = vor.u32 %v7633_v49, %v7631_v11  ;;  %v12025_v51 = vld [vmem:[#allocation2 + $0x18] sm:$0xfe]  }
 0x2ac   : > { %11129 = vmatpush3.bf16.msra.mxu1 %v11998_v39  ;;  %v12005_v39 = vld [vmem:[#allocation2 + $0x94] sm:$0xff]   ;;  %v7568_v0 = vsel %vm3189_vm13, %v7563_v12, %v7567_v44  ;;  %v7579_v62 = vor.u32 %v7577_v61, %v7575_v50  ;;  %v7645_v44 = vshll.u32 %v12024_v41, 16  ;;  %v8279_v10 = vrot.slane %v12025_v51, 1  ;;  %v12043_v41 = vld [vmem:[#allocation2 + $0xa8] sm:$0xff]  }
 0x2ad   : > { %11130 = vmatprep.subr.bf16.mxu1 %v12003_v27  ;;  %v7576_v17 = vsel %vm3189_vm13, %v7571_v18, %v7575_v50  ;;  %v12047_v51 = vld [vmem:[#allocation2 + $0xc8] sm:$0xff]  }
 0x2ae   : > { %v7647_v4 = vrot.slane %v7645_v44, 1  ;;  %v12045_v44 = vld [vmem:[#allocation2 + $0xb8] sm:$0xff]  }
 0x2af   : > { %11083 = vmatmul.mubr.bf16.gmra.mrb[8].mxu1 %v7504_v21  ;;  %v12011_v21 = vld [vmem:[#allocation2 + $0xac] sm:$0xff]  }
 0x2b0   : > { %11086 = vmatprep.mubr.bf16.mxu1 %v7512_v32  ;;  %11131 = vmatpush3.bf16.msra.mxu1 %v12003_v27  ;;  %v12010_v27 = vld [vmem:[#allocation2 + $0xa0] sm:$0xff]   ;;  %v7585_v32 = vshrl.u32 %v12008_v2, 16 }
 0x2b1   : > { %10839 = vmatmul.mubr.bf16.gmra.mrb[68].mxu0 %v11991_v5  ;;  %11132 = vmatprep.subr.bf16.mxu1 %v12012_v31  ;;  %v7589_v1 = vshll.u32 %v12010_v27, 16  ;;  %v12026_v2 = vld [vmem:[#allocation2 + $0x20] sm:$0xff]  }
 0x2b2   : > { %10842 = vmatprep.mubr.bf16.mxu0 %v11993_v55  ;;  %v7587_v5 = vor.u32 %v7585_v32, %v7583_v36  ;;  %v12015_v55 = vld [vmem:[#allocation2 + $0xb0] sm:$0xff]   ;;  %v8280_v18 = vrot.slane %v12026_v2, 1  ;;  %v8318_v2 = vrot.slane %v12045_v44, 1  ;;  %v14750_v44 = vld [vmem:[%s15006_s4] ss:$0 sm:$0xff] }
 0x2b3   : > { %v7591_v54 = vrot.slane %v7589_v1, 1  ;;  %v7605_v3 = vshll.u32 %v12015_v55, 16  ;;  %v7609_v28 = vshrl.u32 %v12015_v55, 16  ;;  %v12029_v1 = vld [vmem:[#allocation2 + $0x38] sm:$0xff]   ;;  %v12032_v55 = vld [vmem:[#allocation2 + $0x50] sm:$0xff]  }
 0x2b4   : > { %11133 = vmatpush3.bf16.msra.mxu1 %v12012_v31  ;;  %v12013_v31 = vld [vmem:[#allocation2 + $0xa8] sm:$0xff]   ;;  %v8281_v12 = vsel %vm4016_vm4, %v8279_v10, %v8280_v18  ;;  %v8286_v32 = vrot.slane %v12029_v1, 1  ;;  %v8322_v10 = vrot.slane %v12047_v51, 1 }
 0x2b5   : > { %11134 = vmatprep.subr.bf16.mxu1 %v12017_v38  ;;  %v7597_v15 = vshll.u32 %v12013_v31, 16  ;;  %v7592_v63 = vsel %vm3189_vm13, %v7587_v5, %v7591_v54  ;;  %v7607_v58 = vrot.slane %v7605_v3, 1  ;;  %v12034_v3 = vld [vmem:[#allocation2 + $0x60] sm:$0xff]  }
 0x2b7   : > { %11087 = vmatmul.mubr.bf16.gmra.mrb[12].mxu1 %v7520_v56  ;;  %v7599_v40 = vrot.slane %v7597_v15, 1  ;;  %v7593_v56 = vshrl.u32 %v12010_v27, 16  ;;  %v7611_v8 = vor.u32 %v7609_v28, %v7607_v58  ;;  %v12027_v27 = vld [vmem:[#allocation2 + $0x28] sm:$0xff]  }
 0x2b8   : > { %11090 = vmatprep.mubr.bf16.mxu1 %v7528_v46  ;;  %11135 = vmatpush3.bf16.msra.mxu1 %v12017_v38  ;;  %v7584_v38 = vsel %vm3189_vm13, %v7579_v62, %v7583_v36 }
 0x2b9   : > { %10843 = vmatmul.mubr.bf16.gmra.mrb[72].mxu0 %v11995_v19  ;;  %11136 = vmatprep.subr.bf16.mxu1 %v12023_v9  ;;  %v7613_v19 = vshll.u32 %v12018_v35, 16  ;;  %v7595_v57 = vor.u32 %v7593_v56, %v7591_v54  ;;  %v12031_v54 = vld [vmem:[#allocation2 + $0x48] sm:$0xff]  }
 0x2ba   : > { %10846 = vmatprep.mubr.bf16.mxu0 %v11997_v53  ;;  %v8290_v62 = vrot.slane %v12031_v54, 1  ;;  %v12035_v56 = vld [vmem:[#allocation2 + $0x68] sm:$0xff]  }
 0x2bb   : > { %v7600_v53 = vsel %vm3189_vm13, %v7595_v57, %v7599_v40  ;;  %v7615_v23 = vrot.slane %v7613_v19, 1  ;;  %v8298_v19 = vrot.slane %v12035_v56, 1 }
 0x2bc   : > { %11137 = vmatpush3.bf16.msra.mxu1 %v12023_v9  ;;  %v7601_v9 = vshrl.u32 %v12013_v31, 16 }
 0x2bd   : > { %v7616_v22 = vsel %vm3189_vm13, %v7611_v8, %v7615_v23  ;;  %v12041_v8 = vld [vmem:[#allocation2 + $0x98] sm:$0xff]  }
 0x2be   : > { %v7603_v46 = vor.u32 %v7601_v9, %v7599_v40  ;;  %v12033_v40 = vld [vmem:[#allocation2 + $0x58] sm:$0xff]  }
 0x2bf   : > { %11091 = vmatmul.mubr.bf16.gmra.mrb[16].mxu1 %v7536_v59  ;;  %v7619_v59 = vor.u32 %v7617_v47, %v7615_v23  ;;  %v8294_v35 = vrot.slane %v12033_v40, 1  ;;  %v12038_v23 = vld [vmem:[#allocation2 + $0x80] sm:$0xff]   ;;  %v12039_v47 = vld [vmem:[#allocation2 + $0x88] sm:$0xff]  }
 0x2c0   : > { %11094 = vmatprep.mubr.bf16.mxu1 %v7544_v33  ;;  %v7608_v52 = vsel %vm3189_vm13, %v7603_v46, %v7607_v58  ;;  %v7623_v33 = vrot.slane %v7621_v42, 1  ;;  %v12036_v58 = vld [vmem:[#allocation2 + $0x70] sm:$0xff]   ;;  %v8304_v42 = vrot.slane %v12038_v23, 1 }
 0x2c1   : > { %10847 = vmatmul.mubr.bf16.gmra.mrb[76].mxu0 %v12000_v7  ;;  %v12022_v7 = vld [vmem:[#allocation2 + $0xd0] sm:$0xff]   ;;  %v8300_v34 = vrot.slane %v12036_v58, 1 }
 0x2c2   : > { %10850 = vmatprep.mubr.bf16.mxu0 %v12002_v13  ;;  %v7624_v13 = vsel %vm3189_vm13, %v7619_v59, %v7623_v33  ;;  %v7637_v16 = vshll.u32 %v12022_v7, 16  ;;  %v7627_v14 = vor.u32 %v7625_v26, %v7623_v33  ;;  %v12040_v59 = vld [vmem:[#allocation2 + $0x90] sm:$0xff]   ;;  %v8306_v33 = vrot.slane %v12039_v47, 1 }
 0x2c3   : > { %v8308_v45 = vrot.slane %v12040_v59, 1 }
 0x2c7   : > { %11095 = vmatmul.mubr.bf16.gmra.mrb[20].mxu1 %v7552_v48  ;;  %v7639_v48 = vrot.slane %v7637_v16, 1 }
 0x2c8   : > { %11098 = vmatprep.mubr.bf16.mxu1 %v7560_v24  ;;  %v7641_v24 = vshrl.u32 %v12022_v7, 16  ;;  %v8307_v7 = vsel %vm4016_vm4, %v8304_v42, %v8306_v33 }
 0x2c9   : > { %10851 = vmatmul.mubr.bf16.gmra.mrb[80].mxu0 %v12005_v39  ;;  %v7632_v39 = vsel %vm3189_vm13, %v7627_v14, %v7631_v11  ;;  %v7640_v29 = vsel %vm3189_vm13, %v7635_v30, %v7639_v48  ;;  %v8310_v11 = vrot.slane %v12041_v8, 1  ;;  %v12044_v14 = vld [vmem:[#allocation2 + $0xb0] sm:$0xff]   ;;  %v8314_v30 = vrot.slane %v12043_v41, 1 }
 0x2ca   : > { %10854 = vmatprep.mubr.bf16.mxu0 %v12007_v43  ;;  %v7643_v43 = vor.u32 %v7641_v24, %v7639_v48  ;;  %v8316_v48 = vrot.slane %v12044_v14, 1 }
 0x2cb   : > { %v8311_v26 = vsel %vm4016_vm4, %v8308_v45, %v8310_v11 }
 0x2cc   : > { %v7648_v50 = vsel %vm3189_vm13, %v7643_v43, %v7647_v4  ;;  %v8319_v4 = vsel %vm4016_vm4, %v8316_v48, %v8318_v2 }
 0x2cf   : > { %11099 = vmatmul.mubr.bf16.gmra.mrb[24].mxu1 %v7568_v0  ;;  %v12028_v0 = vld [vmem:[#allocation2 + $0x30] sm:$0xff]  }
 0x2d0   : > { %11102 = vmatprep.mubr.bf16.mxu1 %v7576_v17  ;;  %v8282_v17 = vrot.slane %v12027_v27, 1  ;;  %v8284_v36 = vrot.slane %v12028_v0, 1 }
 0x2d1   : > { %10855 = vmatmul.mubr.bf16.gmra.mrb[84].mxu0 %v12009_v60 }
 0x2d2   : > { %10858 = vmatprep.mubr.bf16.mxu0 %v12011_v21  ;;  %v8283_v60 = vsel %vm4016_vm4, %v8280_v18, %v8282_v17  ;;  %v8285_v31 = vsel %vm4016_vm4, %v8282_v17, %v8284_v36  ;;  %v12030_v21 = vld [vmem:[#allocation2 + $0x40] sm:$0xff]   ;;  %v8287_v5 = vsel %vm4016_vm4, %v8284_v36, %v8286_v32 }
 0x2d3   : > { %v8288_v61 = vrot.slane %v12030_v21, 1 }
 0x2d5   : > { %v8289_v15 = vsel %vm4016_vm4, %v8286_v32, %v8288_v61 }
 0x2d7   : > { %11103 = vmatmul.mubr.bf16.gmra.mrb[28].mxu1 %v7584_v38  ;;  %v8292_v38 = vrot.slane %v12032_v55, 1 }
 0x2d8   : > { %11106 = vmatprep.mubr.bf16.mxu1 %v7592_v63  ;;  %v8291_v63 = vsel %vm4016_vm4, %v8288_v61, %v8290_v62 }
 0x2d9   : > { %10859 = vmatmul.mubr.bf16.gmra.mrb[88].mxu0 %v12014_v37  ;;  %v8293_v37 = vsel %vm4016_vm4, %v8290_v62, %v8292_v38  ;;  %v8295_v9 = vsel %vm4016_vm4, %v8292_v38, %v8294_v35 }
 0x2da   : > { %10862 = vmatprep.mubr.bf16.mxu0 %v12016_v25  ;;  %v8296_v25 = vrot.slane %v12034_v3, 1 }
 0x2dc   : > { %v8297_v46 = vsel %vm4016_vm4, %v8294_v35, %v8296_v25  ;;  %v8299_v57 = vsel %vm4016_vm4, %v8296_v25, %v8298_v19 }
 0x2df   : > { %11107 = vmatmul.mubr.bf16.gmra.mrb[32].mxu1 %v7600_v53  ;;  %v12037_v53 = vld [vmem:[#allocation2 + $0x78] sm:$0xff]  }
 0x2e0   : > { %11110 = vmatprep.mubr.bf16.mxu1 %v7608_v52  ;;  %v8301_v52 = vsel %vm4016_vm4, %v8298_v19, %v8300_v34 }
 0x2e1   : > { %10863 = vmatmul.mubr.bf16.gmra.mrb[92].mxu0 %v12019_v20  ;;  %v8302_v20 = vrot.slane %v12037_v53, 1 }
 0x2e3   : > { %v8303_v6 = vsel %vm4016_vm4, %v8300_v34, %v8302_v20  ;;  %v8305_v28 = vsel %vm4016_vm4, %v8302_v20, %v8304_v42 }
 0x2e7   : > { %11111 = vmatmul.mubr.bf16.gmra.mrb[36].mxu1 %v7616_v22  ;;  %v8309_v22 = vsel %vm4016_vm4, %v8306_v33, %v8308_v45 }
 0x2e8   : > { %11114 = vmatprep.mubr.bf16.mxu1 %v7624_v13  ;;  %v12042_v13 = vld [vmem:[#allocation2 + $0xa0] sm:$0xff]  }
 0x2e9   : > { %v8312_v16 = vrot.slane %v12042_v13, 1 }
 0x2eb   : > { %v8313_v49 = vsel %vm4016_vm4, %v8310_v11, %v8312_v16  ;;  %v8315_v24 = vsel %vm4016_vm4, %v8312_v16, %v8314_v30 }
 0x2ef   : > { %11115 = vmatmul.mubr.bf16.gmra.mrb[40].mxu1 %v7632_v39  ;;  %v8317_v39 = vsel %vm4016_vm4, %v8314_v30, %v8316_v48 }
 0x2f0   : > { %11118 = vmatprep.mubr.bf16.mxu1 %v7640_v29  ;;  %v12046_v29 = vld [vmem:[#allocation2 + $0xc0] sm:$0xff]  }
 0x2f1   : > { %v8320_v43 = vrot.slane %v12046_v29, 1 }
 0x2f3   : > { %v8321_v18 = vsel %vm4016_vm4, %v8318_v2, %v8320_v43  ;;  %v8323_v0 = vsel %vm4016_vm4, %v8320_v43, %v8322_v10  ;;  %v10180_v2 = vld [vmem:[%s12117_s29 + $0x8] sm:$0xff]   ;;  %v9965_v43 = vld [vmem:[%s12117_s29] sm:$0xff]  }
 0x2f7   : > { %11119 = vmatmul.mubr.bf16.gmra.mrb[44].mxu1 %v7648_v50  ;;  %v12048_v50 = vld [vmem:[#allocation2 + $0xd0] sm:$0xff]  }
 0x2f8   : > { %11138 = vmatprep.mubr.bf16.mxu1 %v8281_v12  ;;  %v8324_v27 = vrot.slane %v12048_v50, 1  ;;  %v12049_v12 = vld [vmem:[#allocation2 + $0xd8] ss:$0 sps:$4 sm:$0x11]   ;;  %v9970_v50 = vunpack.c.l.bf16 %v10180_v2 }
 0x2f9   : > { %v8326_v36 = vrot.slane %v12049_v12, 1 }
 0x2fa   : > { %v8325_v17 = vsel %vm4016_vm4, %v8322_v10, %v8324_v27  ;;  %v9971_v10 = vunpack.c.h.bf16 %v10180_v2 }
 0x2ff   : > { %11139 = vmatmul.mubr.bf16.vlgmr.msra.gmra.mrb[0].mxu1 %v8283_v60  ;;  %v8327_v60 = vsel %vm4016_vm4, %v8324_v27, %v8326_v36  ;;  %v9967_v36 = vunpack.c.h.bf16 %v9965_v43 }
 0x300   : > { %11142 = vmatprep.mubr.bf16.mxu1 %v8285_v31 }
 0x307   : > { %11143 = vmatmul.mubr.bf16.gmra.mrb[4].mxu1 %v8287_v5 }
 0x308   : > { %11146 = vmatprep.mubr.bf16.mxu1 %v8289_v15 }
 0x30f   : > { %11147 = vmatmul.mubr.bf16.gmra.mrb[8].mxu1 %v8291_v63 }
 0x310   : > { %11150 = vmatprep.mubr.bf16.mxu1 %v8293_v37 }
 0x317   : > { %11151 = vmatmul.mubr.bf16.gmra.mrb[12].mxu1 %v8295_v9 }
 0x318   : > { %11154 = vmatprep.mubr.bf16.mxu1 %v8297_v46 }
 0x31f   : > { %11155 = vmatmul.mubr.bf16.gmra.mrb[16].mxu1 %v8299_v57 }
 0x320   : > { %11158 = vmatprep.mubr.bf16.mxu1 %v8301_v52 }
 0x327   : > { %11159 = vmatmul.mubr.bf16.gmra.mrb[20].mxu1 %v8303_v6 }
 0x328   : > { %11162 = vmatprep.mubr.bf16.mxu1 %v8305_v28 }
 0x32f   : > { %11163 = vmatmul.mubr.bf16.gmra.mrb[24].mxu1 %v8307_v7 }
 0x330   : > { %11166 = vmatprep.mubr.bf16.mxu1 %v8309_v22 }
 0x337   : > { %11167 = vmatmul.mubr.bf16.gmra.mrb[28].mxu1 %v8311_v26 }
 0x338   : > { %11170 = vmatprep.mubr.bf16.mxu1 %v8313_v49 }
 0x33f   : > { %11171 = vmatmul.mubr.bf16.gmra.mrb[32].mxu1 %v8315_v24 }
 0x340   : > { %11174 = vmatprep.mubr.bf16.mxu1 %v8317_v39  ;;  %v15614_v39 = vlaneseq }
 0x342   : > { %v14753_v29 = vand.u32 127, %v15614_v39 }
 0x344   : > { %vm8723_vm13 = vcmp.lt.s32.totalorder %v14753_v29, 4 }
 0x347   : > { %11175 = vmatmul.mubr.bf16.gmra.mrb[36].mxu1 %v8319_v4 }
 0x348   : > { %11178 = vmatprep.mubr.bf16.mxu1 %v8321_v18 }
 0x34f   : > { %11179 = vmatmul.mubr.bf16.gmra.mrb[40].mxu1 %v8323_v0 }
 0x350   : > { %11182 = vmatprep.mubr.bf16.mxu1 %v8325_v17  ;;  %v9966_v17 = vunpack.c.l.bf16 %v9965_v43 }
 0x352   : > { %v8820_v43 = vsel %vm8723_vm13, %v9966_v17, 0.0 }
 0x357   : > { %11183 = vmatmul.mubr.bf16.gmra.mrb[44].mxu1 %v8327_v60 }
 0x35c   : > { %v10820_v1 = vpop.f32.mrb[48].mxu0 }
 0x35d   : > { %v4798_v31 = vpop.f32.mrb[49].mxu0  ;;  %v11186_v4 = vadd.f32 %v10820_v1, %v14750_v44 }
 0x35e   : > { %v10821_v21 = vpop.f32.mrb[50].mxu0  ;;  %v11188_v51 = vadd.f32 %v14750_v44, %v4798_v31 }
 0x35f   : > { %v4801_v32 = vpop.f32.mrb[51].mxu0  ;;  %v11190_v27 = vadd.f32 %v10821_v21, %v14750_v44  ;;  %v8823_v21 = vsel %vm8723_vm13, %v9971_v10, 0.0 }
 0x360   : > { %v11192_v60 = vadd.f32 %v14750_v44, %v4801_v32 }
 0x364   : > { %v14659_v61 = vpop.f32.mrb[52].mxu0 }
 0x365   : > { %v14661_v5 = vpop.f32.mrb[53].mxu0 }
 0x366   : > { %v14663_v54 = vpop.f32.mrb[54].mxu0  ;;  %v11196_v10 = vadd.f32 %v14750_v44, %v14661_v5 }
 0x367   : > { %v14665_v15 = vpop.f32.mrb[55].mxu0 }
 0x36c   : > { %v14667_v55 = vpop.f32.mrb[56].mxu0 }
 0x36d   : > { %v14669_v62 = vpop.f32.mrb[57].mxu0 }
 0x36e   : > { %v14671_v38 = vpop.f32.mrb[58].mxu0 }
 0x36f   : > { %v14673_v63 = vpop.f32.mrb[59].mxu0 }
 0x374   : > { %v14675_v40 = vpop.f32.mrb[60].mxu0 }
 0x375   : > { %v14677_v37 = vpop.f32.mrb[61].mxu0 }
 0x376   : > { %v14679_v3 = vpop.f32.mrb[62].mxu0 }
 0x377   : > { %v14681_v35 = vpop.f32.mrb[63].mxu0 }
 0x37c   : > { %v14683_v25 = vpop.f32.mrb[64].mxu0 }
 0x37d   : > { %v14685_v9 = vpop.f32.mrb[65].mxu0 }
 0x37e   : > { %v14687_v56 = vpop.f32.mrb[66].mxu0 }
 0x37f   : > { %v14689_v46 = vpop.f32.mrb[67].mxu0 }
 0x384   : > { %v14691_v58 = vpop.f32.mrb[68].mxu0 }
 0x385   : > { %v14693_v19 = vpop.f32.mrb[69].mxu0 }
 0x386   : > { %v14695_v34 = vpop.f32.mrb[70].mxu0 }
 0x387   : > { %v14697_v57 = vpop.f32.mrb[71].mxu0 }
 0x38c   : > { %v14699_v53 = vpop.f32.mrb[72].mxu0 }
 0x38d   : > { %v14701_v52 = vpop.f32.mrb[73].mxu0 }
 0x38e   : > { %v14703_v23 = vpop.f32.mrb[74].mxu0 }
 0x38f   : > { %v14705_v20 = vpop.f32.mrb[75].mxu0 }
 0x394   : > { %v14707_v42 = vpop.f32.mrb[76].mxu0 }
 0x395   : > { %v14709_v6 = vpop.f32.mrb[77].mxu0 }
 0x396   : > { %v14711_v47 = vpop.f32.mrb[78].mxu0 }
 0x397   : > { %v14713_v28 = vpop.f32.mrb[79].mxu0 }
 0x39c   : > { %v14715_v59 = vpop.f32.mrb[80].mxu0 }
 0x39d   : > { %v14717_v33 = vpop.f32.mrb[81].mxu0 }
 0x39e   : > { %v14719_v45 = vpop.f32.mrb[82].mxu0 }
 0x39f   : > { %v14721_v7 = vpop.f32.mrb[83].mxu0 }
 0x3a4   : > { %v14723_v8 = vpop.f32.mrb[84].mxu0 }
 0x3a5   : > { %v14725_v22 = vpop.f32.mrb[85].mxu0 }
 0x3a6   : > { %v14727_v13 = vpop.f32.mrb[86].mxu0 }
 0x3a7   : > { %v14729_v11 = vpop.f32.mrb[87].mxu0 }
 0x3ac   : > { %v14731_v16 = vpop.f32.mrb[88].mxu0 }
 0x3ad   : > { %v14733_v26 = vpop.f32.mrb[89].mxu0 }
 0x3ae   : > { %v14735_v41 = vpop.f32.mrb[90].mxu0 }
 0x3af   : > { %v14737_v49 = vpop.f32.mrb[91].mxu0 }
 0x3b0   : > { %15609 = vst [vmem:[#allocation11_spill] sm:$0xff] %v14737_v49  ;;  %v10184_v49 = vld [vmem:[%s12117_s29 + $0x28] sm:$0xff]  }
 0x3b4   : > { %v14739_v14 = vpop.f32.mrb[92].mxu0 }
 0x3b5   : > { %15610 = vst [vmem:[#allocation8_spill] sm:$0xff] %v14739_v14  ;;  %v14741_v30 = vpop.f32.mrb[93].mxu0  ;;  %v8822_v14 = vsel %vm8723_vm13, %v9970_v50, 0.0 }
 0x3b6   : > { %15611 = vst [vmem:[#allocation5_spill] sm:$0xff] %v14741_v30  ;;  %v14743_v48 = vpop.f32.mrb[94].mxu0  ;;  %v10182_v30 = vld [vmem:[%s12117_s29 + $0x18] sm:$0xff]  }
 0x3b7   : > { %15612 = vst [vmem:[#allocation12_spill] sm:$0xff] %v14743_v48  ;;  %v14745_v24 = vpop.f32.mrb[95].mxu0 }
 0x3b8   : > { %15613 = vst [vmem:[#allocation10_spill] sm:$0xff] %v14745_v24 }
 0x3d2   : > { %v11140_v18 = vpop.f32.mrb[0].mxu1 }
 0x3d3   : > { %v11187_v12 = vadd.f32 %v11186_v4, %v11140_v18  ;;  %v8434_v0 = vpop.f32.mrb[1].mxu1  ;;  %v10181_v18 = vld [vmem:[%s12117_s29 + $0x10] sm:$0xff]  }
 0x3d4   : > { %v11189_v39 = vadd.f32 %v11188_v51, %v8434_v0  ;;  %v11141_v24 = vpop.f32.mrb[2].mxu1  ;;  %v8821_v51 = vsel %vm8723_vm13, %v9967_v36, 0.0  ;;  %v9979_v36 = vunpack.c.h.bf16 %v10182_v30  ;;  %v9975_v5 = vunpack.c.h.bf16 %v10181_v18 }
 0x3d5   : > { %v8918_v1 = vmax.f32 %v11187_v12, 0.0  ;;  %v11191_v48 = vadd.f32 %v11190_v27, %v11141_v24  ;;  %v8437_v31 = vpop.f32.mrb[3].mxu1  ;;  %v9978_v27 = vunpack.c.l.bf16 %v10182_v30  ;;  %v11194_v12 = vadd.f32 %v14659_v61, %v14750_v44 }
 0x3d6   : > { %v8916_v2 = vmax.f32 %v11189_v39, 0.0  ;;  %v11193_v4 = vadd.f32 %v11192_v60, %v8437_v31  ;;  %v9974_v39 = vunpack.c.l.bf16 %v10181_v18  ;;  %v11198_v61 = vadd.f32 %v14663_v54, %v14750_v44 }
 0x3d7   : > { %v8919_v32 = vmax.f32 %v11191_v48, 0.0  ;;  %v8966_v50 = vadd.f32 %v8918_v1, %v8822_v14  ;;  %v8826_v54 = vsel %vm8723_vm13, %v9978_v27, 0.0 }
 0x3d8   : > { %v8917_v24 = vmax.f32 %v11193_v4, 0.0  ;;  %v8964_v60 = vadd.f32 %v8916_v2, %v8820_v43  ;;  %v11200_v2 = vadd.f32 %v14750_v44, %v14665_v15  ;;  %v8824_v15 = vsel %vm8723_vm13, %v9974_v39, 0.0 }
 0x3d9   : > { %v8967_v0 = vadd.f32 %v8919_v32, %v8823_v21 }
 0x3da   : > { %v8965_v48 = vadd.f32 %v8917_v24, %v8821_v51  ;;  %v11144_v17 = vpop.f32.mrb[4].mxu1 }
 0x3db   : > { %v10068_v14 = vpack.c.bf16 %v8967_v0, %v8966_v50  ;;  %v11195_v1 = vadd.f32 %v11194_v12, %v11144_v17  ;;  %v8450_v31 = vpop.f32.mrb[5].mxu1  ;;  %v8827_v12 = vsel %vm8723_vm13, %v9979_v36, 0.0  ;;  %v10183_v50 = vld [vmem:[%s12117_s29 + $0x20] sm:$0xff]   ;;  %v11202_v17 = vadd.f32 %v14667_v55, %v14750_v44 }
 0x3dc   : > { %v10063_v21 = vpack.c.bf16 %v8965_v48, %v8964_v60  ;;  %v11197_v4 = vadd.f32 %v11196_v10, %v8450_v31  ;;  %v11145_v43 = vpop.f32.mrb[6].mxu1  ;;  %v8825_v10 = vsel %vm8723_vm13, %v9975_v5, 0.0  ;;  %v9986_v48 = vunpack.c.l.bf16 %v10184_v49 }
 0x3dd   : > { %10203 = vst [vmem:[%s14781_s27 + $0x8] sm:$0xff] %v10068_v14   ;;  %v8922_v32 = vmax.f32 %v11195_v1, 0.0  ;;  %v11199_v51 = vadd.f32 %v11198_v61, %v11145_v43  ;;  %v8453_v24 = vpop.f32.mrb[7].mxu1  ;;  %v9982_v14 = vunpack.c.l.bf16 %v10183_v50  ;;  %v11204_v36 = vadd.f32 %v14750_v44, %v14669_v62 }
 0x3de   : > { %10064 = vst [vmem:[%s14781_s27] sm:$0xff] %v10063_v21   ;;  %v8920_v30 = vmax.f32 %v11197_v4, 0.0  ;;  %v11201_v18 = vadd.f32 %v11200_v2, %v8453_v24  ;;  %v9987_v2 = vunpack.c.h.bf16 %v10184_v49  ;;  %v11206_v5 = vadd.f32 %v14671_v38, %v14750_v44 }
 0x3df   : > { %v8923_v0 = vmax.f32 %v11199_v51, 0.0  ;;  %v8970_v61 = vadd.f32 %v8922_v32, %v8826_v54  ;;  %v9983_v55 = vunpack.c.h.bf16 %v10183_v50  ;;  %v11208_v32 = vadd.f32 %v14750_v44, %v14673_v63 }
 0x3e0   : > { %v8921_v60 = vmax.f32 %v11201_v18, 0.0  ;;  %v8968_v1 = vadd.f32 %v8920_v30, %v8824_v15  ;;  %v10186_v18 = vld [vmem:[%s12117_s29 + $0x38] sm:$0xff]   ;;  %v8830_v38 = vsel %vm8723_vm13, %v9986_v48, 0.0  ;;  %v8831_v15 = vsel %vm8723_vm13, %v9987_v2, 0.0 }
 0x3e1   : > { %v8971_v27 = vadd.f32 %v8923_v0, %v8827_v12  ;;  %v10185_v0 = vld [vmem:[%s12117_s29 + $0x30] sm:$0xff]   ;;  %v8828_v63 = vsel %vm8723_vm13, %v9982_v14, 0.0 }
 0x3e2   : > { %v8969_v31 = vadd.f32 %v8921_v60, %v8825_v10  ;;  %v11148_v39 = vpop.f32.mrb[8].mxu1  ;;  %v8829_v60 = vsel %vm8723_vm13, %v9983_v55, 0.0 }
 0x3e3   : > { %v10078_v21 = vpack.c.bf16 %v8971_v27, %v8970_v61  ;;  %v11203_v4 = vadd.f32 %v11202_v17, %v11148_v39  ;;  %v8466_v43 = vpop.f32.mrb[9].mxu1  ;;  %v9994_v61 = vunpack.c.l.bf16 %v10186_v18  ;;  %v11210_v27 = vadd.f32 %v14675_v40, %v14750_v44 }
 0x3e4   : > { %v10073_v51 = vpack.c.bf16 %v8969_v31, %v8968_v1  ;;  %v11205_v24 = vadd.f32 %v11204_v36, %v8466_v43  ;;  %v11149_v62 = vpop.f32.mrb[10].mxu1  ;;  %v9990_v1 = vunpack.c.l.bf16 %v10185_v0  ;;  %v11212_v31 = vadd.f32 %v14750_v44, %v14677_v37 }
 0x3e5   : > { %10205 = vst [vmem:[%s14781_s27 + $0x18] sm:$0xff] %v10078_v21   ;;  %v8926_v54 = vmax.f32 %v11203_v4, 0.0  ;;  %v11207_v30 = vadd.f32 %v11206_v5, %v11149_v62  ;;  %v8469_v12 = vpop.f32.mrb[11].mxu1  ;;  %v9995_v5 = vunpack.c.h.bf16 %v10186_v18  ;;  %v11214_v21 = vadd.f32 %v14679_v3, %v14750_v44 }
 0x3e6   : > { %10204 = vst [vmem:[%s14781_s27 + $0x10] sm:$0xff] %v10073_v51   ;;  %v8924_v49 = vmax.f32 %v11205_v24, 0.0  ;;  %v11209_v50 = vadd.f32 %v11208_v32, %v8469_v12  ;;  %v9991_v40 = vunpack.c.h.bf16 %v10185_v0  ;;  %v11216_v32 = vadd.f32 %v14750_v44, %v14681_v35  ;;  %v10188_v12 = vld [vmem:[%s12117_s29 + $0x48] sm:$0xff]  }
 0x3e7   : > { %v8927_v10 = vmax.f32 %v11207_v30, 0.0  ;;  %v8974_v36 = vadd.f32 %v8926_v54, %v8830_v38  ;;  %v8834_v3 = vsel %vm8723_vm13, %v9994_v61, 0.0  ;;  %v8835_v38 = vsel %vm8723_vm13, %v9995_v5, 0.0 }
 0x3e8   : > { %v8925_v17 = vmax.f32 %v11209_v50, 0.0  ;;  %v8972_v39 = vadd.f32 %v8924_v49, %v8828_v63  ;;  %v8832_v35 = vsel %vm8723_vm13, %v9990_v1, 0.0  ;;  %v8833_v0 = vsel %vm8723_vm13, %v9991_v40, 0.0 }
 0x3e9   : > { %v8975_v48 = vadd.f32 %v8927_v10, %v8831_v15  ;;  %v10187_v15 = vld [vmem:[%s12117_s29 + $0x40] sm:$0xff]   ;;  %v10002_v10 = vunpack.c.l.bf16 %v10188_v12 }
 0x3ea   : > { %v8973_v2 = vadd.f32 %v8925_v17, %v8829_v60  ;;  %v11152_v14 = vpop.f32.mrb[12].mxu1  ;;  %v11218_v60 = vadd.f32 %v14683_v25, %v14750_v44  ;;  %v9999_v25 = vunpack.c.h.bf16 %v10187_v15 }
 0x3eb   : > { %v10088_v4 = vpack.c.bf16 %v8975_v48, %v8974_v36  ;;  %v11211_v43 = vadd.f32 %v11210_v27, %v11152_v14  ;;  %v8482_v55 = vpop.f32.mrb[13].mxu1  ;;  %v9998_v27 = vunpack.c.l.bf16 %v10187_v15  ;;  %v11220_v36 = vadd.f32 %v14750_v44, %v14685_v9 }
 0x3ec   : > { %v10083_v51 = vpack.c.bf16 %v8973_v2, %v8972_v39  ;;  %v11213_v24 = vadd.f32 %v11212_v31, %v8482_v55  ;;  %v11153_v37 = vpop.f32.mrb[14].mxu1  ;;  %v10003_v39 = vunpack.c.h.bf16 %v10188_v12  ;;  %v11222_v2 = vadd.f32 %v14687_v56, %v14750_v44 }
 0x3ed   : > { %10207 = vst [vmem:[%s14781_s27 + $0x28] sm:$0xff] %v10088_v4   ;;  %v8930_v62 = vmax.f32 %v11211_v43, 0.0  ;;  %v11215_v54 = vadd.f32 %v11214_v21, %v11153_v37  ;;  %v8485_v30 = vpop.f32.mrb[15].mxu1  ;;  %v11224_v4 = vadd.f32 %v14750_v44, %v14689_v46  ;;  %v8838_v56 = vsel %vm8723_vm13, %v10002_v10, 0.0 }
 0x3ee   : > { %10206 = vst [vmem:[%s14781_s27 + $0x20] sm:$0xff] %v10083_v51   ;;  %v8928_v18 = vmax.f32 %v11213_v24, 0.0  ;;  %v11217_v49 = vadd.f32 %v11216_v32, %v8485_v30  ;;  %v10190_v24 = vld [vmem:[%s12117_s29 + $0x58] sm:$0xff]   ;;  %v10189_v30 = vld [vmem:[%s12117_s29 + $0x50] sm:$0xff]   ;;  %v8836_v46 = vsel %vm8723_vm13, %v9998_v27, 0.0 }
 0x3ef   : > { %v8931_v50 = vmax.f32 %v11215_v54, 0.0  ;;  %v8978_v17 = vadd.f32 %v8930_v62, %v8834_v3  ;;  %v8839_v62 = vsel %vm8723_vm13, %v10003_v39, 0.0  ;;  %v8837_v3 = vsel %vm8723_vm13, %v9999_v25, 0.0 }
 0x3f0   : > { %v8929_v63 = vmax.f32 %v11217_v49, 0.0  ;;  %v8976_v48 = vadd.f32 %v8928_v18, %v8832_v35  ;;  %v11226_v49 = vadd.f32 %v14691_v58, %v14750_v44  ;;  %v10007_v58 = vunpack.c.h.bf16 %v10189_v30 }
 0x3f1   : > { %v8979_v61 = vadd.f32 %v8931_v50, %v8835_v38  ;;  %v10010_v38 = vunpack.c.l.bf16 %v10190_v24  ;;  %v10006_v50 = vunpack.c.l.bf16 %v10189_v30 }
 0x3f2   : > { %v8977_v31 = vadd.f32 %v8929_v63, %v8833_v0  ;;  %v11156_v1 = vpop.f32.mrb[16].mxu1  ;;  %v11228_v0 = vadd.f32 %v14750_v44, %v14693_v19 }
 0x3f3   : > { %v10098_v14 = vpack.c.bf16 %v8979_v61, %v8978_v17  ;;  %v11219_v5 = vadd.f32 %v11218_v60, %v11156_v1  ;;  %v8498_v21 = vpop.f32.mrb[17].mxu1  ;;  %v10011_v17 = vunpack.c.h.bf16 %v10190_v24  ;;  %v11230_v61 = vadd.f32 %v14695_v34, %v14750_v44 }
 0x3f4   : > { %v10093_v43 = vpack.c.bf16 %v8977_v31, %v8976_v48  ;;  %v11221_v55 = vadd.f32 %v11220_v36, %v8498_v21  ;;  %v11157_v9 = vpop.f32.mrb[18].mxu1  ;;  %v11232_v31 = vadd.f32 %v14750_v44, %v14697_v57  ;;  %v10192_v21 = vld [vmem:[%s12117_s29 + $0x68] sm:$0xff]   ;;  %v8842_v34 = vsel %vm8723_vm13, %v10010_v38, 0.0 }
 0x3f5   : > { %10209 = vst [vmem:[%s14781_s27 + $0x38] sm:$0xff] %v10098_v14   ;;  %v8934_v40 = vmax.f32 %v11219_v5, 0.0  ;;  %v11223_v32 = vadd.f32 %v11222_v2, %v11157_v9  ;;  %v8501_v51 = vpop.f32.mrb[19].mxu1  ;;  %v8840_v57 = vsel %vm8723_vm13, %v10006_v50, 0.0  ;;  %v11234_v24 = vadd.f32 %v14699_v53, %v14750_v44 }
 0x3f6   : > { %10208 = vst [vmem:[%s14781_s27 + $0x30] sm:$0xff] %v10093_v43   ;;  %v8932_v37 = vmax.f32 %v11221_v55, 0.0  ;;  %v11225_v54 = vadd.f32 %v11224_v4, %v8501_v51  ;;  %v8843_v4 = vsel %vm8723_vm13, %v10011_v17, 0.0  ;;  %v10191_v55 = vld [vmem:[%s12117_s29 + $0x60] sm:$0xff]   ;;  %v10018_v51 = vunpack.c.l.bf16 %v10192_v21  ;;  %v10194_v17 = vld [vmem:[%s12117_s29 + $0x78] sm:$0xff]  }
 0x3f7   : > { %v8935_v12 = vmax.f32 %v11223_v32, 0.0  ;;  %v8982_v15 = vadd.f32 %v8934_v40, %v8838_v56  ;;  %v8841_v40 = vsel %vm8723_vm13, %v10007_v58, 0.0  ;;  %v10015_v53 = vunpack.c.h.bf16 %v10191_v55 }
 0x3f8   : > { %v8933_v18 = vmax.f32 %v11225_v54, 0.0  ;;  %v8980_v63 = vadd.f32 %v8932_v37, %v8836_v46  ;;  %v11236_v54 = vadd.f32 %v14750_v44, %v14701_v52 }
 0x3f9   : > { %v8983_v35 = vadd.f32 %v8935_v12, %v8839_v62  ;;  %v10014_v62 = vunpack.c.l.bf16 %v10191_v55  ;;  %v11246_v55 = vadd.f32 %v14711_v47, %v14750_v44 }
 0x3fa   : > { %v8981_v10 = vadd.f32 %v8933_v18, %v8837_v3  ;;  %v11160_v60 = vpop.f32.mrb[20].mxu1  ;;  %v10019_v3 = vunpack.c.h.bf16 %v10192_v21  ;;  %v11238_v18 = vadd.f32 %v14703_v23, %v14750_v44  ;;  %v8846_v23 = vsel %vm8723_vm13, %v10018_v51, 0.0 }
 0x3fb   : > { %v10108_v27 = vpack.c.bf16 %v8983_v35, %v8982_v15  ;;  %v11227_v36 = vadd.f32 %v11226_v49, %v11160_v60  ;;  %v8514_v48 = vpop.f32.mrb[21].mxu1  ;;  %v11240_v35 = vadd.f32 %v14750_v44, %v14705_v20  ;;  %v8844_v20 = vsel %vm8723_vm13, %v10014_v62, 0.0 }
 0x3fc   : > { %v10103_v1 = vpack.c.bf16 %v8981_v10, %v8980_v63  ;;  %v11229_v39 = vadd.f32 %v11228_v0, %v8514_v48  ;;  %v11161_v19 = vpop.f32.mrb[22].mxu1  ;;  %v10193_v48 = vld [vmem:[%s12117_s29 + $0x70] sm:$0xff]   ;;  %v11244_v21 = vadd.f32 %v14750_v44, %v14709_v6 }
 0x3fd   : > { %10211 = vst [vmem:[%s14781_s27 + $0x48] sm:$0xff] %v10108_v27   ;;  %v8938_v2 = vmax.f32 %v11227_v36, 0.0  ;;  %v11231_v14 = vadd.f32 %v11230_v61, %v11161_v19  ;;  %v8517_v5 = vpop.f32.mrb[23].mxu1  ;;  %v8847_v27 = vsel %vm8723_vm13, %v10019_v3, 0.0  ;;  %v11242_v19 = vadd.f32 %v14707_v42, %v14750_v44  ;;  %v10195_v3 = vld [vmem:[%s12117_s29 + $0x80] sm:$0xff]  }
 0x3fe   : > { %10210 = vst [vmem:[%s14781_s27 + $0x40] sm:$0xff] %v10103_v1   ;;  %v8936_v25 = vmax.f32 %v11229_v39, 0.0  ;;  %v11233_v43 = vadd.f32 %v11232_v31, %v8517_v5  ;;  %v8845_v31 = vsel %vm8723_vm13, %v10015_v53, 0.0  ;;  %v10026_v39 = vunpack.c.l.bf16 %v10194_v17 }
 0x3ff   : > { %v8939_v9 = vmax.f32 %v11231_v14, 0.0  ;;  %v8986_v56 = vadd.f32 %v8938_v2, %v8842_v34  ;;  %v10022_v5 = vunpack.c.l.bf16 %v10193_v48  ;;  %v10023_v42 = vunpack.c.h.bf16 %v10193_v48 }
 0x400   : > { %v8937_v32 = vmax.f32 %v11233_v43, 0.0  ;;  %v8984_v30 = vadd.f32 %v8936_v25, %v8840_v57  ;;  %v10027_v43 = vunpack.c.h.bf16 %v10194_v17  ;;  %v8850_v47 = vsel %vm8723_vm13, %v10026_v39, 0.0 }
 0x401   : > { %v8987_v37 = vadd.f32 %v8939_v9, %v8843_v4  ;;  %v11250_v53 = vadd.f32 %v14715_v59, %v14750_v44  ;;  %v10031_v59 = vunpack.c.h.bf16 %v10195_v3  ;;  %v11256_v48 = vadd.f32 %v14750_v44, %v14721_v7 }
 0x402   : > { %v8985_v46 = vadd.f32 %v8937_v32, %v8841_v40  ;;  %v11164_v12 = vpop.f32.mrb[24].mxu1  ;;  %v11248_v32 = vadd.f32 %v14750_v44, %v14713_v28  ;;  %v8848_v28 = vsel %vm8723_vm13, %v10022_v5, 0.0 }
 0x403   : > { %v10118_v38 = vpack.c.bf16 %v8987_v37, %v8986_v56  ;;  %v11235_v49 = vadd.f32 %v11234_v24, %v11164_v12  ;;  %v8530_v15 = vpop.f32.mrb[25].mxu1 }
 0x404   : > { %v10113_v50 = vpack.c.bf16 %v8985_v46, %v8984_v30  ;;  %v11237_v0 = vadd.f32 %v11236_v54, %v8530_v15  ;;  %v11165_v52 = vpop.f32.mrb[26].mxu1  ;;  %v10196_v54 = vld [vmem:[%s12117_s29 + $0x88] sm:$0xff]   ;;  %v8851_v46 = vsel %vm8723_vm13, %v10027_v43, 0.0 }
 0x405   : > { %10213 = vst [vmem:[%s14781_s27 + $0x58] sm:$0xff] %v10118_v38   ;;  %v8942_v63 = vmax.f32 %v11235_v49, 0.0  ;;  %v11239_v10 = vadd.f32 %v11238_v18, %v11165_v52  ;;  %v8533_v60 = vpop.f32.mrb[27].mxu1  ;;  %v8849_v38 = vsel %vm8723_vm13, %v10023_v42, 0.0  ;;  %v10034_v15 = vunpack.c.l.bf16 %v10196_v54 }
 0x406   : > { %10212 = vst [vmem:[%s14781_s27 + $0x50] sm:$0xff] %v10113_v50   ;;  %v8940_v61 = vmax.f32 %v11237_v0, 0.0  ;;  %v11241_v36 = vadd.f32 %v11240_v35, %v8533_v60  ;;  %v10030_v0 = vunpack.c.l.bf16 %v10195_v3  ;;  %v11252_v52 = vadd.f32 %v14750_v44, %v14717_v33 }
 0x407   : > { %v8943_v58 = vmax.f32 %v11239_v10, 0.0  ;;  %v8990_v2 = vadd.f32 %v8942_v63, %v8846_v23  ;;  %v10035_v17 = vunpack.c.h.bf16 %v10196_v54  ;;  %v11254_v23 = vadd.f32 %v14719_v45, %v14750_v44 }
 0x408   : > { %v8941_v1 = vmax.f32 %v11241_v36, 0.0  ;;  %v8988_v34 = vadd.f32 %v8940_v61, %v8844_v20  ;;  %v8854_v45 = vsel %vm8723_vm13, %v10034_v15, 0.0  ;;  %v8852_v7 = vsel %vm8723_vm13, %v10030_v0, 0.0 }
 0x409   : > { %v8991_v14 = vadd.f32 %v8943_v58, %v8847_v27  ;;  %v11260_v42 = vadd.f32 %v14750_v44, %v14725_v22 }
 0x40a   : > { %v8989_v25 = vadd.f32 %v8941_v1, %v8845_v31  ;;  %v11168_v4 = vpop.f32.mrb[28].mxu1 }
 0x40b   : > { %v10128_v57 = vpack.c.bf16 %v8991_v14, %v8990_v2  ;;  %v11243_v9 = vadd.f32 %v11242_v19, %v11168_v4  ;;  %v8546_v40 = vpop.f32.mrb[29].mxu1  ;;  %v10198_v19 = vld [vmem:[%s12117_s29 + $0x98] sm:$0xff]   ;;  %v8855_v14 = vsel %vm8723_vm13, %v10035_v17, 0.0 }
 0x40c   : > { %v10123_v51 = vpack.c.bf16 %v8989_v25, %v8988_v34  ;;  %v11245_v24 = vadd.f32 %v11244_v21, %v8546_v40  ;;  %v11169_v6 = vpop.f32.mrb[30].mxu1  ;;  %v10197_v21 = vld [vmem:[%s12117_s29 + $0x90] sm:$0xff]   ;;  %v8853_v25 = vsel %vm8723_vm13, %v10031_v59, 0.0  ;;  %v10042_v43 = vunpack.c.l.bf16 %v10198_v19 }
 0x40d   : > { %10215 = vst [vmem:[%s14781_s27 + $0x68] sm:$0xff] %v10128_v57   ;;  %v8946_v56 = vmax.f32 %v11243_v9, 0.0  ;;  %v11247_v37 = vadd.f32 %v11246_v55, %v11169_v6  ;;  %v8549_v62 = vpop.f32.mrb[31].mxu1  ;;  %v11258_v55 = vadd.f32 %v14723_v8, %v14750_v44  ;;  %v10038_v40 = vunpack.c.l.bf16 %v10197_v21 }
 0x40e   : > { %10214 = vst [vmem:[%s14781_s27 + $0x60] sm:$0xff] %v10123_v51   ;;  %v8944_v30 = vmax.f32 %v11245_v24, 0.0  ;;  %v11249_v12 = vadd.f32 %v11248_v32, %v8549_v62  ;;  %v10043_v6 = vunpack.c.h.bf16 %v10198_v19  ;;  %v10039_v8 = vunpack.c.h.bf16 %v10197_v21 }
 0x40f   : > { %v8947_v18 = vmax.f32 %v11247_v37, 0.0  ;;  %v8994_v35 = vadd.f32 %v8946_v56, %v8850_v47  ;;  %v11262_v56 = vadd.f32 %v14727_v13, %v14750_v44  ;;  %v11264_v47 = vadd.f32 %v14750_v44, %v14729_v11 }
 0x410   : > { %v8945_v49 = vmax.f32 %v11249_v12, 0.0  ;;  %v8992_v63 = vadd.f32 %v8944_v30, %v8848_v28  ;;  %v8858_v13 = vsel %vm8723_vm13, %v10042_v43, 0.0  ;;  %v8856_v11 = vsel %vm8723_vm13, %v10038_v40, 0.0  ;;  %v15616_v40 = vld [vmem:[#allocation8_spill] sm:$0xff] }
 0x411   : > { %v8995_v50 = vadd.f32 %v8947_v18, %v8851_v46  ;;  %v10200_v18 = vld [vmem:[%s12117_s29 + $0xa8] sm:$0xff]  }
 0x412   : > { %v8993_v10 = vadd.f32 %v8945_v49, %v8849_v38  ;;  %v11172_v60 = vpop.f32.mrb[32].mxu1  ;;  %v8859_v49 = vsel %vm8723_vm13, %v10043_v6, 0.0  ;;  %v10051_v59 = vunpack.c.h.bf16 %v10200_v18  ;;  %v15617_v6 = vld [vmem:[#allocation5_spill] sm:$0xff] }
 0x413   : > { %v10138_v61 = vpack.c.bf16 %v8995_v50, %v8994_v35  ;;  %v11251_v27 = vadd.f32 %v11250_v53, %v11172_v60  ;;  %v8562_v36 = vpop.f32.mrb[33].mxu1  ;;  %v10199_v53 = vld [vmem:[%s12117_s29 + $0xa0] sm:$0xff]   ;;  %v8857_v50 = vsel %vm8723_vm13, %v10039_v8, 0.0 }
 0x414   : > { %v10133_v20 = vpack.c.bf16 %v8993_v10, %v8992_v63  ;;  %v11253_v58 = vadd.f32 %v11252_v52, %v8562_v36  ;;  %v11173_v33 = vpop.f32.mrb[34].mxu1  ;;  %v10050_v52 = vunpack.c.l.bf16 %v10200_v18  ;;  %v11266_v63 = vadd.f32 %v14731_v16, %v14750_v44 }
 0x415   : > { %10217 = vst [vmem:[%s14781_s27 + $0x78] sm:$0xff] %v10138_v61   ;;  %v8950_v31 = vmax.f32 %v11251_v27, 0.0  ;;  %v11255_v1 = vadd.f32 %v11254_v23, %v11173_v33  ;;  %v8565_v39 = vpop.f32.mrb[35].mxu1  ;;  %v10046_v17 = vunpack.c.l.bf16 %v10199_v53  ;;  %v11268_v23 = vadd.f32 %v14750_v44, %v14733_v26 }
 0x416   : > { %10216 = vst [vmem:[%s14781_s27 + $0x70] sm:$0xff] %v10133_v20   ;;  %v8948_v2 = vmax.f32 %v11253_v58, 0.0  ;;  %v11257_v5 = vadd.f32 %v11256_v48, %v8565_v39  ;;  %v11270_v48 = vadd.f32 %v14735_v41, %v14750_v44  ;;  %v10047_v16 = vunpack.c.h.bf16 %v10199_v53 }
 0x417   : > { %v8951_v34 = vmax.f32 %v11255_v1, 0.0  ;;  %v8998_v57 = vadd.f32 %v8950_v31, %v8854_v45  ;;  %v15615_v31 = vld [vmem:[#allocation11_spill] sm:$0xff]  ;;  %v8862_v41 = vsel %vm8723_vm13, %v10050_v52, 0.0 }
 0x418   : > { %v8949_v4 = vmax.f32 %v11257_v5, 0.0  ;;  %v8996_v32 = vadd.f32 %v8948_v2, %v8852_v7  ;;  %v11272_v1 = vadd.f32 %v14750_v44, %v15615_v31  ;;  %v10202_v5 = vld [vmem:[%s12117_s29 + $0xb8] sm:$0xff]   ;;  %v8863_v7 = vsel %vm8723_vm13, %v10051_v59, 0.0 }
 0x419   : > { %v8999_v9 = vadd.f32 %v8951_v34, %v8855_v14  ;;  %v10059_v8 = vunpack.c.h.bf16 %v10202_v5 }
 0x41a   : > { %v8997_v51 = vadd.f32 %v8949_v4, %v8853_v25  ;;  %v11176_v24 = vpop.f32.mrb[36].mxu1  ;;  %v10201_v25 = vld [vmem:[%s12117_s29 + $0xb0] sm:$0xff]   ;;  %v8860_v4 = vsel %vm8723_vm13, %v10046_v17, 0.0 }
 0x41b   : > { %v10148_v37 = vpack.c.bf16 %v8999_v9, %v8998_v57  ;;  %v11259_v62 = vadd.f32 %v11258_v55, %v11176_v24  ;;  %v8578_v54 = vpop.f32.mrb[37].mxu1  ;;  %v8861_v55 = vsel %vm8723_vm13, %v10047_v16, 0.0  ;;  %v10058_v9 = vunpack.c.l.bf16 %v10202_v5 }
 0x41c   : > { %v10143_v30 = vpack.c.bf16 %v8997_v51, %v8996_v32  ;;  %v11261_v46 = vadd.f32 %v11260_v42, %v8578_v54  ;;  %v11177_v22 = vpop.f32.mrb[38].mxu1  ;;  %v11274_v42 = vadd.f32 %v15616_v40, %v14750_v44  ;;  %v10054_v24 = vunpack.c.l.bf16 %v10201_v25 }
 0x41d   : > { %10219 = vst [vmem:[%s14781_s27 + $0x88] sm:$0xff] %v10148_v37   ;;  %v8954_v12 = vmax.f32 %v11259_v62, 0.0  ;;  %v11263_v3 = vadd.f32 %v11262_v56, %v11177_v22  ;;  %v8581_v28 = vpop.f32.mrb[39].mxu1  ;;  %v11276_v56 = vadd.f32 %v14750_v44, %v15617_v6 }
 0x41e   : > { %10218 = vst [vmem:[%s14781_s27 + $0x80] sm:$0xff] %v10143_v30   ;;  %v8952_v38 = vmax.f32 %v11261_v46, 0.0  ;;  %v11265_v15 = vadd.f32 %v11264_v47, %v8581_v28  ;;  %v15618_v47 = vld [vmem:[#allocation12_spill] sm:$0xff]  ;;  %v15619_v28 = vld [vmem:[#allocation10_spill] sm:$0xff] }
 0x41f   : > { %v8955_v35 = vmax.f32 %v11263_v3, 0.0  ;;  %v9002_v10 = vadd.f32 %v8954_v12, %v8858_v13  ;;  %v11278_v30 = vadd.f32 %v15618_v47, %v14750_v44  ;;  %v10055_v3 = vunpack.c.h.bf16 %v10201_v25 }
 0x420   : > { %v8953_v0 = vmax.f32 %v11265_v15, 0.0  ;;  %v9000_v61 = vadd.f32 %v8952_v38, %v8856_v11  ;;  %v11280_v18 = vadd.f32 %v14750_v44, %v15619_v28  ;;  %v8864_v44 = vsel %vm8723_vm13, %v10054_v24, 0.0 }
 0x421   : > { %v9003_v60 = vadd.f32 %v8955_v35, %v8859_v49  ;;  %v8866_v35 = vsel %vm8723_vm13, %v10058_v9, 0.0 }
 0x422   : > { %v9001_v27 = vadd.f32 %v8953_v0, %v8857_v50  ;;  %v11180_v36 = vpop.f32.mrb[40].mxu1  ;;  %v8867_v0 = vsel %vm8723_vm13, %v10059_v8, 0.0 }
 0x423   : > { %v10158_v20 = vpack.c.bf16 %v9003_v60, %v9002_v10  ;;  %v11267_v58 = vadd.f32 %v11266_v63, %v11180_v36  ;;  %v8594_v33 = vpop.f32.mrb[41].mxu1  ;;  %v8865_v10 = vsel %vm8723_vm13, %v10055_v3, 0.0 }
 0x424   : > { %v10153_v39 = vpack.c.bf16 %v9001_v27, %v9000_v61  ;;  %v11269_v19 = vadd.f32 %v11268_v23, %v8594_v33  ;;  %v11181_v26 = vpop.f32.mrb[42].mxu1 }
 0x425   : > { %10221 = vst [vmem:[%s14781_s27 + $0x98] sm:$0xff] %v10158_v20   ;;  %v8958_v45 = vmax.f32 %v11267_v58, 0.0  ;;  %v11271_v2 = vadd.f32 %v11270_v48, %v11181_v26  ;;  %v8597_v14 = vpop.f32.mrb[43].mxu1 }
 0x426   : > { %10220 = vst [vmem:[%s14781_s27 + $0x90] sm:$0xff] %v10153_v39   ;;  %v8956_v21 = vmax.f32 %v11269_v19, 0.0  ;;  %v11273_v34 = vadd.f32 %v11272_v1, %v8597_v14 }
 0x427   : > { %v8959_v43 = vmax.f32 %v11271_v2, 0.0  ;;  %v9006_v32 = vadd.f32 %v8958_v45, %v8862_v41 }
 0x428   : > { %v8957_v57 = vmax.f32 %v11273_v34, 0.0  ;;  %v9004_v37 = vadd.f32 %v8956_v21, %v8860_v4 }
 0x429   : > { %v9007_v51 = vadd.f32 %v8959_v43, %v8863_v7 }
 0x42a   : > { %v9005_v62 = vadd.f32 %v8957_v57, %v8861_v55  ;;  %v11184_v54 = vpop.f32.mrb[44].mxu1 }
 0x42b   : > { %v10168_v46 = vpack.c.bf16 %v9007_v51, %v9006_v32  ;;  %v11275_v22 = vadd.f32 %v11274_v42, %v11184_v54  ;;  %v8610_v12 = vpop.f32.mrb[45].mxu1 }
 0x42c   : > { %v10163_v13 = vpack.c.bf16 %v9005_v62, %v9004_v37  ;;  %v11277_v38 = vadd.f32 %v11276_v56, %v8610_v12  ;;  %v11185_v49 = vpop.f32.mrb[46].mxu1 }
 0x42d   : > { %10223 = vst [vmem:[%s14781_s27 + $0xa8] sm:$0xff] %v10168_v46   ;;  %v8962_v15 = vmax.f32 %v11275_v22, 0.0  ;;  %v11279_v53 = vadd.f32 %v11278_v30, %v11185_v49  ;;  %v8613_v11 = vpop.f32.mrb[47].mxu1 }
 0x42e   : > { %10222 = vst [vmem:[%s14781_s27 + $0xa0] sm:$0xff] %v10163_v13   ;;  %v8960_v50 = vmax.f32 %v11277_v38, 0.0  ;;  %v11281_v52 = vadd.f32 %v11280_v18, %v8613_v11 }
 0x42f   : > { %v8963_v63 = vmax.f32 %v11279_v53, 0.0  ;;  %v9010_v17 = vadd.f32 %v8962_v15, %v8866_v35 }
 0x430   : > { %v8961_v60 = vmax.f32 %v11281_v52, 0.0  ;;  %v9008_v61 = vadd.f32 %v8960_v50, %v8864_v44 }
 0x431   : > { %v9011_v23 = vadd.f32 %v8963_v63, %v8867_v0 }
 0x432   : > { %v9009_v27 = vadd.f32 %v8961_v60, %v8865_v10 }
 0x433   : > { %v10178_v36 = vpack.c.bf16 %v9011_v23, %v9010_v17 }
 0x434   : > { %v10173_v59 = vpack.c.bf16 %v9009_v27, %v9008_v61 }
 0x435   : > { %10225 = vst [vmem:[%s14781_s27 + $0xb8] sm:$0xff] %v10178_v36  }
 0x436   : > { %10224 = vst [vmem:[%s14781_s27 + $0xb0] sm:$0xff] %v10173_v59  }
 0x437 PF: > { %s15_s18 = sadd.s32 1, %s12059_s18  }
 0x438   : > { %p12_p4 = scmp.ge.s32.totalorder %s15_s18, 4  }
 0x43a   :  { %14 = sbr.rel (!%p12_p4) target bundleno = 1 (0x1), region = 78 }

</bundles_post_ra>
